<compile_context>
chip_gen: v6e
topology: v6e:2x2x1
jax: 0.10.0
libtpu: 0.0.40
codegen_flags: <defaults>
</compile_context>

<pallas_src>
import functools
import math

import jax
import jax.numpy as jnp
from jax.experimental import pallas as pl
from jax.experimental.pallas import tpu as pltpu


def _convlstm_kernel(hx_ref, w_ref, b_ref, c_ref, pe_ref, hc_out_ref, acc_ref,
                     *, H_tile, W, Kp, Ch, kh):
    """One (batch, H-tile) step of the peephole ConvLSTM cell.

    hx_ref : (1, H+kh-1, W, Kp)   kw-folded, K-padded, H-padded [x, h] slab
    w_ref  : (kh, Kp, 4*Ch)       conv weight, one K=Kp matmul slice per kh tap
    b_ref  : (1, 4*Ch)            conv bias (f32)
    c_ref  : (1, H_tile, W, Ch)   previous cell-state tile (f32)
    pe_ref : (H, W, 4*Ch)         fused peephole slab [Wci|Wcf|0|Wco] (f32, resident)
    hc_out_ref : (1, H_tile, W*2*Ch)  lane-dense concat([h_t, c_t], channel)
    acc_ref : (H_tile*W, 4*Ch)    f32 VMEM accumulator scratch
    """
    C4 = 4 * Ch
    M = H_tile * W
    t = pl.program_id(1)
    row0 = pl.multiple_of(t * H_tile, H_tile)

    # --- convolution: kh MXU matmuls with a 128-padded contraction ----------
    for dy in range(kh):                      # static, fully unrolled (kh small)
        patch = hx_ref[0, pl.ds(row0 + dy, H_tile), :, :]       # (H_tile, W, Kp)
        contrib = jnp.dot(patch.reshape(M, Kp), w_ref[dy],
                          preferred_element_type=jnp.float32)    # (M, 4*Ch) f32
        if dy == 0:
            acc_ref[...] = contrib
        else:
            acc_ref[...] += contrib
    y = acc_ref[...] + b_ref[...]                                # (M, 4*Ch) f32

    # --- lane-dense gate math on the full (M, 4*Ch) slab ---------------------
    c_prev = c_ref[0].reshape(M, Ch).astype(jnp.float32)         # (M, Ch)
    c4 = jnp.concatenate([c_prev, c_prev, c_prev, c_prev], axis=-1)   # (M, 4*Ch)
    pe = pe_ref[pl.ds(row0, H_tile), :, :].reshape(M, C4).astype(jnp.float32)
    z = y + pe * c4            # [yi + Wci*c | yf + Wcf*c | yc | yo + Wco*c]

    lane = jax.lax.broadcasted_iota(jnp.int32, (M, C4), 1)
    is_c_gate = jnp.logical_and(lane >= 2 * Ch, lane < 3 * Ch)
    # Two full-width EUP passes instead of five 32-lane passes.
    g = jnp.where(is_c_gate, jnp.tanh(z), jax.nn.sigmoid(z))     # (M, 4*Ch)

    i_t = g[:, 0 * Ch:1 * Ch]
    f_t = g[:, 1 * Ch:2 * Ch]
    g_c = g[:, 2 * Ch:3 * Ch]
    o_t = g[:, 3 * Ch:4 * Ch]

    c_t = f_t * c_prev + i_t * g_c
    # Module semantics: o_t is gated with the OLD cell state (matches PyTorch).
    h_t = o_t * jnp.tanh(c_t)

    h3 = h_t.reshape(H_tile, W, Ch)
    c3 = c_t.reshape(H_tile, W, Ch)
    hc = jnp.concatenate([h3, c3], axis=-1)                      # (H_tile, W, 2*Ch)
    hc_out_ref[...] = hc.reshape(1, H_tile, W * 2 * Ch).astype(hc_out_ref.dtype)


def _pick_h_tile(H, W, max_rows=256):
    """Largest divisor of H such that M = h_tile*W fills a 256-wide MXU pass
    while keeping the out-block second-to-last dim block-legal (mult of 8 or H)."""
    # TODO(synk): tile W as well for very wide images (W*h_tile >> 256).
    cands = [c for c in range(1, H + 1)
             if H % c == 0 and (c % 8 == 0 or c == H) and c * W <= max(max_rows, W)]
    if not cands:
        return H
    return max(cands)


def convlstm_cell_pallas(x, h, c, weight, bias, Wci, Wcf, Wco, *,
                         h_tile=None, compute_dtype=None):
    """Forward pass of the peephole ConvLSTM cell (PyTorch NCHW conventions).

    x      : (B, Cin, H, W)
    h, c   : (B, Ch,  H, W)
    weight : (4*Ch, Cin+Ch, kh, kw)   nn.Conv2d weight
    bias   : (4*Ch,)
    Wci/Wcf/Wco : (1, Ch, H, W)
    compute_dtype : MXU operand dtype for the conv (e.g. jnp.bfloat16 on
                    v6e/v7x); accumulation and gate math stay f32.
    Returns (H_t, C_t), each (B, Ch, H, W).
    """
    B, Cin, H, W = x.shape
    Ch = h.shape[1]
    C4, Ctot, kh, kw = weight.shape
    assert C4 == 4 * Ch and Ctot == Cin + Ch
    # Same padding only well-defined for odd kernels (module's "!Caution").
    assert kh % 2 == 1 and kw % 2 == 1, "odd kernel_size required for same padding"
    ph, pw = (kh - 1) // 2, (kw - 1) // 2

    if compute_dtype is None:
        compute_dtype = x.dtype
    if h_tile is None:
        h_tile = _pick_h_tile(H, W)
    assert H % h_tile == 0

    # ---- per-call glue (layout / padding / tap folding), plain JAX ----------
    # TODO(synk): in a sequence loop, keep h/c in NHWC across timesteps so these
    # transposes / concat / pad are not redone every step (HBM traffic).
    # TODO(synk): on v5e, move the kw fold in-kernel (XLU concat of width-shifted
    # slices) to avoid the 3x HBM duplication of the folded slab.
    x_n = jnp.transpose(x, (0, 2, 3, 1))                    # NCHW -> NHWC
    h_n = jnp.transpose(h, (0, 2, 3, 1))
    c_n = jnp.transpose(c, (0, 2, 3, 1)).astype(jnp.float32)
    hx = jnp.concatenate([x_n, h_n], axis=-1)               # (B, H, W, Ctot)
    hx_pad = jnp.pad(hx, ((0, 0), (ph, ph), (pw, pw), (0, 0)))
    # Fold the kw width taps into the channel (contraction) axis:
    #   hx_w[b, y, x, dx*Ctot + ci] = hx_pad[b, y, x + dx, ci]
    hx_w = jnp.concatenate([hx_pad[:, :, dx:dx + W, :] for dx in range(kw)],
                           axis=-1)                          # (B, H+kh-1, W, kw*Ctot)
    KwC = kw * Ctot
    Kp = ((KwC + 127) // 128) * 128                          # pad contraction to 128
    if Kp != KwC:
        hx_w = jnp.pad(hx_w, ((0, 0), (0, 0), (0, 0), (0, Kp - KwC)))
    hx_w = hx_w.astype(compute_dtype)
    Hp = H + kh - 1

    # (4Ch, Ctot, kh, kw) -> (kh, Kp, 4Ch): one K=Kp matmul slice per kh tap.
    w_taps = jnp.transpose(weight, (2, 3, 1, 0)).reshape(kh, KwC, C4)
    if Kp != KwC:
        w_taps = jnp.pad(w_taps, ((0, 0), (0, Kp - KwC), (0, 0)))
    w_taps = w_taps.astype(compute_dtype)
    b2d = bias.reshape(1, C4).astype(jnp.float32)

    # Fused resident peephole slab [Wci | Wcf | 0 | Wco] in NHWC: (H, W, 4*Ch).
    pe = jnp.concatenate([Wci[0], Wcf[0], jnp.zeros_like(Wci[0]), Wco[0]], axis=0)
    pe = jnp.transpose(pe, (1, 2, 0)).astype(jnp.float32)    # (H, W, 4*Ch)

    kernel = functools.partial(_convlstm_kernel, H_tile=h_tile, W=W, Kp=Kp,
                               Ch=Ch, kh=kh)
    grid = (B, H // h_tile)
    M = h_tile * W

    hc = pl.pallas_call(
        kernel,
        out_shape=jax.ShapeDtypeStruct((B, H, W * 2 * Ch), x.dtype),
        grid_spec=pltpu.PrefetchScalarGridSpec(
            num_scalar_prefetch=0,
            grid=grid,
            in_specs=[
                # Folded input slab: constant along t -> resident across H tiles.
                pl.BlockSpec((1, Hp, W, Kp), lambda b, t: (b, 0, 0, 0)),
                # Weights / bias / peephole slab: constant index -> DMA'd once.
                pl.BlockSpec((kh, Kp, C4), lambda b, t: (0, 0, 0)),
                pl.BlockSpec((1, C4), lambda b, t: (0, 0)),
                # Streaming previous cell-state tile (double-buffered by Pallas).
                pl.BlockSpec((1, h_tile, W, Ch), lambda b, t: (b, t, 0, 0)),
                pl.BlockSpec((H, W, C4), lambda b, t: (0, 0, 0)),
            ],
            # Lane-dense output slab: last dim W*2*Ch (1024 here) -> unmasked vst.
            out_specs=pl.BlockSpec((1, h_tile, W * 2 * Ch),
                                   lambda b, t: (b, t, 0)),
            scratch_shapes=[pltpu.VMEM((M, C4), jnp.float32)],
        ),
        compiler_params=pltpu.CompilerParams(
            # Both axes independent -> shardable across v7x's 2 TensorCores
            # (B=2 gives each core work); harmless on v5e/v6e.
            dimension_semantics=("parallel", "parallel"),
            # Conservative: safe on v7x's 64 MiB VMEM; raise on v5e/v6e (128 MiB)
            # for much larger shapes.
            vmem_limit_bytes=32 * 1024 * 1024,
        ),
    )(hx_w, w_taps, b2d, c_n, pe)

    hc = hc.reshape(B, H, W, 2 * Ch)                         # free trailing reshape
    H_t = jnp.transpose(hc[..., :Ch], (0, 3, 1, 2))          # NHWC -> NCHW
    C_t = jnp.transpose(hc[..., Ch:], (0, 3, 1, 2))
    return H_t, C_t


def convlstm_cell_ref(x, h, c, weight, bias, Wci, Wcf, Wco):
    """Pure-JAX reference matching the PyTorch module semantics."""
    kh, kw = weight.shape[2], weight.shape[3]
    ph, pw = (kh - 1) // 2, (kw - 1) // 2
    hx = jnp.concatenate([x, h], axis=1)
    y = jax.lax.conv_general_dilated(
        hx, weight, window_strides=(1, 1),
        padding=((ph, ph), (pw, pw)),
        dimension_numbers=('NCHW', 'OIHW', 'NCHW'))
    y = y + bias[None, :, None, None]
    yi, yf, yc, yo = jnp.split(y, 4, axis=1)
    i_t = jax.nn.sigmoid(yi + Wci * c)
    f_t = jax.nn.sigmoid(yf + Wcf * c)
    C_t = f_t * c + i_t * jnp.tanh(yc)
    o_t = jax.nn.sigmoid(yo + Wco * c)
    H_t = o_t * jnp.tanh(C_t)
    return H_t, C_t


if __name__ == "__main__":
    # Small, deterministic example consistent with the module's forward().
    B, Cin, Ch, H, W, K = 2, 4, 32, 16, 16, 3
    key = jax.random.PRNGKey(0)
    ks = jax.random.split(key, 8)

    x = jax.random.normal(ks[0], (B, Cin, H, W), jnp.float32)
    h = jax.random.normal(ks[1], (B, Ch, H, W), jnp.float32)
    c = jax.random.normal(ks[2], (B, Ch, H, W), jnp.float32)

    # nn.Conv2d-style deterministic init (uniform(-1/sqrt(fan_in), +...)).
    fan_in = (Cin + Ch) * K * K
    bound = 1.0 / math.sqrt(fan_in)
    weight = jax.random.uniform(ks[3], (4 * Ch, Cin + Ch, K, K),
                                jnp.float32, -bound, bound)
    bias = jax.random.uniform(ks[4], (4 * Ch,), jnp.float32, -bound, bound)
    # PyTorch inits Wci/Wcf/Wco to zeros; use small random values here so the
    # peephole terms are actually exercised (still deterministic).
    Wci = 0.1 * jax.random.normal(ks[5], (1, Ch, H, W), jnp.float32)
    Wcf = 0.1 * jax.random.normal(ks[6], (1, Ch, H, W), jnp.float32)
    Wco = 0.1 * jax.random.normal(ks[7], (1, Ch, H, W), jnp.float32)

    H_ref, C_ref = convlstm_cell_ref(x, h, c, weight, bias, Wci, Wcf, Wco)

    # f32 MXU operands: tight check against the reference.
    H_t, C_t = convlstm_cell_pallas(x, h, c, weight, bias, Wci, Wcf, Wco)
    jax.block_until_ready((H_t, C_t))
    assert H_t.shape == (B, Ch, H, W) and C_t.shape == (B, Ch, H, W)
    assert jnp.allclose(H_t, H_ref, atol=1e-3, rtol=1e-3)
    assert jnp.allclose(C_t, C_ref, atol=1e-3, rtol=1e-3)

    # bf16 MXU operands (v6e/v7x fast path), f32 accumulate + f32 gate math.
    H_b, C_b = convlstm_cell_pallas(x, h, c, weight, bias, Wci, Wcf, Wco,
                                    compute_dtype=jnp.bfloat16)
    jax.block_until_ready((H_b, C_b))
    assert jnp.allclose(H_b, H_ref, atol=5e-2, rtol=5e-2)
    assert jnp.allclose(C_b, C_ref, atol=5e-2, rtol=5e-2)

    print("KERNEL_OK")
</pallas_src>

<mosaic_0001>
module attributes {stable_mosaic.version = 11 : i64} {
  func.func @_convlstm_kernel(%arg0: i32, %arg1: i32, %arg2: memref<1x18x16x128xf32, #tpu.memory_space<vmem>>, %arg3: memref<3x128x128xf32, #tpu.memory_space<vmem>>, %arg4: memref<1x128xf32, #tpu.memory_space<vmem>>, %arg5: memref<1x16x16x32xf32, #tpu.memory_space<vmem>>, %arg6: memref<16x16x128xf32, #tpu.memory_space<vmem>>, %arg7: memref<1x16x1024xf32, #tpu.memory_space<vmem>>, %arg8: memref<256x128xf32, #tpu.memory_space<vmem>>) attributes {dimension_semantics = [#tpu.dimension_semantics<parallel>, #tpu.dimension_semantics<parallel>], iteration_bounds = array<i64: 2, 1>, scalar_prefetch = 0 : i64, scratch_operands = 1 : i64, tpu.core_type = #tpu.core_type<tc>, window_params = [{transform_indices = @transform_0, window_bounds = array<i64: 1, 18, 16, 128>}, {pipeline_mode = #tpu.pipeline_mode<synchronous>, transform_indices = @transform_1, window_bounds = array<i64: 3, 128, 128>}, {pipeline_mode = #tpu.pipeline_mode<synchronous>, transform_indices = @transform_2, window_bounds = array<i64: 1, 128>}, {transform_indices = @transform_3, window_bounds = array<i64: 1, 16, 16, 32>}, {pipeline_mode = #tpu.pipeline_mode<synchronous>, transform_indices = @transform_4, window_bounds = array<i64: 16, 16, 128>}, {transform_indices = @transform_5, window_bounds = array<i64: 1, 16, 1024>}]} {
    %c16_i32 = arith.constant 16 : i32
    %0 = arith.muli %arg1, %c16_i32 : i32
    %1 = tpu.assume_multiple %0, 16 : i32
    %c0_i32 = arith.constant 0 : i32
    %2 = arith.addi %1, %c0_i32 : i32
    %c0 = arith.constant 0 : index
    %3 = arith.index_cast %2 : i32 to index
    %c0_0 = arith.constant 0 : index
    %c0_1 = arith.constant 0 : index
    %4 = vector.load %arg2[%c0, %3, %c0_0, %c0_1] : memref<1x18x16x128xf32, #tpu.memory_space<vmem>>, vector<1x16x16x128xf32>
    %5 = vector.shape_cast %4 : vector<1x16x16x128xf32> to vector<16x16x128xf32>
    %6 = vector.shape_cast %5 : vector<16x16x128xf32> to vector<256x128xf32>
    %c0_2 = arith.constant 0 : index
    %c0_3 = arith.constant 0 : index
    %c0_4 = arith.constant 0 : index
    %7 = vector.load %arg3[%c0_2, %c0_3, %c0_4] : memref<3x128x128xf32, #tpu.memory_space<vmem>>, vector<1x128x128xf32>
    %8 = vector.shape_cast %7 : vector<1x128x128xf32> to vector<128x128xf32>
    %cst = arith.constant dense<0.000000e+00> : vector<256x128xf32>
    %9 = tpu.matmul %6, %8, %cst {dimension_numbers = #tpu.dot_dimension_numbers<[1], [0], [0], [1], [0, 0, 1, 1], [], []>} : vector<256x128xf32>, vector<128x128xf32>, vector<256x128xf32> -> vector<256x128xf32>
    %c0_5 = arith.constant 0 : index
    %c0_6 = arith.constant 0 : index
    %10 = vector.load %arg8[%c0_5, %c0_6] : memref<256x128xf32, #tpu.memory_space<vmem>>, vector<256x128xf32>
    tpu.vector_store %arg8[%c0_5, %c0_6], %9 {strides = array<i32>} : memref<256x128xf32, #tpu.memory_space<vmem>>, vector<256x128xf32>,
    %c1_i32 = arith.constant 1 : i32
    %11 = arith.addi %1, %c1_i32 : i32
    %c0_7 = arith.constant 0 : index
    %12 = arith.index_cast %11 : i32 to index
    %c0_8 = arith.constant 0 : index
    %c0_9 = arith.constant 0 : index
    %13 = vector.load %arg2[%c0_7, %12, %c0_8, %c0_9] : memref<1x18x16x128xf32, #tpu.memory_space<vmem>>, vector<1x16x16x128xf32>
    %14 = vector.shape_cast %13 : vector<1x16x16x128xf32> to vector<16x16x128xf32>
    %15 = vector.shape_cast %14 : vector<16x16x128xf32> to vector<256x128xf32>
    %c1 = arith.constant 1 : index
    %c0_10 = arith.constant 0 : index
    %c0_11 = arith.constant 0 : index
    %16 = vector.load %arg3[%c1, %c0_10, %c0_11] : memref<3x128x128xf32, #tpu.memory_space<vmem>>, vector<1x128x128xf32>
    %17 = vector.shape_cast %16 : vector<1x128x128xf32> to vector<128x128xf32>
    %cst_12 = arith.constant dense<0.000000e+00> : vector<256x128xf32>
    %18 = tpu.matmul %15, %17, %cst_12 {dimension_numbers = #tpu.dot_dimension_numbers<[1], [0], [0], [1], [0, 0, 1, 1], [], []>} : vector<256x128xf32>, vector<128x128xf32>, vector<256x128xf32> -> vector<256x128xf32>
    %c0_13 = arith.constant 0 : index
    %c0_14 = arith.constant 0 : index
    %19 = vector.load %arg8[%c0_13, %c0_14] : memref<256x128xf32, #tpu.memory_space<vmem>>, vector<256x128xf32>
    %20 = arith.addf %19, %18 : vector<256x128xf32>
    %c0_15 = arith.constant 0 : index
    %c0_16 = arith.constant 0 : index
    %21 = vector.load %arg8[%c0_15, %c0_16] : memref<256x128xf32, #tpu.memory_space<vmem>>, vector<256x128xf32>
    tpu.vector_store %arg8[%c0_15, %c0_16], %20 {strides = array<i32>} : memref<256x128xf32, #tpu.memory_space<vmem>>, vector<256x128xf32>,
    %c2_i32 = arith.constant 2 : i32
    %22 = arith.addi %1, %c2_i32 : i32
    %c0_17 = arith.constant 0 : index
    %23 = arith.index_cast %22 : i32 to index
    %c0_18 = arith.constant 0 : index
    %c0_19 = arith.constant 0 : index
    %24 = vector.load %arg2[%c0_17, %23, %c0_18, %c0_19] : memref<1x18x16x128xf32, #tpu.memory_space<vmem>>, vector<1x16x16x128xf32>
    %25 = vector.shape_cast %24 : vector<1x16x16x128xf32> to vector<16x16x128xf32>
    %26 = vector.shape_cast %25 : vector<16x16x128xf32> to vector<256x128xf32>
    %c2 = arith.constant 2 : index
    %c0_20 = arith.constant 0 : index
    %c0_21 = arith.constant 0 : index
    %27 = vector.load %arg3[%c2, %c0_20, %c0_21] : memref<3x128x128xf32, #tpu.memory_space<vmem>>, vector<1x128x128xf32>
    %28 = vector.shape_cast %27 : vector<1x128x128xf32> to vector<128x128xf32>
    %cst_22 = arith.constant dense<0.000000e+00> : vector<256x128xf32>
    %29 = tpu.matmul %26, %28, %cst_22 {dimension_numbers = #tpu.dot_dimension_numbers<[1], [0], [0], [1], [0, 0, 1, 1], [], []>} : vector<256x128xf32>, vector<128x128xf32>, vector<256x128xf32> -> vector<256x128xf32>
    %c0_23 = arith.constant 0 : index
    %c0_24 = arith.constant 0 : index
    %30 = vector.load %arg8[%c0_23, %c0_24] : memref<256x128xf32, #tpu.memory_space<vmem>>, vector<256x128xf32>
    %31 = arith.addf %30, %29 : vector<256x128xf32>
    %c0_25 = arith.constant 0 : index
    %c0_26 = arith.constant 0 : index
    %32 = vector.load %arg8[%c0_25, %c0_26] : memref<256x128xf32, #tpu.memory_space<vmem>>, vector<256x128xf32>
    tpu.vector_store %arg8[%c0_25, %c0_26], %31 {strides = array<i32>} : memref<256x128xf32, #tpu.memory_space<vmem>>, vector<256x128xf32>,
    %c0_27 = arith.constant 0 : index
    %c0_28 = arith.constant 0 : index
    %33 = vector.load %arg8[%c0_27, %c0_28] : memref<256x128xf32, #tpu.memory_space<vmem>>, vector<256x128xf32>
    %c0_29 = arith.constant 0 : index
    %c0_30 = arith.constant 0 : index
    %34 = vector.load %arg4[%c0_29, %c0_30] : memref<1x128xf32, #tpu.memory_space<vmem>>, vector<1x128xf32>
    %35 = vector.broadcast %34 : vector<1x128xf32> to vector<256x128xf32>
    %36 = arith.addf %33, %35 : vector<256x128xf32>
    %c0_31 = arith.constant 0 : index
    %c0_32 = arith.constant 0 : index
    %c0_33 = arith.constant 0 : index
    %c0_34 = arith.constant 0 : index
    %37 = vector.load %arg5[%c0_31, %c0_32, %c0_33, %c0_34] : memref<1x16x16x32xf32, #tpu.memory_space<vmem>>, vector<1x16x16x32xf32>
    %38 = vector.shape_cast %37 : vector<1x16x16x32xf32> to vector<16x16x32xf32>
    %39 = vector.shape_cast %38 : vector<16x16x32xf32> to vector<256x32xf32>
    %40 = tpu.concatenate %39, %39, %39, %39 in 1 : vector<256x32xf32>, vector<256x32xf32>, vector<256x32xf32>, vector<256x32xf32> -> vector<256x128xf32>
    %41 = arith.index_cast %1 : i32 to index
    %c0_35 = arith.constant 0 : index
    %c0_36 = arith.constant 0 : index
    %42 = vector.load %arg6[%41, %c0_35, %c0_36] : memref<16x16x128xf32, #tpu.memory_space<vmem>>, vector<16x16x128xf32>
    %43 = vector.shape_cast %42 : vector<16x16x128xf32> to vector<256x128xf32>
    %44 = arith.mulf %43, %40 : vector<256x128xf32>
    %45 = arith.addf %36, %44 : vector<256x128xf32>
    %46 = tpu.iota {dimensions = array<i32: 1>} : vector<256x128xi32>
    %c64_i32 = arith.constant 64 : i32
    %47 = vector.broadcast %c64_i32 : i32 to vector<256x128xi32>
    %48 = arith.cmpi sge, %46, %47 : vector<256x128xi32>
    %c96_i32 = arith.constant 96 : i32
    %49 = vector.broadcast %c96_i32 : i32 to vector<256x128xi32>
    %50 = arith.cmpi slt, %46, %49 : vector<256x128xi32>
    %51 = arith.andi %48, %50 : vector<256x128xi1>
    %52 = math.tanh %45 : vector<256x128xf32>
    %53 = arith.negf %45 : vector<256x128xf32>
    %54 = math.exp %53 : vector<256x128xf32>
    %cst_37 = arith.constant 1.000000e+00 : f32
    %55 = vector.broadcast %cst_37 : f32 to vector<256x128xf32>
    %56 = arith.addf %55, %54 : vector<256x128xf32>
    %57 = arith.divf %55, %56 : vector<256x128xf32>
    %58 = arith.select %51, %52, %57 : vector<256x128xi1>, vector<256x128xf32>
    %59 = vector.extract_strided_slice %58 {offsets = [0, 0], sizes = [256, 32], strides = [1, 1]} : vector<256x128xf32> to vector<256x32xf32>
    %60 = vector.extract_strided_slice %58 {offsets = [0, 32], sizes = [256, 32], strides = [1, 1]} : vector<256x128xf32> to vector<256x32xf32>
    %61 = vector.extract_strided_slice %58 {offsets = [0, 64], sizes = [256, 32], strides = [1, 1]} : vector<256x128xf32> to vector<256x32xf32>
    %62 = vector.extract_strided_slice %58 {offsets = [0, 96], sizes = [256, 32], strides = [1, 1]} : vector<256x128xf32> to vector<256x32xf32>
    %63 = arith.mulf %60, %39 : vector<256x32xf32>
    %64 = arith.mulf %59, %61 : vector<256x32xf32>
    %65 = arith.addf %63, %64 : vector<256x32xf32>
    %66 = math.tanh %65 : vector<256x32xf32>
    %67 = arith.mulf %62, %66 : vector<256x32xf32>
    %68 = vector.shape_cast %67 : vector<256x32xf32> to vector<16x16x32xf32>
    %69 = vector.shape_cast %65 : vector<256x32xf32> to vector<16x16x32xf32>
    %70 = tpu.concatenate %68, %69 in 2 : vector<16x16x32xf32>, vector<16x16x32xf32> -> vector<16x16x64xf32>
    %71 = vector.shape_cast %70 : vector<16x16x64xf32> to vector<1x16x1024xf32>
    %c0_38 = arith.constant 0 : index
    %c0_39 = arith.constant 0 : index
    %c0_40 = arith.constant 0 : index
    %72 = vector.load %arg7[%c0_38, %c0_39, %c0_40] : memref<1x16x1024xf32, #tpu.memory_space<vmem>>, vector<1x16x1024xf32>
    tpu.vector_store %arg7[%c0_38, %c0_39, %c0_40], %71 {strides = array<i32>} : memref<1x16x1024xf32, #tpu.memory_space<vmem>>, vector<1x16x1024xf32>,
    return
  }
  func.func @transform_0(%arg0: i32, %arg1: i32) -> (i32, i32, i32, i32) {
    %c0_i32 = arith.constant 0 : i32
    %c0_i32_0 = arith.constant 0 : i32
    %c0_i32_1 = arith.constant 0 : i32
    %c0_i32_2 = arith.constant 0 : i32
    return %arg0, %c0_i32, %c0_i32_0, %c0_i32_1 : i32, i32, i32, i32
  }
  func.func @transform_1(%arg0: i32, %arg1: i32) -> (i32, i32, i32) {
    %c0_i32 = arith.constant 0 : i32
    %c0_i32_0 = arith.constant 0 : i32
    %c0_i32_1 = arith.constant 0 : i32
    %c0_i32_2 = arith.constant 0 : i32
    return %c0_i32, %c0_i32_0, %c0_i32_1 : i32, i32, i32
  }
  func.func @transform_2(%arg0: i32, %arg1: i32) -> (i32, i32) {
    %c0_i32 = arith.constant 0 : i32
    %c0_i32_0 = arith.constant 0 : i32
    %c0_i32_1 = arith.constant 0 : i32
    return %c0_i32, %c0_i32_0 : i32, i32
  }
  func.func @transform_3(%arg0: i32, %arg1: i32) -> (i32, i32, i32, i32) {
    %c0_i32 = arith.constant 0 : i32
    %c0_i32_0 = arith.constant 0 : i32
    %c0_i32_1 = arith.constant 0 : i32
    return %arg0, %arg1, %c0_i32, %c0_i32_0 : i32, i32, i32, i32
  }
  func.func @transform_4(%arg0: i32, %arg1: i32) -> (i32, i32, i32) {
    %c0_i32 = arith.constant 0 : i32
    %c0_i32_0 = arith.constant 0 : i32
    %c0_i32_1 = arith.constant 0 : i32
    %c0_i32_2 = arith.constant 0 : i32
    return %c0_i32, %c0_i32_0, %c0_i32_1 : i32, i32, i32
  }
  func.func @transform_5(%arg0: i32, %arg1: i32) -> (i32, i32, i32) {
    %c0_i32 = arith.constant 0 : i32
    %c0_i32_0 = arith.constant 0 : i32
    return %arg0, %arg1, %c0_i32 : i32, i32, i32
  }
}

</mosaic_0001>

<bundles_post_ra>
// kernel: tpu_custom_call.1
= control target key start
LH: loop header
LB: loop body
LE: loop exit
PB: predicated region body
PF: predicated region fallthrough
CT: control target
= control target key end

     0   :  { %s7242_s0 = inlined_call_operand.hbm [shape: f32[2,18,16,128], index: 0, kind: input, shape index: {}]   ;;  %s7243_s1 = inlined_call_operand.hbm [shape: f32[3,128,128], index: 1, kind: input, shape index: {}]   ;;  %s7244_s2 = inlined_call_operand.vmem [shape: f32[1,128], index: 2, kind: input, shape index: {}]   ;;  %s7245_s3 = inlined_call_operand.hbm [shape: f32[2,16,16,32], index: 3, kind: input, shape index: {}]   ;;  %s7246_s4 = inlined_call_operand.hbm [shape: f32[16,16,128], index: 4, kind: input, shape index: {}]   ;;  %s7247_s5 = inlined_call_operand.hbm [shape: f32[2,16,1024], index: 5, kind: output, shape index: {}]  }
   0x1   :  { %7311 = sst [smem:[#allocation115_spill]] %s7242_s0 }
   0x2   :  { %7312 = sst [smem:[#allocation116_spill]] %s7243_s1 }
   0x3   :  { %10 = vsyncpa [#allocation4], 0 }
   0x4   :  { %12 = vsyncpa [#allocation4 + $0x1], 0 }
   0x5   :  { %13 = vsyncpa [#allocation7], 0 }
   0x6   :  { %14 = vsyncpa [#allocation5], 0 }
   0x7   :  { %16 = vsyncpa [#allocation5 + $0x1], 0  ;;  %s4905_s18 = smov 0   ;;  %s4907_s19 = smov 0  }
   0x8   :  { %s4909_s20 = smov 0   ;;  %s4911_s21 = smov 0  }
   0x9   :  { %s4913_s22 = smov 0   ;;  %s4915_s23 = smov 0  }
   0xa LB: > { %7313 = sst [smem:[#allocation16_spill]] %s4848_s20  ;;  %s4936_s24 = sadd.s32 4294967295, %s4860_s23   ;;  %s4860_s23 = sphi %s4915_s23, %s22_s23   ;;  %s4856_s22 = sphi %s4913_s22, %s7573_s22   ;;  %s4852_s21 = sphi %s4911_s21, %s7572_s21   ;;  %s4848_s20 = sphi %s4909_s20, %s7568_s20   ;;  %s4844_s19 = sphi %s4907_s19, %s7571_s19   ;;  %s4840_s18 = sphi %s4905_s18, %s7570_s18  }
   0xb   : > { %s3764_s25 = sadd.s32 4294967294, %s4860_s23   ;;  %p54_p0 = scmp.ne.s32.totalorder %s4844_s19, %s4840_s18 }
   0xc   : > { %p7248_p1 = scmp.eq.s32.totalorder %s4936_s24, 0  ;;  %p177_p3 = scmp.eq.s32.totalorder %s3764_s25, 1 }
   0xd   : > { %p3765_p5 = scmp.ge.s32.totalorder %s4860_s23, 1  ;;  %p184_p7 = scmp.lt.s32.totalorder %s4860_s23, 3 }
   0xe   : > { %p4945_p4 = por %p7248_p1, %p54_p0  ;;  %p4950_p6 = por %p177_p3, %p54_p0 }
   0xf   : > { %p4955_p8 = pnand %p3765_p5, %p184_p7  ;;  %s4862_s29 = smov [#allocation6]  }
  0x10   : > { %s7315_s27 = scalar_select %p4950_p6, 1, 0 }
  0x11   : > { %s196_s30 = sshll.u32 %s4862_s29, 4  ;;  %p4315_p9 = pneg %p4955_p8  ;;  %s197_s30 = int_to_ptr.vmem [resolvable:$true] %s196_s30 }
  0x12   : > { %s34_s7 = sadd.s32 1, %s4856_s22  ;;  %s4671_s8 = scalar_lea.vmem %s197_s30, 6144 }
  0x13   : > { %p4964_p11 = pnand %p4315_p9, %p7248_p1  ;;  %p4672_p13 = scmp.ne.s32.totalorder %s197_s30, %s4671_s8 }
  0x14   : > { %p4679_p5 = scmp.lt.s32.totalorder %s197_s30, %s197_s30  ;;  %p4680_p7 = scmp.lt.s32.totalorder %s4671_s8, %s4671_s8 }
  0x15   : > { %p7255_p12 = pneg %p4964_p11 }
  0x16   : > { %p4681_p2 = por %p4680_p7, %p4679_p5 }
  0x17   : > { %p4674_p0 = pnand %p4672_p13, %p7255_p12 }
  0x19   : > { %p4675_p3 = pneg %p4674_p0 }
  0x1b   : > { %p4682_p10 = pnand %p4681_p2, %p4675_p3 }
  0x1d   : > { %4685 = shalt.err (!%p4682_p10)
}
  0x1e   : > { %s7249_s9 = smov 128   ;;  %s7251_s10 = smov 8  }
  0x1f   : > { %s7318_s1 = sld [smem:[#allocation116_spill]]  ;;  %p36_p2 = scmp.ge.s32.totalorder %s34_s7, 2 }
  0x20   : > { %s41_s13 = sadd.s32 1, %s4848_s20  ;;  %p48_p9 = scmp.ne.s32.totalorder %s4848_s20, %s4844_s19 }
  0x21   : > { %p49_p10 = scmp.eq.s32.totalorder %s4860_s23, 0  ;;  %s7575_s7 = smov (%p36_p2, %s34_s7), 0 }
  0x22   : > { %7319 = sst [smem:[#allocation17_spill]] %s7575_s7  ;;  %p7320_p0 = scmp.eq.s32.totalorder %s4936_s24, 1 }
  0x23   : > { %p50_p13 = por %p49_p10, %p48_p9  ;;  %s38_s15 = ssub.s32 %s4856_s22, %s7575_s7 }
  0x24   : > { %p4990_p3 = por %p7320_p0, %p48_p9  ;;  %p4335_p5 = scmp.lt.s32.totalorder %s4860_s23, 2 }
  0x25   : > { %4318 = dma.hbm_to_vmem [thread:$0]  (!%p4964_p11), %s7318_s1, 6144, %s197_s30, [#allocation7], %s7249_s9, %s7249_s9, %s7251_s10  }
  0x26   : > { %p39_p7 = scmp.eq.s32.totalorder %s38_s15, 0  ;;  %s226_s16 = sand.u32 1, %s4860_s23  }
  0x27   : > { %s228_s17 = sand.u32 1, %s4848_s20   ;;  %p5002_p1 = pnand %p4335_p5, %p50_p13 }
  0x28   : > { %s5000_s25 = scalar_select %p39_p7, %s4848_s20, %s41_s13  }
  0x29   : > { %s4298_s29 = smul.u32 288, %s228_s17  ;;  %s3770_s11 = sshll.u32 %s228_s17, 8 }
  0x2a   : > { %7322 = sst [smem:[#allocation18_spill]] %s5000_s25  ;;  %s4299_s8 = smul.u32 4608, %s4856_s22 }
  0x2b   : > { %s7324_s0 = sld [smem:[#allocation115_spill]]  ;;  %s230_s1 = scalar_lea.vmem [#allocation3], %s4298_s29 }
  0x2c   : > { %s237_s7 = sshll.u32 %s230_s1, 4  ;;  %s5010_s15 = scalar_lea.sflag [#allocation4], %s226_s16  ;;  %s238_s7 = int_to_ptr.vmem [resolvable:$true] %s237_s7 }
  0x2d   : > { %p7256_p2 = pneg %p5002_p1  ;;  %s4699_s13 = scalar_lea.vmem %s238_s7, 4608 }
  0x2e   : > { %p4700_p9 = scmp.ne.s32.totalorder %s238_s7, %s4699_s13  ;;  %s4865_s25 = smov [#allocation3]  }
  0x2f   : > { %s4704_s20 = sshll.u32 %s4865_s25, 4  ;;  %s4705_s20 = int_to_ptr.vmem [resolvable:$false] %s4704_s20 }
  0x30   : > { %p4702_p10 = pnand %p4700_p9, %p7256_p2  ;;  %s4706_s17 = scalar_lea.vmem %s4705_s20, 9216 }
  0x31   : > { %s236_s10 = scalar_lea.hbm %s7324_s0, %s4299_s8  ;;  %p4707_p0 = scmp.lt.s32.totalorder %s238_s7, %s4705_s20 }
  0x32   : > { %p4703_p13 = pneg %p4702_p10  ;;  %p4708_p5 = scmp.lt.s32.totalorder %s4706_s17, %s4699_s13 }
  0x34   : > { %p4709_p7 = por %p4708_p5, %p4707_p0 }
  0x36   : > { %p4710_p12 = pnand %p4709_p7, %p4703_p13 }
  0x38   : > { %4713 = shalt.err (!%p4710_p12)
}
  0x39   : > { %s7325_s1 = smov 8   ;;  %s7326_s9 = smov 128  }
  0x3a   : > { %4325 = dma.hbm_to_vmem [thread:$0]  (!%p5002_p1), %s236_s10, 4608, %s238_s7, %s5010_s15, %s7326_s9, %s7326_s9, %s7325_s1  }
  0x3b   : > { %s3880_s16 = sshll.u32 %s4856_s22, 12  ;;  %s4866_s29 = smov [#allocation9]  }
  0x3c   : > { %s212_s8 = sshll.u32 %s4866_s29, 4  ;;  %s5027_s20 = scalar_lea.hbm %s7245_s3, %s3880_s16  ;;  %s213_s8 = int_to_ptr.vmem [resolvable:$true] %s212_s8 }
  0x3d   : > { %s251_s13 = scalar_lea.vmem [#allocation8], %s3770_s11  ;;  %s4725_s0 = scalar_lea.vmem %s213_s8, 4096 }
  0x3e   : > { %s261_s17 = sshll.u32 %s251_s13, 4  ;;  %p4726_p12 = scmp.ne.s32.totalorder %s213_s8, %s4725_s0  ;;  %s262_s17 = int_to_ptr.vmem [resolvable:$true] %s261_s17 }
  0x3f   : > { %p7327_p9 = pneg %p4964_p11  ;;  %p4733_p0 = scmp.lt.s32.totalorder %s213_s8, %s213_s8 }
  0x40   : > { %p4734_p5 = scmp.lt.s32.totalorder %s4725_s0, %s4725_s0 }
  0x41   : > { %p4728_p10 = pnand %p4726_p12, %p7327_p9 }
  0x42   : > { %p4735_p7 = por %p4734_p5, %p4733_p0 }
  0x43   : > { %p4729_p13 = pneg %p4728_p10 }
  0x45   : > { %p4736_p2 = pnand %p4735_p7, %p4729_p13 }
  0x47   : > { %4739 = shalt.err (!%p4736_p2)
}
  0x48   : > { %4321 = dma.hbm_to_vmem [thread:$0]  (!%p4964_p11), %s7246_s4, 4096, %s213_s8, [#allocation7], %s7326_s9, %s7326_s9, %s7325_s1  }
  0x49   : > { %s4753_s11 = scalar_lea.vmem %s262_s17, 4096  ;;  %p7328_p12 = pneg %p5002_p1 }
  0x4a   : > { %p4754_p6 = scmp.ne.s32.totalorder %s262_s17, %s4753_s11  ;;  %s4867_s0 = smov [#allocation8]  }
  0x4b   : > { %s4758_s16 = sshll.u32 %s4867_s0, 4  ;;  %s4759_s16 = int_to_ptr.vmem [resolvable:$false] %s4758_s16 }
  0x4c   : > { %p4756_p9 = pnand %p4754_p6, %p7328_p12  ;;  %s4760_s29 = scalar_lea.vmem %s4759_s16, 8192 }
  0x4d   : > { %p4761_p2 = scmp.lt.s32.totalorder %s262_s17, %s4759_s16  ;;  %p4762_p13 = scmp.lt.s32.totalorder %s4760_s29, %s4753_s11 }
  0x4e   : > { %p4757_p10 = pneg %p4756_p9 }
  0x4f   : > { %p4763_p0 = por %p4762_p13, %p4761_p2 }
  0x51   : > { %p4764_p5 = pnand %p4763_p0, %p4757_p10 }
  0x53   : > { %4767 = shalt.err (!%p4764_p5)
}
  0x54   : > { %4328 = dma.hbm_to_vmem [thread:$0]  (!%p5002_p1), %s5027_s20, 4096, %s262_s17, %s5010_s15, %s7326_s9, %s7326_s9, %s7325_s1  }
  0x55   : > { %273 = sbr.rel (%p4955_p8) target bundleno = 1173 (0x495), region = 40 }
  0x5a   : > { %s275_s6 = sand.u32 1, %s4936_s24   ;;  %s5054_s8 = sand.u32 1, %s4844_s19  }
  0x5b   : > { %s4300_s25 = smul.u32 288, %s5054_s8  ;;  %s276_s12 = scalar_lea.sflag [#allocation4], %s275_s6 }
  0x5d   : > { %s5057_s13 = scalar_lea.vmem [#allocation3], %s4300_s25 }
  0x5e   : > { %4819 = dma.done.wait (%p4945_p4), %s276_s12, 4608  }
  0x5f   : > { %4821 = vsyncadd (%p4945_p4), %s276_s12, 4294962688  ;;  %p7329_p1 = scmp.eq.s32.totalorder %s4936_s24, 0 }
  0x61   : > { %4823 = dma.done.wait (%p7329_p1), [#allocation7], 6144   ;;  %p7330_p6 = pmov %p7329_p1 }
  0x62   : > { %s3775_s28 = sshll.u32 %s5054_s8, 8 }
  0x63   : > { %4825 = vsyncadd (%p7330_p6), [#allocation7], 4294961152  ;;  %s5068_s30 = scalar_lea.vmem [#allocation8], %s3775_s28 }
  0x64   : > { %4827 = dma.done.wait (%p4945_p4), %s276_s12, 4096  }
  0x65   : > { %4829 = vsyncadd (%p4945_p4), %s276_s12, 4294963200  ;;  %p7331_p8 = pmov %p7329_p1 }
  0x66   : > { %p7332_p11 = pmov %p7329_p1 }
  0x67   : > { %4831 = dma.done.wait (%p7331_p8), [#allocation7], 4096  }
  0x68   : > { %4833 = vsyncadd (%p7332_p11), [#allocation7], 4294963200  ;;  %v5079_v0 = vld [vmem:[%s5068_s30 + $0x10] sm:$0xff]  ;;  %v5082_v1 = vld [vmem:[%s5068_s30] sm:$0xff]  ;;  %s4868_s15 = smov 32   ;;  %s4869_s24 = smov 64  }
  0x69   : > { %v380_v2 = vld [vmem:[#allocation6 + $0x78] sm:$0xff]  ;;  %1523 = vrot.lane.b32.xlu1 %v5079_v0, %s4868_s15  ;;  %1519 = vrot.lane.b32.xlu0 %v5082_v1, %s4868_s15  ;;  %v379_v3 = vld [vmem:[#allocation6 + $0x70] sm:$0xff]  ;;  %v5092_v5 = vld [vmem:[%s5068_s30 + $0x8] sm:$0xff]  ;;  %s4870_s26 = smov 96   ;;  %vm1807_vm0 = vcmask 261120   ;;  %vm1840_vm1 = vcmask 523264  }
  0x6a   : > { %4266 = vmatprep.subr.mxu1 %v380_v2  ;;  %4026 = vmatprep.subr.mxu0 %v380_v2  ;;  %v5089_v4 = vld [vmem:[%s5068_s30 + $0x18] sm:$0xff]  ;;  %v378_v6 = vld [vmem:[#allocation6 + $0x68] sm:$0xff]  ;;  %v377_v7 = vld [vmem:[#allocation6 + $0x60] sm:$0xff]  ;;  %vm1873_vm2 = vcmask 785408   ;;  %s3777_s7 = sshll.u32 %s5054_s8, 7  ;;  %s3881_s11 = sshll.u32 %s4852_s21, 11 }
  0x6b   : > { %4282 = vmatpush3.msra.mxu1 %v380_v2  ;;  %4027 = vmatpush3.msra.mxu0 %v380_v2  ;;  %v5099_v8 = vld [vmem:[%s5068_s30 + $0x28] sm:$0xff]  ;;  %v5102_v9 = vld [vmem:[%s5068_s30 + $0x20] sm:$0xff]  ;;  %v376_v10 = vld [vmem:[#allocation6 + $0x58] sm:$0xff]  ;;  %s7129_s10 = scalar_lea.vmem [#allocation10], %s3777_s7  ;;  %s7186_s6 = scalar_lea.hbm %s7247_s5, %s3881_s11 }
  0x6c   : > { %4267 = vmatprep.subr.mxu1 %v379_v3  ;;  %4028 = vmatprep.subr.mxu0 %v379_v3  ;;  %v375_v11 = vld [vmem:[#allocation6 + $0x50] sm:$0xff]  ;;  %v5109_v12 = vld [vmem:[%s5068_s30 + $0x38] sm:$0xff]  ;;  %v374_v14 = vld [vmem:[#allocation6 + $0x48] sm:$0xff]  ;;  %s3625_s0 = sshll.u32 %s7129_s10, 4  ;;  %s3609_s21 = scalar_lea.sflag [#allocation5], %s5054_s8  ;;  %s7188_s0 = int_to_ptr.vmem [resolvable:$true] %s3625_s0 }
  0x6d   : > { %4283 = vmatpush3.msra.mxu1 %v379_v3  ;;  %1525 = vrot.lane.b32.xlu1 %v5089_v4, %s4868_s15  ;;  %v5112_v13 = vld [vmem:[%s5068_s30 + $0x30] sm:$0xff]  ;;  %v373_v15 = vld [vmem:[#allocation6 + $0x40] sm:$0xff]  ;;  %v5119_v16 = vld [vmem:[%s5068_s30 + $0x48] sm:$0xff]  ;;  %s4768_s25 = scalar_lea.vmem %s7188_s0, 2048  ;;  %s4873_s12 = smov [#allocation10]  }
  0x6e   : > { %1521 = vrot.lane.b32.xlu0 %v5092_v5, %s4868_s15  ;;  %4029 = vmatpush3.msra.mxu0 %v379_v3  ;;  %v5122_v17 = vld [vmem:[%s5068_s30 + $0x40] sm:$0xff]  ;;  %v372_v18 = vld [vmem:[#allocation6 + $0x38] sm:$0xff]  ;;  %v371_v19 = vld [vmem:[#allocation6 + $0x30] sm:$0xff]  ;;  %p4769_p4 = scmp.ne.s32.totalorder %s7188_s0, %s4768_s25 }
  0x6f   : > { %4268 = vmatprep.subr.mxu1 %v378_v6  ;;  %4030 = vmatprep.subr.mxu0 %v378_v6  ;;  %v5129_v20 = vld [vmem:[%s5068_s30 + $0x58] sm:$0xff]  ;;  %v5132_v21 = vld [vmem:[%s5068_s30 + $0x50] sm:$0xff]  ;;  %v370_v22 = vld [vmem:[#allocation6 + $0x28] sm:$0xff] }
  0x70   : > { %4284 = vmatpush3.msra.mxu1 %v378_v6  ;;  %4031 = vmatpush3.msra.mxu0 %v378_v6  ;;  %v369_v23 = vld [vmem:[#allocation6 + $0x20] sm:$0xff]  ;;  %v5139_v24 = vld [vmem:[%s5068_s30 + $0x68] sm:$0xff]  ;;  %v368_v26 = vld [vmem:[#allocation6 + $0x18] sm:$0xff]  ;;  %p4770_p7 = pnand %p4769_p4, %p4990_p3 }
  0x71   : > { %4269 = vmatprep.subr.mxu1 %v377_v7  ;;  %4032 = vmatprep.subr.mxu0 %v377_v7  ;;  %v5142_v25 = vld [vmem:[%s5068_s30 + $0x60] sm:$0xff]  ;;  %v367_v27 = vld [vmem:[#allocation6 + $0x10] sm:$0xff]  ;;  %v5149_v28 = vld [vmem:[%s5068_s30 + $0x78] sm:$0xff] }
  0x72   : > { %4285 = vmatpush3.msra.mxu1 %v377_v7  ;;  %1529 = vrot.lane.b32.xlu1 %v5099_v8, %s4868_s15  ;;  %v5152_v29 = vld [vmem:[%s5068_s30 + $0x70] sm:$0xff]  ;;  %v366_v30 = vld [vmem:[#allocation6 + $0x8] sm:$0xff]  ;;  %v365_v31 = vld [vmem:[#allocation6] sm:$0xff]  ;;  %p4771_p12 = pneg %p4770_p7 }
  0x73   : > { %1527 = vrot.lane.b32.xlu0 %v5102_v9, %s4868_s15  ;;  %4033 = vmatpush3.msra.mxu0 %v377_v7  ;;  %v5159_v32 = vld [vmem:[%s5057_s13 + $0x80] sm:$0xff]  ;;  %v5162_v33 = vld [vmem:[%s5068_s30 + $0x88] sm:$0xff]  ;;  %v689_v37 = vld [vmem:[#allocation6 + $0xf8] sm:$0xff] }
  0x74   : > { %4270 = vmatprep.subr.mxu1 %v376_v10  ;;  %4034 = vmatprep.subr.mxu0 %v376_v10  ;;  %v5165_v34 = vld [vmem:[%s5068_s30 + $0x80] sm:$0xff]  ;;  %v5170_v36 = vld [vmem:[%s5057_s13 + $0x88] sm:$0xff]  ;;  %v1062_v39 = vld [vmem:[#allocation6 + $0x178] sm:$0xff] }
  0x75   : > { %4286 = vmatpush3.msra.mxu1 %v376_v10  ;;  %4035 = vmatpush3.msra.mxu0 %v376_v10  ;;  %v333_v35 = vld [vmem:[%s5057_s13] sm:$0xff]  ;;  %v334_v38 = vld [vmem:[%s5057_s13 + $0x8] sm:$0xff]  ;;  %v688_v40 = vld [vmem:[#allocation6 + $0xf0] sm:$0xff] }
  0x76   : > { %4271 = vmatprep.subr.mxu1 %v375_v11  ;;  %4036 = vmatprep.subr.mxu0 %v375_v11  ;;  %v5179_v41 = vld [vmem:[%s5057_s13 + $0x90] sm:$0xff]  ;;  %v5182_v43 = vld [vmem:[%s5068_s30 + $0x98] sm:$0xff]  ;;  %v687_v47 = vld [vmem:[#allocation6 + $0xe8] sm:$0xff] }
  0x77   : > { %4287 = vmatpush3.msra.mxu1 %v375_v11  ;;  %1533 = vrot.lane.b32.xlu1 %v5109_v12, %s4868_s15  ;;  %v1061_v42 = vld [vmem:[#allocation6 + $0x170] sm:$0xff]  ;;  %v5192_v46 = vld [vmem:[%s5057_s13 + $0x98] sm:$0xff]  ;;  %v1060_v49 = vld [vmem:[#allocation6 + $0x168] sm:$0xff] }
  0x78   : > { %1531 = vrot.lane.b32.xlu0 %v5112_v13, %s4868_s15  ;;  %4037 = vmatpush3.msra.mxu0 %v375_v11  ;;  %v5185_v44 = vld [vmem:[%s5068_s30 + $0x90] sm:$0xff]  ;;  %v5199_v48 = vld [vmem:[%s5057_s13 + $0x18] sm:$0xff]  ;;  %v686_v50 = vld [vmem:[#allocation6 + $0xe0] sm:$0xff] }
  0x79   : > { %4272 = vmatprep.subr.mxu1 %v374_v14  ;;  %4038 = vmatprep.subr.mxu0 %v374_v14  ;;  %v5189_v45 = vld [vmem:[%s5057_s13 + $0x10] sm:$0xff]  ;;  %v5204_v51 = vld [vmem:[%s5057_s13 + $0xa0] sm:$0xff]  ;;  %v5208_v53 = vld [vmem:[%s5068_s30 + $0xa8] sm:$0xff] }
  0x7a   : > { %4288 = vmatpush3.msra.mxu1 %v374_v14  ;;  %4039 = vmatpush3.msra.mxu0 %v374_v14  ;;  %v1059_v52 = vld [vmem:[#allocation6 + $0x160] sm:$0xff]  ;;  %v5218_v56 = vld [vmem:[%s5057_s13 + $0xa8] sm:$0xff]  ;;  %v685_v57 = vld [vmem:[#allocation6 + $0xd8] sm:$0xff] }
  0x7b   : > { %4273 = vmatprep.subr.mxu1 %v373_v15  ;;  %4040 = vmatprep.subr.mxu0 %v373_v15  ;;  %v5211_v54 = vld [vmem:[%s5068_s30 + $0xa0] sm:$0xff]  ;;  %v5225_v58 = vld [vmem:[%s5057_s13 + $0x28] sm:$0xff]  ;;  %v1058_v59 = vld [vmem:[#allocation6 + $0x158] sm:$0xff] }
  0x7c   : > { %4289 = vmatpush3.msra.mxu1 %v373_v15  ;;  %1537 = vrot.lane.b32.xlu1 %v5119_v16, %s4868_s15  ;;  %v5215_v55 = vld [vmem:[%s5057_s13 + $0x20] sm:$0xff]  ;;  %v684_v60 = vld [vmem:[#allocation6 + $0xd0] sm:$0xff]  ;;  %v5234_v63 = vld [vmem:[%s5068_s30 + $0xb8] sm:$0xff] }
  0x7d   : > { %1535 = vrot.lane.b32.xlu0 %v5122_v17, %s4868_s15  ;;  %4041 = vmatpush3.msra.mxu0 %v373_v15  ;;  %v5230_v61 = vld [vmem:[%s5057_s13 + $0xb0] sm:$0xff]  ;;  %v5244_v6 = vld [vmem:[%s5057_s13 + $0xb8] sm:$0xff]  ;;  %v683_v7 = vld [vmem:[#allocation6 + $0xc8] sm:$0xff] }
  0x7e   : > { %4274 = vmatprep.subr.mxu1 %v372_v18  ;;  %4042 = vmatprep.subr.mxu0 %v372_v18  ;;  %v1057_v62 = vld [vmem:[#allocation6 + $0x150] sm:$0xff]  ;;  %v5251_v10 = vld [vmem:[%s5057_s13 + $0x38] sm:$0xff]  ;;  %v1056_v11 = vld [vmem:[#allocation6 + $0x148] sm:$0xff] }
  0x7f   : > { %4290 = vmatpush3.msra.mxu1 %v372_v18  ;;  %4043 = vmatpush3.msra.mxu0 %v372_v18  ;;  %v5237_v2 = vld [vmem:[%s5068_s30 + $0xb0] sm:$0xff]  ;;  %v682_v14 = vld [vmem:[#allocation6 + $0xc0] sm:$0xff] }
  0x80   : > { %4275 = vmatprep.subr.mxu1 %v371_v19  ;;  %4044 = vmatprep.subr.mxu0 %v371_v19  ;;  %v5241_v3 = vld [vmem:[%s5057_s13 + $0x30] sm:$0xff]  ;;  %v5256_v15 = vld [vmem:[%s5057_s13 + $0xc0] sm:$0xff] }
  0x81   : > { %4291 = vmatpush3.msra.mxu1 %v371_v19  ;;  %1541 = vrot.lane.b32.xlu1 %v5129_v20, %s4868_s15  ;;  %v1055_v18 = vld [vmem:[#allocation6 + $0x140] sm:$0xff] }
  0x82   : > { %1539 = vrot.lane.b32.xlu0 %v5132_v21, %s4868_s15  ;;  %4045 = vmatpush3.msra.mxu0 %v371_v19  ;;  %v5260_v19 = vld [vmem:[%s5068_s30 + $0xc8] sm:$0xff] }
  0x83   : > { %4276 = vmatprep.subr.mxu1 %v370_v22  ;;  %4046 = vmatprep.subr.mxu0 %v370_v22 }
  0x84   : > { %4292 = vmatpush3.msra.mxu1 %v370_v22  ;;  %4047 = vmatpush3.msra.mxu0 %v370_v22  ;;  %v5263_v22 = vld [vmem:[%s5068_s30 + $0xc0] sm:$0xff] }
  0x85   : > { %4277 = vmatprep.subr.mxu1 %v369_v23  ;;  %4048 = vmatprep.subr.mxu0 %v369_v23 }
  0x86   : > { %4293 = vmatpush3.msra.mxu1 %v369_v23  ;;  %1545 = vrot.lane.b32.xlu1 %v5139_v24, %s4868_s15 }
  0x87   : > { %1543 = vrot.lane.b32.xlu0 %v5142_v25, %s4868_s15  ;;  %4049 = vmatpush3.msra.mxu0 %v369_v23  ;;  %v5267_v23 = vld [vmem:[%s5057_s13 + $0x40] sm:$0xff] }
  0x88   : > { %4278 = vmatprep.subr.mxu1 %v368_v26  ;;  %4050 = vmatprep.subr.mxu0 %v368_v26 }
  0x89   : > { %4294 = vmatpush3.msra.mxu1 %v368_v26  ;;  %4051 = vmatpush3.msra.mxu0 %v368_v26  ;;  %v5270_v26 = vld [vmem:[%s5057_s13 + $0xc8] sm:$0xff] }
  0x8a   : > { %4279 = vmatprep.subr.mxu1 %v367_v27  ;;  %4052 = vmatprep.subr.mxu0 %v367_v27 }
  0x8b   : > { %4295 = vmatpush3.msra.mxu1 %v367_v27  ;;  %1549 = vrot.lane.b32.xlu1 %v5149_v28, %s4868_s15 }
  0x8c   : > { %1547 = vrot.lane.b32.xlu0 %v5152_v29, %s4868_s15  ;;  %4053 = vmatpush3.msra.mxu0 %v367_v27  ;;  %v681_v27 = vld [vmem:[#allocation6 + $0xb8] sm:$0xff] }
  0x8d   : > { %4280 = vmatprep.subr.mxu1 %v366_v30  ;;  %4054 = vmatprep.subr.mxu0 %v366_v30 }
  0x8e   : > { %4296 = vmatpush3.msra.mxu1 %v366_v30  ;;  %4055 = vmatpush3.msra.mxu0 %v366_v30  ;;  %v5277_v30 = vld [vmem:[%s5057_s13 + $0x48] sm:$0xff] }
  0x8f   : > { %4281 = vmatprep.subr.mxu1 %v365_v31  ;;  %4056 = vmatprep.subr.mxu0 %v365_v31 }
  0x90   : > { %4297 = vmatpush3.msra.mxu1 %v365_v31  ;;  %4082 = vmatprep.mubr.f32.mxu1 %v5159_v32 }
  0x91   : > { %1553 = vrot.lane.b32.xlu1 %v5162_v33, %s4868_s15  ;;  %1551 = vrot.lane.b32.xlu0 %v5165_v34, %s4868_s15 }
  0x92   : > { %4057 = vmatpush3.msra.mxu0 %v365_v31  ;;  %4058 = vmatprep.mubr.f32.mxu0 %v333_v35  ;;  %v1054_v31 = vld [vmem:[#allocation6 + $0x138] sm:$0xff]  ;;  %v680_v35 = vld [vmem:[#allocation6 + $0xb0] sm:$0xff] }
  0x93   : > { %4083 = vmatmul.mubr.f32.vlgmr.msra.gmra.mxu1 %v5170_v36  ;;  %4106 = vmatprep.subr.mxu1 %v689_v37 }
  0x94   : > { %4059 = vmatmul.mubr.f32.vlgmr.msra.gmra.mxu0 %v334_v38  ;;  %4107 = vmatpush3.msra.mxu1 %v689_v37  ;;  %v5282_v37 = vld [vmem:[%s5057_s13 + $0xd0] sm:$0xff] }
  0x95   : > { %4186 = vmatprep.subr.mxu0 %v1062_v39  ;;  %4108 = vmatprep.subr.mxu1 %v688_v40  ;;  %v1053_v38 = vld [vmem:[#allocation6 + $0x130] sm:$0xff] }
  0x96   : > { %4187 = vmatpush3.msra.mxu0 %v1062_v39  ;;  %4085 = vmatprep.mubr.f32.mxu1 %v5179_v41  ;;  %v5286_v39 = vld [vmem:[%s5068_s30 + $0xd8] sm:$0xff] }
  0x97   : > { %4109 = vmatpush3.msra.mxu1 %v688_v40  ;;  %4188 = vmatprep.subr.mxu0 %v1061_v42  ;;  %v5289_v40 = vld [vmem:[%s5068_s30 + $0xd0] sm:$0xff] }
  0x98   : > { %1557 = vrot.lane.b32.xlu1 %v5182_v43, %s4868_s15  ;;  %1555 = vrot.lane.b32.xlu0 %v5185_v44, %s4868_s15  ;;  %7333 = vst [vmem:[#allocation19_spill] sm:$0xff] %v5289_v40 }
  0x99   : > { %4061 = vmatprep.mubr.f32.mxu0 %v5189_v45  ;;  %4086 = vmatmul.mubr.f32.gmra.mxu1 %v5192_v46 }
  0x9a   : > { %4110 = vmatprep.subr.mxu1 %v687_v47  ;;  %4189 = vmatpush3.msra.mxu0 %v1061_v42  ;;  %v5293_v42 = vld [vmem:[%s5057_s13 + $0x50] sm:$0xff] }
  0x9b   : > { %4062 = vmatmul.mubr.f32.gmra.mxu0 %v5199_v48  ;;  %4111 = vmatpush3.msra.mxu1 %v687_v47  ;;  %v5296_v47 = vld [vmem:[%s5057_s13 + $0xd8] sm:$0xff] }
  0x9c   : > { %4190 = vmatprep.subr.mxu0 %v1060_v49  ;;  %4112 = vmatprep.subr.mxu1 %v686_v50 }
  0x9d   : > { %4191 = vmatpush3.msra.mxu0 %v1060_v49  ;;  %4088 = vmatprep.mubr.f32.mxu1 %v5204_v51  ;;  %v679_v49 = vld [vmem:[#allocation6 + $0xa8] sm:$0xff] }
  0x9e   : > { %4113 = vmatpush3.msra.mxu1 %v686_v50  ;;  %4192 = vmatprep.subr.mxu0 %v1059_v52  ;;  %v5303_v50 = vld [vmem:[%s5057_s13 + $0x58] sm:$0xff] }
  0x9f   : > { %1561 = vrot.lane.b32.xlu1 %v5208_v53, %s4868_s15  ;;  %1559 = vrot.lane.b32.xlu0 %v5211_v54, %s4868_s15 }
  0xa0   : > { %4064 = vmatprep.mubr.f32.mxu0 %v5215_v55  ;;  %4089 = vmatmul.mubr.f32.gmra.mxu1 %v5218_v56 }
  0xa1   : > { %4114 = vmatprep.subr.mxu1 %v685_v57  ;;  %4193 = vmatpush3.msra.mxu0 %v1059_v52  ;;  %v1052_v52 = vld [vmem:[#allocation6 + $0x128] sm:$0xff] }
  0xa2   : > { %4065 = vmatmul.mubr.f32.gmra.mxu0 %v5225_v58  ;;  %4115 = vmatpush3.msra.mxu1 %v685_v57  ;;  %v678_v57 = vld [vmem:[#allocation6 + $0xa0] sm:$0xff] }
  0xa3   : > { %4194 = vmatprep.subr.mxu0 %v1058_v59  ;;  %4116 = vmatprep.subr.mxu1 %v684_v60 }
  0xa4   : > { %4195 = vmatpush3.msra.mxu0 %v1058_v59  ;;  %4091 = vmatprep.mubr.f32.mxu1 %v5230_v61  ;;  %v5308_v59 = vld [vmem:[%s5057_s13 + $0xe0] sm:$0xff] }
  0xa5   : > { %4117 = vmatpush3.msra.mxu1 %v684_v60  ;;  %4196 = vmatprep.subr.mxu0 %v1057_v62  ;;  %v1051_v60 = vld [vmem:[#allocation6 + $0x120] sm:$0xff] }
  0xa6   : > { %1565 = vrot.lane.b32.xlu1 %v5234_v63, %s4868_s15  ;;  %1563 = vrot.lane.b32.xlu0 %v5237_v2, %s4868_s15 }
  0xa7   : > { %4067 = vmatprep.mubr.f32.mxu0 %v5241_v3  ;;  %4092 = vmatmul.mubr.f32.gmra.mxu1 %v5244_v6 }
  0xa8   : > { %4118 = vmatprep.subr.mxu1 %v683_v7  ;;  %4197 = vmatpush3.msra.mxu0 %v1057_v62  ;;  %v5312_v62 = vld [vmem:[%s5068_s30 + $0xe8] sm:$0xff] }
  0xa9   : > { %4068 = vmatmul.mubr.f32.gmra.mxu0 %v5251_v10  ;;  %4119 = vmatpush3.msra.mxu1 %v683_v7  ;;  %7334 = vst [vmem:[#allocation20_spill] sm:$0xff] %v5312_v62  ;;  %v5315_v7 = vld [vmem:[%s5068_s30 + $0xe0] sm:$0xff] }
  0xaa   : > { %4198 = vmatprep.subr.mxu0 %v1056_v11  ;;  %4120 = vmatprep.subr.mxu1 %v682_v14  ;;  %7335 = vst [vmem:[#allocation21_spill] sm:$0xff] %v5315_v7 }
  0xab   : > { %4199 = vmatpush3.msra.mxu0 %v1056_v11  ;;  %4094 = vmatprep.mubr.f32.mxu1 %v5256_v15  ;;  %v5319_v11 = vld [vmem:[%s5057_s13 + $0x60] sm:$0xff] }
  0xac   : > { %4121 = vmatpush3.msra.mxu1 %v682_v14  ;;  %4200 = vmatprep.subr.mxu0 %v1055_v18  ;;  %v5322_v14 = vld [vmem:[%s5057_s13 + $0xe8] sm:$0xff] }
  0xad   : > { %1569 = vrot.lane.b32.xlu1 %v5260_v19, %s4868_s15  ;;  %1567 = vrot.lane.b32.xlu0 %v5263_v22, %s4868_s15 }
  0xae   : > { %4070 = vmatprep.mubr.f32.mxu0 %v5267_v23  ;;  %4095 = vmatmul.mubr.f32.gmra.mxu1 %v5270_v26 }
  0xaf   : > { %4122 = vmatprep.subr.mxu1 %v681_v27  ;;  %4201 = vmatpush3.msra.mxu0 %v1055_v18  ;;  %v677_v18 = vld [vmem:[#allocation6 + $0x98] sm:$0xff] }
  0xb0   : > { %4071 = vmatmul.mubr.f32.gmra.mxu0 %v5277_v30  ;;  %4123 = vmatpush3.msra.mxu1 %v681_v27  ;;  %v5329_v27 = vld [vmem:[%s5057_s13 + $0x68] sm:$0xff] }
  0xb1   : > { %4202 = vmatprep.subr.mxu0 %v1054_v31  ;;  %4124 = vmatprep.subr.mxu1 %v680_v35 }
  0xb2   : > { %4203 = vmatpush3.msra.mxu0 %v1054_v31  ;;  %4097 = vmatprep.mubr.f32.mxu1 %v5282_v37  ;;  %v1050_v31 = vld [vmem:[#allocation6 + $0x118] sm:$0xff] }
  0xb3   : > { %4125 = vmatpush3.msra.mxu1 %v680_v35  ;;  %4204 = vmatprep.subr.mxu0 %v1053_v38  ;;  %v676_v35 = vld [vmem:[#allocation6 + $0x90] sm:$0xff] }
  0xb4   : > { %1573 = vrot.lane.b32.xlu1 %v5286_v39, %s4868_s15  ;;  %1571 = vrot.lane.b32.xlu0 %v5289_v40, %s4868_s15  ;;  %v1048_v40 = vld [vmem:[#allocation6 + $0x108] sm:$0xff] }
  0xb5   : > { %4073 = vmatprep.mubr.f32.mxu0 %v5293_v42  ;;  %4098 = vmatmul.mubr.f32.gmra.mxu1 %v5296_v47 }
  0xb6   : > { %4126 = vmatprep.subr.mxu1 %v679_v49  ;;  %4205 = vmatpush3.msra.mxu0 %v1053_v38  ;;  %v5334_v38 = vld [vmem:[%s5057_s13 + $0xf0] sm:$0xff] }
  0xb7   : > { %4074 = vmatmul.mubr.f32.gmra.mxu0 %v5303_v50  ;;  %4127 = vmatpush3.msra.mxu1 %v679_v49  ;;  %7336 = vst [vmem:[#allocation22_spill] sm:$0xff] %v5334_v38  ;;  %v1049_v49 = vld [vmem:[#allocation6 + $0x110] sm:$0xff] }
  0xb8   : > { %4206 = vmatprep.subr.mxu0 %v1052_v52  ;;  %4128 = vmatprep.subr.mxu1 %v678_v57 }
  0xb9   : > { %4207 = vmatpush3.msra.mxu0 %v1052_v52  ;;  %4100 = vmatprep.mubr.f32.mxu1 %v5308_v59  ;;  %v5338_v52 = vld [vmem:[%s5068_s30 + $0xf8] sm:$0xff] }
  0xba   : > { %4129 = vmatpush3.msra.mxu1 %v678_v57  ;;  %4208 = vmatprep.subr.mxu0 %v1051_v60  ;;  %7337 = vst [vmem:[#allocation23_spill] sm:$0xff] %v5338_v52  ;;  %v5341_v57 = vld [vmem:[%s5068_s30 + $0xf0] sm:$0xff] }
  0xbb   : > { %1577 = vrot.lane.b32.xlu1 %v5312_v62, %s4868_s15  ;;  %1575 = vrot.lane.b32.xlu0 %v5315_v7, %s4868_s15  ;;  %7338 = vst [vmem:[#allocation24_spill] sm:$0xff] %v5341_v57  ;;  %v347_v7 = vld [vmem:[%s5057_s13 + $0x70] sm:$0xff]  ;;  %v5346_v62 = vld [vmem:[%s5057_s13 + $0xf8] sm:$0xff] }
  0xbc   : > { %4076 = vmatprep.mubr.f32.mxu0 %v5319_v11  ;;  %4101 = vmatmul.mubr.f32.gmra.mxu1 %v5322_v14 }
  0xbd   : > { %4130 = vmatprep.subr.mxu1 %v677_v18  ;;  %4209 = vmatpush3.msra.mxu0 %v1051_v60  ;;  %v675_v60 = vld [vmem:[#allocation6 + $0x88] sm:$0xff] }
  0xbe   : > { %4077 = vmatmul.mubr.f32.gmra.mxu0 %v5329_v27  ;;  %4131 = vmatpush3.msra.mxu1 %v677_v18  ;;  %v348_v18 = vld [vmem:[%s5057_s13 + $0x78] sm:$0xff] }
  0xbf   : > { %4210 = vmatprep.subr.mxu0 %v1050_v31  ;;  %4132 = vmatprep.subr.mxu1 %v676_v35 }
  0xc0   : > { %4211 = vmatpush3.msra.mxu0 %v1050_v31  ;;  %4103 = vmatprep.mubr.f32.mxu1 %v5334_v38  ;;  %v674_v31 = vld [vmem:[#allocation6 + $0x80] sm:$0xff] }
  0xc1   : > { %4133 = vmatpush3.msra.mxu1 %v676_v35  ;;  %4212 = vmatprep.subr.mxu0 %v1049_v49  ;;  %v1047_v38 = vld [vmem:[#allocation6 + $0x100] sm:$0xff] }
  0xc2   : > { %1581 = vrot.lane.b32.xlu1 %v5338_v52, %s4868_s15  ;;  %1579 = vrot.lane.b32.xlu0 %v5341_v57, %s4868_s15 }
  0xc3   : > { %4079 = vmatprep.mubr.f32.mxu0 %v347_v7  ;;  %4104 = vmatmul.mubr.f32.gmra.mxu1 %v5346_v62 }
  0xc4   : > { %4134 = vmatprep.subr.mxu1 %v675_v60  ;;  %4213 = vmatpush3.msra.mxu0 %v1049_v49 }
  0xc5   : > { %4080 = vmatmul.mubr.f32.gmra.mxu0 %v348_v18  ;;  %4135 = vmatpush3.msra.mxu1 %v675_v60 }
  0xc6   : > { %4214 = vmatprep.subr.mxu0 %v1048_v40  ;;  %4136 = vmatprep.subr.mxu1 %v674_v31 }
  0xc7   : > { %4215 = vmatpush3.msra.mxu0 %v1048_v40  ;;  %4137 = vmatpush3.msra.mxu1 %v674_v31  ;;  %v3839_v40 = vld [vmem:[%s5057_s13 + $0x108] sm:$0xff] }
  0xc8   : > { %4138 = vmatprep.mubr.f32.mxu1 %v5189_v45  ;;  %4216 = vmatprep.subr.mxu0 %v1047_v38 }
  0xc9   : > { %1617 = vrot.lane.b32.xlu1 %v5092_v5, %s4869_s24  ;;  %1615 = vrot.lane.b32.xlu0 %v5082_v1, %s4869_s24 }
  0xca   : > { %4139 = vmatmul.mubr.f32.vlgmr.msra.gmra.mxu1 %v5199_v48  ;;  %4217 = vmatpush3.msra.mxu0 %v1047_v38 }
  0xcb   : > { %4218 = vmatprep.mubr.f32.mxu0 %v5215_v55  ;;  %4141 = vmatprep.mubr.f32.mxu1 %v5215_v55 }
  0xcc   : > { %4219 = vmatmul.mubr.f32.vlgmr.msra.gmra.mxu0 %v5225_v58 }
  0xcd   : > { %1621 = vrot.lane.b32.xlu1 %v5089_v4, %s4869_s24  ;;  %1619 = vrot.lane.b32.xlu0 %v5079_v0, %s4869_s24 }
  0xce   : > { %4142 = vmatmul.mubr.f32.gmra.mxu1 %v5225_v58  ;;  %4221 = vmatprep.mubr.f32.mxu0 %v5241_v3 }
  0xcf   : > { %4144 = vmatprep.mubr.f32.mxu1 %v5241_v3 }
  0xd0   : > { %4222 = vmatmul.mubr.f32.gmra.mxu0 %v5251_v10 }
  0xd1   : > { %1625 = vrot.lane.b32.xlu1 %v5099_v8, %s4869_s24  ;;  %1623 = vrot.lane.b32.xlu0 %v5102_v9, %s4869_s24 }
  0xd2   : > { %4145 = vmatmul.mubr.f32.gmra.mxu1 %v5251_v10  ;;  %4224 = vmatprep.mubr.f32.mxu0 %v5267_v23 }
  0xd3   : > { %4147 = vmatprep.mubr.f32.mxu1 %v5267_v23 }
  0xd4   : > { %4225 = vmatmul.mubr.f32.gmra.mxu0 %v5277_v30 }
  0xd5   : > { %1629 = vrot.lane.b32.xlu1 %v5109_v12, %s4869_s24  ;;  %1627 = vrot.lane.b32.xlu0 %v5112_v13, %s4869_s24 }
  0xd6   : > { %4148 = vmatmul.mubr.f32.gmra.mxu1 %v5277_v30  ;;  %4227 = vmatprep.mubr.f32.mxu0 %v5293_v42  ;;  %v7355_v30 = vld [vmem:[#allocation20_spill] sm:$0xff] }
  0xd7   : > { %4150 = vmatprep.mubr.f32.mxu1 %v5293_v42  ;;  %v3840_v42 = vld [vmem:[%s5057_s13 + $0x110] sm:$0xff] }
  0xd8   : > { %4228 = vmatmul.mubr.f32.gmra.mxu0 %v5303_v50 }
  0xd9   : > { %1633 = vrot.lane.b32.xlu1 %v5119_v16, %s4869_s24  ;;  %1631 = vrot.lane.b32.xlu0 %v5122_v17, %s4869_s24 }
  0xda   : > { %4151 = vmatmul.mubr.f32.gmra.mxu1 %v5303_v50  ;;  %4230 = vmatprep.mubr.f32.mxu0 %v5319_v11 }
  0xdb   : > { %4153 = vmatprep.mubr.f32.mxu1 %v5319_v11  ;;  %v5394_v45 = vpop.permute.xlu1 %1523  ;;  %v5396_v48 = vpop.permute.xlu0 %1519 }
  0xdc   : > { %7339 = vst [vmem:[#allocation25_spill] sm:$0xff] %v5394_v45  ;;  %7340 = vst [vmem:[#allocation26_spill] sm:$0xff] %v5396_v48  ;;  %4231 = vmatmul.mubr.f32.gmra.mxu0 %v5329_v27 }
  0xdd   : > { %1637 = vrot.lane.b32.xlu1 %v5129_v20, %s4869_s24  ;;  %1635 = vrot.lane.b32.xlu0 %v5132_v21, %s4869_s24 }
  0xde   : > { %4154 = vmatmul.mubr.f32.gmra.mxu1 %v5329_v27  ;;  %4233 = vmatprep.mubr.f32.mxu0 %v347_v7 }
  0xdf   : > { %4156 = vmatprep.mubr.f32.mxu1 %v347_v7  ;;  %v5408_v55 = vpop.permute.xlu1 %1525 }
  0xe0   : > { %4234 = vmatmul.mubr.f32.gmra.mxu0 %v348_v18  ;;  %7341 = vst [vmem:[#allocation27_spill] sm:$0xff] %v5408_v55  ;;  %v5410_v58 = vpop.permute.xlu0 %1521 }
  0xe1   : > { %1641 = vrot.lane.b32.xlu1 %v5139_v24, %s4869_s24  ;;  %1639 = vrot.lane.b32.xlu0 %v5142_v25, %s4869_s24  ;;  %7342 = vst [vmem:[#allocation28_spill] sm:$0xff] %v5410_v58 }
  0xe2   : > { %4157 = vmatmul.mubr.f32.gmra.mxu1 %v348_v18  ;;  %4236 = vmatprep.mubr.f32.mxu0 %v5159_v32 }
  0xe3   : > { %4159 = vmatprep.mubr.f32.mxu1 %v5159_v32 }
  0xe4   : > { %4237 = vmatmul.mubr.f32.gmra.mxu0 %v5170_v36  ;;  %v5422_v3 = vpop.permute.xlu1 %1529 }
  0xe5   : > { %1645 = vrot.lane.b32.xlu1 %v5149_v28, %s4869_s24  ;;  %1643 = vrot.lane.b32.xlu0 %v5152_v29, %s4869_s24  ;;  %7343 = vst [vmem:[#allocation29_spill] sm:$0xff] %v5422_v3  ;;  %v5424_v10 = vpop.permute.xlu0 %1527 }
  0xe6   : > { %4160 = vmatmul.mubr.f32.gmra.mxu1 %v5170_v36  ;;  %4239 = vmatprep.mubr.f32.mxu0 %v5179_v41  ;;  %7344 = vst [vmem:[#allocation30_spill] sm:$0xff] %v5424_v10 }
  0xe7   : > { %4162 = vmatprep.mubr.f32.mxu1 %v5179_v41 }
  0xe8   : > { %4240 = vmatmul.mubr.f32.gmra.mxu0 %v5192_v46 }
  0xe9   : > { %1649 = vrot.lane.b32.xlu1 %v5162_v33, %s4869_s24  ;;  %1647 = vrot.lane.b32.xlu0 %v5165_v34, %s4869_s24  ;;  %v5439_v32 = vpop.permute.xlu1 %1533 }
  0xea   : > { %4163 = vmatmul.mubr.f32.gmra.mxu1 %v5192_v46  ;;  %4242 = vmatprep.mubr.f32.mxu0 %v5204_v51  ;;  %7345 = vst [vmem:[#allocation31_spill] sm:$0xff] %v5439_v32  ;;  %v5441_v36 = vpop.permute.xlu0 %1531 }
  0xeb   : > { %4165 = vmatprep.mubr.f32.mxu1 %v5204_v51  ;;  %7346 = vst [vmem:[#allocation32_spill] sm:$0xff] %v5441_v36 }
  0xec   : > { %4243 = vmatmul.mubr.f32.gmra.mxu0 %v5218_v56 }
  0xed   : > { %1653 = vrot.lane.b32.xlu1 %v5182_v43, %s4869_s24  ;;  %1651 = vrot.lane.b32.xlu0 %v5185_v44, %s4869_s24 }
  0xee   : > { %4166 = vmatmul.mubr.f32.gmra.mxu1 %v5218_v56  ;;  %4245 = vmatprep.mubr.f32.mxu0 %v5230_v61  ;;  %v5454_v41 = vpop.permute.xlu1 %1537 }
  0xef   : > { %4168 = vmatprep.mubr.f32.mxu1 %v5230_v61  ;;  %7347 = vst [vmem:[#allocation33_spill] sm:$0xff] %v5454_v41  ;;  %v5456_v46 = vpop.permute.xlu0 %1535  ;;  %v7351_v61 = vld [vmem:[#allocation19_spill] sm:$0xff] }
  0xf0   : > { %4246 = vmatmul.mubr.f32.gmra.mxu0 %v5244_v6  ;;  %7348 = vst [vmem:[#allocation34_spill] sm:$0xff] %v5456_v46 }
  0xf1   : > { %1657 = vrot.lane.b32.xlu1 %v5208_v53, %s4869_s24  ;;  %1655 = vrot.lane.b32.xlu0 %v5211_v54, %s4869_s24 }
  0xf2   : > { %4169 = vmatmul.mubr.f32.gmra.mxu1 %v5244_v6  ;;  %4248 = vmatprep.mubr.f32.mxu0 %v5256_v15  ;;  %v7352_v6 = vld [vmem:[#allocation22_spill] sm:$0xff] }
  0xf3   : > { %4171 = vmatprep.mubr.f32.mxu1 %v5256_v15  ;;  %v5471_v51 = vpop.permute.xlu1 %1541  ;;  %v3838_v15 = vld [vmem:[%s5057_s13 + $0x100] sm:$0xff] }
  0xf4   : > { %4249 = vmatmul.mubr.f32.gmra.mxu0 %v5270_v26  ;;  %7349 = vst [vmem:[#allocation35_spill] sm:$0xff] %v5471_v51  ;;  %v5473_v56 = vpop.permute.xlu0 %1539 }
  0xf5   : > { %1661 = vrot.lane.b32.xlu1 %v5234_v63, %s4869_s24  ;;  %1659 = vrot.lane.b32.xlu0 %v5237_v2, %s4869_s24  ;;  %7350 = vst [vmem:[#allocation36_spill] sm:$0xff] %v5473_v56 }
  0xf6   : > { %4172 = vmatmul.mubr.f32.gmra.mxu1 %v5270_v26  ;;  %4251 = vmatprep.mubr.f32.mxu0 %v5282_v37 }
  0xf7   : > { %4174 = vmatprep.mubr.f32.mxu1 %v5282_v37  ;;  %v7356_v37 = vld [vmem:[#allocation21_spill] sm:$0xff] }
  0xf8   : > { %4252 = vmatmul.mubr.f32.gmra.mxu0 %v5296_v47  ;;  %v5487_v23 = vpop.permute.xlu1 %1545 }
  0xf9   : > { %1665 = vrot.lane.b32.xlu1 %v5260_v19, %s4869_s24  ;;  %1663 = vrot.lane.b32.xlu0 %v5263_v22, %s4869_s24  ;;  %7353 = vst [vmem:[#allocation19_spill] sm:$0xff] %v5487_v23  ;;  %v5489_v26 = vpop.permute.xlu0 %1543 }
  0xfa   : > { %4175 = vmatmul.mubr.f32.gmra.mxu1 %v5296_v47  ;;  %4254 = vmatprep.mubr.f32.mxu0 %v5308_v59  ;;  %7354 = vst [vmem:[#allocation22_spill] sm:$0xff] %v5489_v26  ;;  %v3841_v47 = vld [vmem:[%s5057_s13 + $0x118] sm:$0xff]  ;;  %s4772_s13 = sshll.u32 %s4873_s12, 4  ;;  %s4773_s13 = int_to_ptr.vmem [resolvable:$false] %s4772_s13 }
  0xfb   : > { %4177 = vmatprep.mubr.f32.mxu1 %v5308_v59  ;;  %s4774_s28 = scalar_lea.vmem %s4773_s13, 4096  ;;  %p4775_p9 = scmp.lt.s32.totalorder %s7188_s0, %s4773_s13 }
  0xfc   : > { %4255 = vmatmul.mubr.f32.gmra.mxu0 %v5322_v14  ;;  %p4776_p10 = scmp.lt.s32.totalorder %s4774_s28, %s4768_s25 }
  0xfd   : > { %1669 = vrot.lane.b32.xlu1 %v5286_v39, %s4869_s24  ;;  %1667 = vrot.lane.b32.xlu0 %v7351_v61, %s4869_s24  ;;  %v5504_v50 = vpop.permute.xlu1 %1549 }
  0xfe   : > { %4178 = vmatmul.mubr.f32.gmra.mxu1 %v5322_v14  ;;  %4257 = vmatprep.mubr.f32.mxu0 %v7352_v6  ;;  %7357 = vst [vmem:[#allocation20_spill] sm:$0xff] %v5504_v50  ;;  %v5506_v59 = vpop.permute.xlu0 %1547  ;;  %p4777_p2 = por %p4776_p10, %p4775_p9 }
  0xff   : > { %4180 = vmatprep.mubr.f32.mxu1 %v7352_v6  ;;  %7358 = vst [vmem:[#allocation37_spill] sm:$0xff] %v5506_v59 }
 0x100   : > { %4258 = vmatmul.mubr.f32.gmra.mxu0 %v5346_v62  ;;  %p4778_p13 = pnand %p4777_p2, %p4771_p12 }
 0x101   : > { %1673 = vrot.lane.b32.xlu1 %v7355_v30, %s4869_s24  ;;  %1671 = vrot.lane.b32.xlu0 %v7356_v37, %s4869_s24 }
 0x102   : > { %4181 = vmatmul.mubr.f32.gmra.mxu1 %v5346_v62  ;;  %4260 = vmatprep.mubr.f32.mxu0 %v3838_v15 }
 0x103   : > { %4183 = vmatprep.mubr.f32.mxu1 %v3838_v15  ;;  %v5512_v62 = vpop.permute.xlu1 %1553  ;;  %v5514_v7 = vpop.permute.xlu0 %1551 }
 0x104   : > { %4261 = vmatmul.mubr.f32.gmra.mxu0 %v3839_v40  ;;  %7359 = vst [vmem:[#allocation38_spill] sm:$0xff] %v5512_v62  ;;  %7360 = vst [vmem:[#allocation39_spill] sm:$0xff] %v5514_v7 }
 0x105   : > { %1677 = vrot.lane.b32.xlu1 %v5338_v52, %s4869_s24  ;;  %1675 = vrot.lane.b32.xlu0 %v5341_v57, %s4869_s24 }
 0x106   : > { %4184 = vmatmul.mubr.f32.gmra.mxu1 %v3839_v40  ;;  %4263 = vmatprep.mubr.f32.mxu0 %v3840_v42 }
 0x108   : > { %4264 = vmatmul.mubr.f32.gmra.mxu0 %v3841_v47 }
 0x109   : > { %1713 = vrot.lane.b32.xlu1 %v5092_v5, %s4870_s26  ;;  %1711 = vrot.lane.b32.xlu0 %v5082_v1, %s4870_s26 }
 0x10a   : > { %v5524_v5 = vpop.permute.xlu1 %1557  ;;  %v5526_v11 = vpop.permute.xlu0 %1555 }
 0x10b   : > { %7361 = vst [vmem:[#allocation40_spill] sm:$0xff] %v5524_v5  ;;  %7362 = vst [vmem:[#allocation41_spill] sm:$0xff] %v5526_v11 }
 0x10d   : > { %1717 = vrot.lane.b32.xlu1 %v5089_v4, %s4870_s26  ;;  %1715 = vrot.lane.b32.xlu0 %v5079_v0, %s4870_s26 }
 0x111   : > { %1721 = vrot.lane.b32.xlu1 %v5099_v8, %s4870_s26  ;;  %1719 = vrot.lane.b32.xlu0 %v5102_v9, %s4870_s26  ;;  %v5532_v1 = vpop.permute.xlu1 %1561  ;;  %v5534_v4 = vpop.permute.xlu0 %1559 }
 0x112   : > { %7363 = vst [vmem:[#allocation42_spill] sm:$0xff] %v5532_v1  ;;  %7364 = vst [vmem:[#allocation43_spill] sm:$0xff] %v5534_v4 }
 0x115   : > { %1725 = vrot.lane.b32.xlu1 %v5109_v12, %s4870_s26  ;;  %1723 = vrot.lane.b32.xlu0 %v5112_v13, %s4870_s26 }
 0x118   : > { %v5544_v0 = vpop.permute.xlu1 %1565  ;;  %v5546_v8 = vpop.permute.xlu0 %1563 }
 0x119   : > { %1729 = vrot.lane.b32.xlu1 %v5119_v16, %s4870_s26  ;;  %1727 = vrot.lane.b32.xlu0 %v5122_v17, %s4870_s26  ;;  %7365 = vst [vmem:[#allocation44_spill] sm:$0xff] %v5544_v0  ;;  %7366 = vst [vmem:[#allocation45_spill] sm:$0xff] %v5546_v8 }
 0x11d   : > { %1733 = vrot.lane.b32.xlu1 %v5129_v20, %s4870_s26  ;;  %1731 = vrot.lane.b32.xlu0 %v5132_v21, %s4870_s26 }
 0x11f   : > { %v5552_v9 = vpop.permute.xlu1 %1569  ;;  %v5554_v14 = vpop.permute.xlu0 %1567 }
 0x120   : > { %7367 = vst [vmem:[#allocation46_spill] sm:$0xff] %v5552_v9  ;;  %7368 = vst [vmem:[#allocation47_spill] sm:$0xff] %v5554_v14 }
 0x121   : > { %1737 = vrot.lane.b32.xlu1 %v5139_v24, %s4870_s26  ;;  %1735 = vrot.lane.b32.xlu0 %v5142_v25, %s4870_s26 }
 0x125   : > { %1741 = vrot.lane.b32.xlu1 %v5149_v28, %s4870_s26  ;;  %1739 = vrot.lane.b32.xlu0 %v5152_v29, %s4870_s26 }
 0x126   : > { %v5564_v27 = vpop.permute.xlu1 %1573  ;;  %v5566_v35 = vpop.permute.xlu0 %1571 }
 0x127   : > { %7369 = vst [vmem:[#allocation48_spill] sm:$0xff] %v5564_v27  ;;  %7370 = vst [vmem:[#allocation49_spill] sm:$0xff] %v5566_v35 }
 0x129   : > { %1745 = vrot.lane.b32.xlu1 %v5162_v33, %s4870_s26  ;;  %1743 = vrot.lane.b32.xlu0 %v5165_v34, %s4870_s26 }
 0x12d   : > { %1749 = vrot.lane.b32.xlu1 %v5182_v43, %s4870_s26  ;;  %1747 = vrot.lane.b32.xlu0 %v5185_v44, %s4870_s26  ;;  %v5572_v38 = vpop.permute.xlu1 %1577  ;;  %v5574_v49 = vpop.permute.xlu0 %1575 }
 0x12e   : > { %7371 = vst [vmem:[#allocation50_spill] sm:$0xff] %v5572_v38  ;;  %7372 = vst [vmem:[#allocation51_spill] sm:$0xff] %v5574_v49  ;;  %v4658_v49 = vld [vmem:[%s5068_s30 + $0x20] sm:$0xff] }
 0x131   : > { %1753 = vrot.lane.b32.xlu1 %v5208_v53, %s4870_s26  ;;  %1751 = vrot.lane.b32.xlu0 %v5211_v54, %s4870_s26 }
 0x134   : > { %v5584_v60 = vpop.permute.xlu1 %1581  ;;  %v5586_v18 = vpop.permute.xlu0 %1579 }
 0x135   : > { %1757 = vrot.lane.b32.xlu1 %v5234_v63, %s4870_s26  ;;  %1755 = vrot.lane.b32.xlu0 %v5237_v2, %s4870_s26  ;;  %7373 = vst [vmem:[#allocation52_spill] sm:$0xff] %v5584_v60  ;;  %7374 = vst [vmem:[#allocation53_spill] sm:$0xff] %v5586_v18 }
 0x139   : > { %1761 = vrot.lane.b32.xlu1 %v5260_v19, %s4870_s26  ;;  %1759 = vrot.lane.b32.xlu0 %v5263_v22, %s4870_s26 }
 0x13b   : > { %v5592_v31 = vpop.permute.xlu1 %1617  ;;  %v5594_v6 = vpop.permute.xlu0 %1615 }
 0x13c   : > { %7375 = vst [vmem:[#allocation54_spill] sm:$0xff] %v5592_v31  ;;  %7376 = vst [vmem:[#allocation55_spill] sm:$0xff] %v5594_v6 }
 0x13d   : > { %1765 = vrot.lane.b32.xlu1 %v5286_v39, %s4870_s26  ;;  %1763 = vrot.lane.b32.xlu0 %v7351_v61, %s4870_s26 }
 0x13f   : > { %v5600_v15 = vpop.permute.xlu1 %1621  ;;  %v5602_v40 = vpop.permute.xlu0 %1619 }
 0x140   : > { %7377 = vst [vmem:[#allocation56_spill] sm:$0xff] %v5600_v15  ;;  %7378 = vst [vmem:[#allocation57_spill] sm:$0xff] %v5602_v40 }
 0x141   : > { %1769 = vrot.lane.b32.xlu1 %v7355_v30, %s4870_s26  ;;  %1767 = vrot.lane.b32.xlu0 %v7356_v37, %s4870_s26 }
 0x143   : > { %v5608_v42 = vpop.permute.xlu1 %1625  ;;  %v5610_v47 = vpop.permute.xlu0 %1623 }
 0x144   : > { %7379 = vst [vmem:[#allocation58_spill] sm:$0xff] %v5608_v42  ;;  %7380 = vst [vmem:[#allocation59_spill] sm:$0xff] %v5610_v47 }
 0x145   : > { %1773 = vrot.lane.b32.xlu1 %v5338_v52, %s4870_s26  ;;  %1771 = vrot.lane.b32.xlu0 %v5341_v57, %s4870_s26 }
 0x147   : > { %v5616_v6 = vpop.permute.xlu1 %1629  ;;  %v5618_v15 = vpop.permute.xlu0 %1627 }
 0x148   : > { %7381 = vst [vmem:[#allocation60_spill] sm:$0xff] %v5616_v6  ;;  %7382 = vst [vmem:[#allocation61_spill] sm:$0xff] %v5618_v15 }
 0x14b   : > { %v5620_v40 = vpop.permute.xlu1 %1633  ;;  %v5622_v31 = vpop.permute.xlu0 %1631 }
 0x14c   : > { %7383 = vst [vmem:[#allocation62_spill] sm:$0xff] %v5620_v40  ;;  %7384 = vst [vmem:[#allocation63_spill] sm:$0xff] %v5622_v31 }
 0x14f   : > { %v5624_v18 = vpop.permute.xlu1 %1637  ;;  %v5626_v60 = vpop.permute.xlu0 %1635 }
 0x150   : > { %7385 = vst [vmem:[#allocation64_spill] sm:$0xff] %v5624_v18  ;;  %7386 = vst [vmem:[#allocation65_spill] sm:$0xff] %v5626_v60 }
 0x153   : > { %v5628_v42 = vpop.permute.xlu1 %1641  ;;  %v5630_v47 = vpop.permute.xlu0 %1639 }
 0x154   : > { %7387 = vst [vmem:[#allocation66_spill] sm:$0xff] %v5628_v42  ;;  %7388 = vst [vmem:[#allocation67_spill] sm:$0xff] %v5630_v47  ;;  %v5632_v52 = vpop.f32.mrf.mxu1  ;;  %v5634_v37 = vpop.f32.mrf.mxu0 }
 0x155   : > { %7389 = vst [vmem:[#allocation68_spill] sm:$0xff] %v5632_v52  ;;  %7390 = vst [vmem:[#allocation69_spill] sm:$0xff] %v5634_v37 }
 0x156   : > { %v5636_v57 = vpop.f32.mrf.mxu1  ;;  %v5642_v40 = vpop.f32.mrf.mxu0 }
 0x157   : > { %7391 = vst [vmem:[#allocation70_spill] sm:$0xff] %v5636_v57  ;;  %v5638_v6 = vpop.permute.xlu1 %1645  ;;  %v5640_v15 = vpop.permute.xlu0 %1643  ;;  %7394 = vst [vmem:[#allocation73_spill] sm:$0xff] %v5642_v40 }
 0x158   : > { %7392 = vst [vmem:[#allocation71_spill] sm:$0xff] %v5638_v6  ;;  %7393 = vst [vmem:[#allocation72_spill] sm:$0xff] %v5640_v15 }
 0x159   : > { %v5644_v31 = vpop.f32.mrf.mxu1 }
 0x15a   : > { %7395 = vst [vmem:[#allocation74_spill] sm:$0xff] %v5644_v31 }
 0x15b   : > { %v5646_v18 = vpop.permute.xlu1 %1649  ;;  %v5648_v60 = vpop.permute.xlu0 %1647 }
 0x15c   : > { %7396 = vst [vmem:[#allocation75_spill] sm:$0xff] %v5646_v18  ;;  %7397 = vst [vmem:[#allocation76_spill] sm:$0xff] %v5648_v60  ;;  %v5650_v42 = vpop.f32.mrf.mxu0  ;;  %v5652_v47 = vpop.f32.mrf.mxu1 }
 0x15d   : > { %7398 = vst [vmem:[#allocation77_spill] sm:$0xff] %v5650_v42  ;;  %7399 = vst [vmem:[#allocation78_spill] sm:$0xff] %v5652_v47 }
 0x15e   : > { %v5654_v52 = vpop.f32.mrf.mxu0 }
 0x15f   : > { %7400 = vst [vmem:[#allocation79_spill] sm:$0xff] %v5654_v52  ;;  %v5656_v37 = vpop.permute.xlu1 %1653  ;;  %v5658_v57 = vpop.permute.xlu0 %1651 }
 0x160   : > { %7401 = vst [vmem:[#allocation80_spill] sm:$0xff] %v5656_v37  ;;  %7402 = vst [vmem:[#allocation81_spill] sm:$0xff] %v5658_v57  ;;  %v5660_v6 = vpop.f32.mrf.mxu1 }
 0x161   : > { %7403 = vst [vmem:[#allocation82_spill] sm:$0xff] %v5660_v6 }
 0x162   : > { %v5662_v15 = vpop.f32.mrf.mxu0  ;;  %v5668_v18 = vpop.f32.mrf.mxu1 }
 0x163   : > { %7404 = vst [vmem:[#allocation83_spill] sm:$0xff] %v5662_v15  ;;  %v5664_v40 = vpop.permute.xlu1 %1657  ;;  %v5666_v31 = vpop.permute.xlu0 %1655  ;;  %7407 = vst [vmem:[#allocation86_spill] sm:$0xff] %v5668_v18 }
 0x164   : > { %7405 = vst [vmem:[#allocation84_spill] sm:$0xff] %v5664_v40  ;;  %7406 = vst [vmem:[#allocation85_spill] sm:$0xff] %v5666_v31  ;;  %v5670_v60 = vpop.f32.mrf.mxu0 }
 0x165   : > { %7408 = vst [vmem:[#allocation87_spill] sm:$0xff] %v5670_v60 }
 0x167   : > { %v5672_v42 = vpop.permute.xlu1 %1661  ;;  %v5674_v47 = vpop.permute.xlu0 %1659 }
 0x168   : > { %7409 = vst [vmem:[#allocation88_spill] sm:$0xff] %v5672_v42  ;;  %7410 = vst [vmem:[#allocation89_spill] sm:$0xff] %v5674_v47  ;;  %v5676_v52 = vpop.f32.mrf.mxu1 }
 0x169   : > { %7411 = vst [vmem:[#allocation90_spill] sm:$0xff] %v5676_v52  ;;  %v5678_v37 = vpop.f32.mrf.mxu0 }
 0x16a   : > { %7412 = vst [vmem:[#allocation91_spill] sm:$0xff] %v5678_v37  ;;  %v5680_v57 = vpop.f32.mrf.mxu1 }
 0x16b   : > { %7413 = vst [vmem:[#allocation92_spill] sm:$0xff] %v5680_v57  ;;  %v5682_v6 = vpop.permute.xlu1 %1665  ;;  %v5684_v15 = vpop.permute.xlu0 %1663 }
 0x16c   : > { %7414 = vst [vmem:[#allocation93_spill] sm:$0xff] %v5682_v6  ;;  %7415 = vst [vmem:[#allocation94_spill] sm:$0xff] %v5684_v15  ;;  %v5686_v40 = vpop.f32.mrf.mxu0  ;;  %v4656_v6 = vld [vmem:[%s5068_s30 + $0x8] sm:$0xff] }
 0x16d   : > { %7416 = vst [vmem:[#allocation95_spill] sm:$0xff] %v5686_v40 }
 0x16e   : > { %v5688_v31 = vpop.f32.mrf.mxu1 }
 0x16f   : > { %7417 = vst [vmem:[#allocation96_spill] sm:$0xff] %v5688_v31  ;;  %v5690_v18 = vpop.permute.xlu1 %1669  ;;  %v5692_v60 = vpop.permute.xlu0 %1667 }
 0x170   : > { %7418 = vst [vmem:[#allocation97_spill] sm:$0xff] %v5690_v18  ;;  %7419 = vst [vmem:[#allocation98_spill] sm:$0xff] %v5692_v60  ;;  %v5694_v42 = vpop.f32.mrf.mxu0  ;;  %v5696_v47 = vpop.f32.mrf.mxu1 }
 0x171   : > { %7420 = vst [vmem:[#allocation99_spill] sm:$0xff] %v5694_v42  ;;  %7421 = vst [vmem:[#allocation100_spill] sm:$0xff] %v5696_v47 }
 0x172   : > { %v5702_v37 = vpop.f32.mrf.mxu0 }
 0x173   : > { %v5698_v52 = vpop.permute.xlu1 %1673  ;;  %v5700_v57 = vpop.permute.xlu0 %1671  ;;  %7424 = vst [vmem:[#allocation103_spill] sm:$0xff] %v5702_v37  ;;  %v4654_v37 = vld [vmem:[%s5068_s30] sm:$0xff] }
 0x174   : > { %7422 = vst [vmem:[#allocation101_spill] sm:$0xff] %v5698_v52  ;;  %7423 = vst [vmem:[#allocation102_spill] sm:$0xff] %v5700_v57 }
 0x175   : > { %v5704_v15 = vpop.f32.mrf.mxu1 }
 0x176   : > { %7425 = vst [vmem:[#allocation104_spill] sm:$0xff] %v5704_v15 }
 0x177   : > { %v5706_v31 = vpop.permute.xlu1 %1677  ;;  %v5708_v40 = vpop.permute.xlu0 %1675 }
 0x178   : > { %7426 = vst [vmem:[#allocation105_spill] sm:$0xff] %v5706_v31  ;;  %7427 = vst [vmem:[#allocation106_spill] sm:$0xff] %v5708_v40  ;;  %v5710_v60 = vpop.f32.mrf.mxu0  ;;  %v5712_v42 = vpop.f32.mrf.mxu1  ;;  %v4653_v40 = vld [vmem:[%s5068_s30 + $0x10] sm:$0xff] }
 0x179   : > { %7428 = vst [vmem:[#allocation107_spill] sm:$0xff] %v5710_v60  ;;  %7429 = vst [vmem:[#allocation108_spill] sm:$0xff] %v5712_v42  ;;  %v1810_v60 = vsel %vm1807_vm0, %v4653_v40, %v5394_v45  ;;  %v1808_v42 = vsel %vm1807_vm0, %v4654_v37, %v5396_v48  ;;  %v1812_v40 = vsel %vm1807_vm0, %v4658_v49, %v5424_v10  ;;  %v7472_v48 = vld [vmem:[#allocation88_spill] sm:$0xff] }
 0x17a   : > { %v5714_v47 = vpop.f32.mrf.mxu0  ;;  %v1815_v37 = vsel %vm1807_vm0, %v5109_v12, %v5439_v32  ;;  %v1819_v49 = vsel %vm1807_vm0, %v5129_v20, %v5471_v51  ;;  %v1818_v12 = vsel %vm1807_vm0, %v5132_v21, %v5473_v56  ;;  %v1823_v20 = vsel %vm1807_vm0, %v5149_v28, %v5504_v50 }
 0x17b   : > { %7430 = vst [vmem:[#allocation109_spill] sm:$0xff] %v5714_v47  ;;  %v5716_v52 = vpop.permute.xlu1 %1713  ;;  %v5718_v57 = vpop.permute.xlu0 %1711  ;;  %v4655_v47 = vld [vmem:[%s5068_s30 + $0x18] sm:$0xff]  ;;  %v1822_v21 = vsel %vm1807_vm0, %v5152_v29, %v5506_v59  ;;  %v1825_v56 = vsel %vm1807_vm0, %v5162_v33, %v5512_v62  ;;  %v1826_v28 = vsel %vm1807_vm0, %v5185_v44, %v5526_v11  ;;  %v1829_v29 = vsel %vm1807_vm0, %v5208_v53, %v5532_v1  ;;  %v7437_v59 = vld [vmem:[#allocation21_spill] sm:$0xff] }
 0x17c   : > { %7431 = vst [vmem:[#allocation110_spill] sm:$0xff] %v5716_v52  ;;  %7432 = vst [vmem:[#allocation111_spill] sm:$0xff] %v5718_v57  ;;  %v5720_v15 = vpop.f32.mrf.mxu1  ;;  %v1811_v18 = vsel %vm1807_vm0, %v4655_v47, %v5408_v55  ;;  %v1809_v57 = vsel %vm1807_vm0, %v4656_v6, %v5410_v58  ;;  %v4657_v52 = vld [vmem:[%s5068_s30 + $0x28] sm:$0xff]  ;;  %v1814_v47 = vsel %vm1807_vm0, %v5112_v13, %v5441_v36  ;;  %v7445_v1 = vld [vmem:[#allocation54_spill] sm:$0xff] }
 0x17d   : > { %7433 = vst [vmem:[#allocation112_spill] sm:$0xff] %v5720_v15  ;;  %v1817_v6 = vsel %vm1807_vm0, %v5119_v16, %v5454_v41  ;;  %v1821_v16 = vsel %vm1807_vm0, %v5139_v24, %v5487_v23  ;;  %v1824_v24 = vsel %vm1807_vm0, %v5165_v34, %v5514_v7  ;;  %v1828_v33 = vsel %vm1807_vm0, %v5211_v54, %v5534_v4  ;;  %v7448_v7 = vld [vmem:[#allocation57_spill] sm:$0xff] }
 0x17e   : > { %v5722_v31 = vpop.f32.mrf.mxu0  ;;  %v5750_v45 = vpop.f32.mrf.mxu1  ;;  %v1831_v34 = vsel %vm1807_vm0, %v5234_v63, %v5544_v0  ;;  %v1833_v44 = vsel %vm1807_vm0, %v5260_v19, %v5552_v9  ;;  %v1832_v53 = vsel %vm1807_vm0, %v5263_v22, %v5554_v14  ;;  %v5819_v63 = vsel %vm1807_vm0, %v5286_v39, %v5564_v27  ;;  %v7436_v22 = vld [vmem:[#allocation51_spill] sm:$0xff]  ;;  %v7442_v0 = vld [vmem:[#allocation53_spill] sm:$0xff] }
 0x17f   : > { %7434 = vst [vmem:[#allocation113_spill] sm:$0xff] %v5722_v31  ;;  %v5736_v15 = vpop.permute.xlu1 %1717  ;;  %v1813_v31 = vsel %vm1807_vm0, %v4657_v52, %v5422_v3  ;;  %v1816_v52 = vsel %vm1807_vm0, %v5122_v17, %v5456_v46  ;;  %v5764_v32 = vpop.permute.xlu0 %1715  ;;  %v1820_v17 = vsel %vm1807_vm0, %v5142_v25, %v5489_v26  ;;  %v1827_v25 = vsel %vm1807_vm0, %v5182_v43, %v5524_v5  ;;  %v7440_v39 = vld [vmem:[#allocation23_spill] sm:$0xff]  ;;  %v7453_v23 = vld [vmem:[#allocation61_spill] sm:$0xff]  ;;  %v7463_v46 = vld [vmem:[#allocation72_spill] sm:$0xff] }
 0x180   : > { %v5766_v13 = vpop.f32.mrf.mxu0  ;;  %v1830_v43 = vsel %vm1807_vm0, %v5237_v2, %v5546_v8  ;;  %v5824_v2 = vsel %vm1807_vm0, %v7351_v61, %v5566_v35  ;;  %v5829_v19 = vsel %vm1807_vm0, %v7355_v30, %v5572_v38  ;;  %v5834_v14 = vsel %vm1807_vm0, %v7437_v59, %v7436_v22  ;;  %v7439_v8 = vld [vmem:[#allocation52_spill] sm:$0xff]  ;;  %v7446_v38 = vld [vmem:[#allocation55_spill] sm:$0xff]  ;;  %v7469_v36 = vld [vmem:[#allocation73_spill] sm:$0xff] }
 0x181   : > { %v5841_v27 = vsel %vm1807_vm0, %v7440_v39, %v7439_v8  ;;  %v7443_v61 = vld [vmem:[#allocation24_spill] sm:$0xff]  ;;  %v1842_v30 = vsel %vm1840_vm1, %v1809_v57, %v7445_v1  ;;  %v1841_v11 = vsel %vm1840_vm1, %v1808_v42, %v7446_v38  ;;  %v1843_v39 = vsel %vm1840_vm1, %v1810_v60, %v7448_v7  ;;  %v7449_v8 = vld [vmem:[#allocation58_spill] sm:$0xff]  ;;  %v7451_v57 = vld [vmem:[#allocation59_spill] sm:$0xff] }
 0x182   : > { %7441 = vst [vmem:[#allocation23_spill] sm:$0xff] %v5841_v27  ;;  %v5846_v35 = vsel %vm1807_vm0, %v7443_v61, %v7442_v0  ;;  %v7447_v22 = vld [vmem:[#allocation56_spill] sm:$0xff]  ;;  %v1846_v50 = vsel %vm1840_vm1, %v1813_v31, %v7449_v8  ;;  %v7450_v61 = vlaneseq  ;;  %v1845_v1 = vsel %vm1840_vm1, %v1812_v40, %v7451_v57  ;;  %v7454_v7 = vld [vmem:[#allocation62_spill] sm:$0xff]  ;;  %v7455_v8 = vld [vmem:[#allocation63_spill] sm:$0xff] }
 0x183   : > { %v5798_v62 = vpop.f32.mrf.mxu1  ;;  %v5812_v54 = vpop.permute.xlu1 %1721  ;;  %7444 = vst [vmem:[#allocation24_spill] sm:$0xff] %v5846_v35  ;;  %v1844_v5 = vsel %vm1840_vm1, %v1811_v18, %v7447_v22  ;;  %v7452_v38 = vld [vmem:[#allocation60_spill] sm:$0xff]  ;;  %v5873_v18 = vsel %vm1840_vm1, %v1814_v47, %v7453_v23  ;;  %v5877_v60 = vsel %vm1840_vm1, %v1817_v6, %v7454_v7  ;;  %v5881_v31 = vsel %vm1840_vm1, %v1816_v52, %v7455_v8  ;;  %v7457_v40 = vld [vmem:[#allocation65_spill] sm:$0xff]  ;;  %v7458_v57 = vld [vmem:[#allocation66_spill] sm:$0xff] }
 0x184   : > { %7435 = vst [vmem:[#allocation114_spill] sm:$0xff] %v5798_v62  ;;  %v5852_v59 = vpop.permute.xlu0 %1719  ;;  %v5863_v0 = vand.u32 127, %v7450_v61  ;;  %v5869_v42 = vsel %vm1840_vm1, %v1815_v37, %v7452_v38  ;;  %v7456_v22 = vld [vmem:[#allocation64_spill] sm:$0xff]  ;;  %v5889_v37 = vsel %vm1840_vm1, %v1818_v12, %v7457_v40  ;;  %v5893_v23 = vsel %vm1840_vm1, %v1821_v16, %v7458_v57  ;;  %v7459_v38 = vld [vmem:[#allocation67_spill] sm:$0xff]  ;;  %v7462_v12 = vld [vmem:[#allocation69_spill] sm:$0xff] }
 0x185   : > { %v5814_v4 = vpop.f32.mrf.mxu0  ;;  %v5836_v9 = vpop.f32.mrf.mxu1  ;;  %v5885_v61 = vsel %vm1840_vm1, %v1819_v49, %v7456_v22  ;;  %v5897_v6 = vsel %vm1840_vm1, %v1820_v17, %v7459_v38  ;;  %v7460_v7 = vld [vmem:[#allocation71_spill] sm:$0xff]  ;;  %v1908_v8 = vld [vmem:[#allocation9 + $0x8] sm:$0xff]  ;;  %v7461_v49 = vld [vmem:[#allocation110_spill] sm:$0xff]  ;;  %v5910_v16 = vsel %vm1840_vm1, %v1822_v21, %v7463_v46 }
 0x186   : > { %7438 = vst [vmem:[#allocation21_spill] sm:$0xff] %v5836_v9  ;;  %v5901_v52 = vsel %vm1840_vm1, %v1823_v20, %v7460_v7  ;;  %v1875_v22 = vsel %vm1873_vm2, %v1842_v30, %v7461_v49  ;;  %v7464_v57 = vld [vmem:[#allocation75_spill] sm:$0xff]  ;;  %v7465_v38 = vld [vmem:[#allocation76_spill] sm:$0xff]  ;;  %v7467_v21 = vld [vmem:[#allocation81_spill] sm:$0xff]  ;;  %vm2005_vm3 = vcmp.ge.s32.totalorder %v5863_v0, 64  ;;  %vm2006_vm4 = vcmp.lt.s32.totalorder %v5863_v0, 96 }
 0x187   : > { %v5860_v26 = vpop.f32.mrf.mxu0  ;;  %v5905_v51 = vpop.permute.xlu1 %1725  ;;  %v5914_v17 = vsel %vm1840_vm1, %v1825_v56, %v7464_v57  ;;  %v5918_v20 = vsel %vm1840_vm1, %v1824_v24, %v7465_v38  ;;  %v7466_v7 = vld [vmem:[#allocation80_spill] sm:$0xff]  ;;  %v5931_v49 = vsel %vm1840_vm1, %v1826_v28, %v7467_v21  ;;  %v1907_v56 = vld [vmem:[#allocation9] sm:$0xff]  ;;  %v7471_v3 = vld [vmem:[#allocation85_spill] sm:$0xff]  ;;  %v5946_v28 = vsel %vm1840_vm1, %v1831_v34, %v7472_v48 }
 0x188   : > { %v5922_v41 = vsel %vm1840_vm1, %v1827_v25, %v7466_v7  ;;  %v1724_v57 = vpop.permute.xlu0 %1723  ;;  %v7470_v7 = vld [vmem:[#allocation84_spill] sm:$0xff]  ;;  %v5942_v55 = vsel %vm1840_vm1, %v1828_v33, %v7471_v3  ;;  %v1940_v21 = vmul.f32 %v1908_v8, %v1875_v22  ;;  %v7475_v33 = vld [vmem:[#allocation93_spill] sm:$0xff]  ;;  %v7476_v34 = vld [vmem:[#allocation94_spill] sm:$0xff] }
 0x189   : > { %v5938_v10 = vsel %vm1840_vm1, %v1829_v29, %v7470_v7  ;;  %v7473_v29 = vld [vmem:[#allocation77_spill] sm:$0xff]  ;;  %v5958_v48 = vsel %vm1840_vm1, %v1833_v44, %v7475_v33  ;;  %v5962_v8 = vsel %vm1840_vm1, %v1832_v53, %v7476_v34  ;;  %v1912_v53 = vld [vmem:[#allocation9 + $0x28] sm:$0xff]  ;;  %v1914_v62 = vld [vmem:[#allocation9 + $0x38] sm:$0xff] }
 0x18a   : > { %v4140_v47 = vpop.f32.mrf.mxu1  ;;  %vm6121_vm5 = vmand %vm2005_vm3, %vm2006_vm4 }
 0x18b   : > { %v948_v40 = vadd.f32 %v4140_v47, %v7462_v12  ;;  %v5927_v47 = vld [vmem:[%s7244_s2] ss:$0 sm:$0xff] }
 0x18c   : > { %v4220_v30 = vpop.f32.mrf.mxu0  ;;  %v756_v46 = vpop.f32.mrf.mxu1  ;;  %v7468_v12 = vld [vmem:[#allocation111_spill] sm:$0xff] }
 0x18d   : > { %v1874_v24 = vsel %vm1873_vm2, %v1841_v11, %v7468_v12  ;;  %v1321_v38 = vadd.f32 %v4220_v30, %v948_v40  ;;  %v947_v25 = vadd.f32 %v756_v46, %v7469_v36  ;;  %v1910_v11 = vld [vmem:[#allocation9 + $0x18] sm:$0xff]  ;;  %v1877_v40 = vsel %vm1873_vm2, %v1844_v5, %v5736_v15  ;;  %v7474_v12 = vld [vmem:[#allocation89_spill] sm:$0xff] }
 0x18e   : > { %v1129_v58 = vpop.f32.mrf.mxu0  ;;  %v4143_v35 = vpop.f32.mrf.mxu1  ;;  %v5954_v3 = vsel %vm1840_vm1, %v1830_v43, %v7474_v12  ;;  %v1939_v22 = vmul.f32 %v1907_v56, %v1874_v24  ;;  %v1909_v15 = vld [vmem:[#allocation9 + $0x10] sm:$0xff]  ;;  %v1942_v12 = vmul.f32 %v1910_v11, %v1877_v40  ;;  %v1879_v56 = vsel %vm1873_vm2, %v1846_v50, %v5812_v54  ;;  %v7478_v24 = vld [vmem:[#allocation79_spill] sm:$0xff] }
 0x18f   : > { %v1424_v36 = vadd.f32 %v5927_v47, %v1321_v38  ;;  %v1320_v30 = vadd.f32 %v1129_v58, %v947_v25  ;;  %v950_v46 = vadd.f32 %v4143_v35, %v7473_v29  ;;  %v1876_v58 = vsel %vm1873_vm2, %v1843_v39, %v5764_v32  ;;  %v1730_v38 = vpop.permute.xlu1 %1729  ;;  %v7477_v29 = vld [vmem:[#allocation97_spill] sm:$0xff]  ;;  %v1911_v32 = vld [vmem:[#allocation9 + $0x20] sm:$0xff] }
 0x190   : > { %v4223_v7 = vpop.f32.mrf.mxu0  ;;  %v766_v5 = vpop.f32.mrf.mxu1  ;;  %v5970_v44 = vsel %vm1840_vm1, %v5819_v63, %v7477_v29  ;;  %v1878_v39 = vsel %vm1873_vm2, %v1845_v1, %v5852_v59  ;;  %v7479_v63 = vld [vmem:[#allocation98_spill] sm:$0xff]  ;;  %v1941_v40 = vmul.f32 %v1909_v15, %v1876_v58  ;;  %v7480_v54 = vld [vmem:[#allocation83_spill] sm:$0xff] }
 0x191   : > { %v1972_v35 = vadd.f32 %v1940_v21, %v1424_v36  ;;  %v1423_v43 = vadd.f32 %v5927_v47, %v1320_v30  ;;  %v1323_v25 = vadd.f32 %v4223_v7, %v950_v46  ;;  %v949_v33 = vadd.f32 %v766_v5, %v7478_v24  ;;  %v1728_v36 = vpop.permute.xlu0 %1727 }
 0x192   : > { %v1139_v34 = vpop.f32.mrf.mxu0  ;;  %v4146_v27 = vpop.f32.mrf.mxu1  ;;  %v5981_v11 = vsel %vm1840_vm1, %v5824_v2, %v7479_v63  ;;  %v1944_v24 = vmul.f32 %v1912_v53, %v1879_v56  ;;  %v1943_v1 = vmul.f32 %v1911_v32, %v1878_v39  ;;  %v7482_v53 = vld [vmem:[#allocation91_spill] sm:$0xff] }
 0x193   : > { %v3844_v21 = vmul.f32 -1.442695, %v1972_v35  ;;  %v1971_v30 = vadd.f32 %v1939_v22, %v1423_v43  ;;  %v1426_v46 = vadd.f32 %v5927_v47, %v1323_v25  ;;  %v1322_v50 = vadd.f32 %v1139_v34, %v949_v33  ;;  %v7481_v33 = vld [vmem:[#allocation87_spill] sm:$0xff] }
 0x194   : > { %v952_v7 = vadd.f32 %v4146_v27, %v7480_v54  ;;  %v4226_v5 = vpop.f32.mrf.mxu0  ;;  %v776_v29 = vpop.f32.mrf.mxu1  ;;  %v1881_v22 = vsel %vm1873_vm2, %v5869_v42, %v5905_v51 }
 0x195   : > { %4397 = vpow2.f32 %v3844_v21  ;;  %v3843_v9 = vmul.f32 -1.442695, %v1971_v30  ;;  %v1974_v59 = vadd.f32 %v1942_v12, %v1426_v46  ;;  %v1425_v43 = vadd.f32 %v5927_v47, %v1322_v50  ;;  %v1734_v27 = vpop.permute.xlu1 %1733  ;;  %v1732_v46 = vpop.permute.xlu0 %1731 }
 0x196   : > { %v1325_v2 = vadd.f32 %v4226_v5, %v952_v7  ;;  %v1149_v25 = vpop.f32.mrf.mxu0  ;;  %v4149_v15 = vpop.f32.mrf.mxu1  ;;  %v951_v34 = vadd.f32 %v776_v29, %v7481_v33  ;;  %v1880_v12 = vsel %vm1873_vm2, %v5873_v18, %v1724_v57  ;;  %v1946_v21 = vmul.f32 %v1914_v62, %v1881_v22  ;;  %v1913_v18 = vld [vmem:[#allocation9 + $0x30] sm:$0xff]  ;;  %v1916_v57 = vld [vmem:[#allocation9 + $0x48] sm:$0xff]  ;;  %v7483_v62 = vld [vmem:[#allocation95_spill] sm:$0xff] }
 0x197   : > { %4399 = vpow2.f32 %v3843_v9  ;;  %v3846_v58 = vmul.f32 -1.442695, %v1974_v59  ;;  %v954_v56 = vadd.f32 %v4149_v15, %v7482_v53  ;;  %v1973_v32 = vadd.f32 %v1941_v40, %v1425_v43 }
 0x198   : > { %4401 = vtanh.f32 %v1972_v35  ;;  %v1428_v39 = vadd.f32 %v5927_v47, %v1325_v2  ;;  %v4229_v51 = vpop.f32.mrf.mxu0  ;;  %v786_v42 = vpop.f32.mrf.mxu1  ;;  %v1324_v63 = vadd.f32 %v1149_v25, %v951_v34  ;;  %v1883_v50 = vsel %vm1873_vm2, %v5877_v60, %v1730_v38  ;;  %v7484_v60 = vld [vmem:[#allocation99_spill] sm:$0xff] }
 0x199   : > { %4403 = vpow2.f32 %v3846_v58  ;;  %v1327_v9 = vadd.f32 %v4229_v51, %v954_v56  ;;  %v3845_v54 = vmul.f32 -1.442695, %v1973_v32  ;;  %v953_v22 = vadd.f32 %v786_v42, %v7483_v62  ;;  %v1915_v25 = vld [vmem:[#allocation9 + $0x40] sm:$0xff]  ;;  %v1738_v15 = vpop.permute.xlu1 %1737 }
 0x19a   : > { %4405 = vtanh.f32 %v1971_v30  ;;  %v1976_v7 = vadd.f32 %v1944_v24, %v1428_v39  ;;  %v1159_v5 = vpop.f32.mrf.mxu0  ;;  %v4152_v29 = vpop.f32.mrf.mxu1  ;;  %v1427_v35 = vadd.f32 %v5927_v47, %v1324_v63  ;;  %v1882_v43 = vsel %vm1873_vm2, %v5881_v31, %v1728_v36 }
 0x19b   : > { %4407 = vtanh.f32 %v1974_v59  ;;  %v1430_v40 = vadd.f32 %v5927_v47, %v1327_v9  ;;  %v956_v38 = vadd.f32 %v4152_v29, %v7484_v60  ;;  %v1326_v33 = vadd.f32 %v1159_v5, %v953_v22  ;;  %v6001_v31 = vpop.permute.xlu0 %1735  ;;  %v7486_v29 = vld [vmem:[#allocation107_spill] sm:$0xff] }
 0x19c   : > { %4409 = vpow2.f32 %v3845_v54  ;;  %v3848_v2 = vmul.f32 -1.442695, %v1976_v7  ;;  %v4232_v30 = vpop.f32.mrf.mxu0  ;;  %v796_v24 = vpop.f32.mrf.mxu1  ;;  %v1975_v58 = vadd.f32 %v1943_v1, %v1427_v35  ;;  %v1945_v34 = vmul.f32 %v1913_v18, %v1880_v12  ;;  %v7485_v1 = vld [vmem:[#allocation103_spill] sm:$0xff] }
 0x19d   : > { %4411 = vtanh.f32 %v1973_v32  ;;  %v1978_v59 = vadd.f32 %v1946_v21, %v1430_v40  ;;  %v1948_v53 = vmul.f32 %v1916_v57, %v1883_v50  ;;  %v1329_v56 = vadd.f32 %v4232_v30, %v956_v38  ;;  %v1918_v50 = vld [vmem:[#allocation9 + $0x58] sm:$0xff]  ;;  %v6011_v60 = vpop.permute.xlu1 %1741 }
 0x19e   : > { %4413 = vpow2.f32 %v3848_v2  ;;  %v1169_v39 = vpop.f32.mrf.mxu0  ;;  %v4155_v51 = vpop.f32.mrf.mxu1  ;;  %v3847_v36 = vmul.f32 -1.442695, %v1975_v58  ;;  %v1429_v63 = vadd.f32 %v5927_v47, %v1326_v33  ;;  %v1947_v9 = vmul.f32 %v1915_v25, %v1882_v43 }
 0x19f   : > { %4415 = vtanh.f32 %v1976_v7  ;;  %v3850_v42 = vmul.f32 -1.442695, %v1978_v59  ;;  %v1432_v32 = vadd.f32 %v5927_v47, %v1329_v56  ;;  %v955_v21 = vadd.f32 %v796_v24, %v7485_v1 }
 0x1a0   : > { %4417 = vtanh.f32 %v1975_v58  ;;  %v4235_v54 = vpop.f32.mrf.mxu0  ;;  %v806_v12 = vpop.f32.mrf.mxu1  ;;  %v1885_v5 = vsel %vm1873_vm2, %v5885_v61, %v1734_v27  ;;  %v1977_v7 = vadd.f32 %v1945_v34, %v1429_v63  ;;  %v958_v18 = vadd.f32 %v4155_v51, %v7486_v29  ;;  %v1920_v51 = vld [vmem:[#allocation9 + $0x68] sm:$0xff] }
 0x1a1   : > { %4419 = vpow2.f32 %v3847_v36  ;;  %v1884_v35 = vsel %vm1873_vm2, %v5889_v37, %v1732_v46  ;;  %v1980_v40 = vadd.f32 %v1948_v53, %v1432_v32  ;;  %v1328_v62 = vadd.f32 %v1169_v39, %v955_v21  ;;  %v1740_v53 = vpop.permute.xlu0 %1739  ;;  %v1917_v39 = vld [vmem:[#allocation9 + $0x50] sm:$0xff] }
 0x1a2   : > { %v4398_v57 = vpop.eup %4397  ;;  %4421 = vpow2.f32 %v3850_v42  ;;  %v1179_v22 = vpop.f32.mrf.mxu0  ;;  %v3849_v38 = vmul.f32 -1.442695, %v1977_v7  ;;  %v1331_v30 = vadd.f32 %v4235_v54, %v958_v18  ;;  %v1950_v27 = vmul.f32 %v1918_v50, %v1885_v5  ;;  %v7487_v42 = vld [vmem:[#allocation109_spill] sm:$0xff] }
 0x1a3   : > { %v4158_v43 = vpop.f32.mrf.mxu1  ;;  %v2137_v2 = vadd.f32 1.0, %v4398_v57  ;;  %4423 = vtanh.f32 %v1978_v59  ;;  %v3852_v24 = vmul.f32 -1.442695, %v1980_v40  ;;  %v1431_v25 = vadd.f32 %v5927_v47, %v1328_v62  ;;  %v7488_v32 = vld [vmem:[#allocation113_spill] sm:$0xff] }
 0x1a4   : > { %v4400_v61 = vpop.eup %4399  ;;  %4425 = vtanh.f32 %v1977_v7  ;;  %v4238_v58 = vpop.f32.mrf.mxu0  ;;  %v1887_v34 = vsel %vm1873_vm2, %v5893_v23, %v1738_v15  ;;  %v1434_v59 = vadd.f32 %v5927_v47, %v1331_v30  ;;  %v957_v63 = vadd.f32 %v806_v12, %v7487_v42  ;;  %v7489_v5 = vld [vmem:[#allocation101_spill] sm:$0xff]  ;;  %v1919_v30 = vld [vmem:[#allocation9 + $0x60] sm:$0xff] }
 0x1a5   : > { %v816_v33 = vpop.f32.mrf.mxu1  ;;  %v6014_v37 = vpop.eup %4401  ;;  %v2136_v46 = vadd.f32 1.0, %v4400_v61  ;;  %4427 = vtanh.f32 %v1980_v40  ;;  %v1979_v36 = vadd.f32 %v1947_v9, %v1431_v25  ;;  %v960_v1 = vadd.f32 %v4158_v43, %v7488_v32 }
 0x1a6   : > { %v4404_v56 = vpop.eup %4403  ;;  %4429 = vpow2.f32 %v3849_v38  ;;  %v1189_v21 = vpop.f32.mrf.mxu0  ;;  %v6026_v23 = vsel %vm1840_vm1, %v5829_v19, %v7489_v5  ;;  %v1982_v7 = vadd.f32 %v1950_v27, %v1434_v59  ;;  %v1330_v18 = vadd.f32 %v1179_v22, %v957_v63 }
 0x1a7   : > { %v4161_v54 = vpop.f32.mrf.mxu1  ;;  %v6021_v50 = vpop.eup %4405  ;;  %4431 = vrcp.f32 %v2137_v2  ;;  %v2139_v15 = vadd.f32 1.0, %v4404_v56  ;;  %v3851_v9 = vmul.f32 -1.442695, %v1979_v36  ;;  %v1333_v12 = vadd.f32 %v4238_v58, %v960_v1 }
 0x1a8   : > { %v6028_v29 = vpop.eup %4407  ;;  %4433 = vpow2.f32 %v3852_v24  ;;  %v4241_v57 = vpop.f32.mrf.mxu0  ;;  %v1949_v43 = vmul.f32 %v1917_v39, %v1884_v35  ;;  %v1952_v38 = vmul.f32 %v1920_v51, %v1887_v34  ;;  %v1886_v19 = vsel %vm1873_vm2, %v5897_v6, %v6001_v31 }
 0x1a9   : > { %v826_v40 = vpop.f32.mrf.mxu1  ;;  %v4410_v62 = vpop.eup %4409  ;;  %4435 = vrcp.f32 %v2136_v46  ;;  %v1433_v24 = vadd.f32 %v5927_v47, %v1330_v18  ;;  %v1436_v22 = vadd.f32 %v5927_v47, %v1333_v12  ;;  %v3854_v35 = vmul.f32 -1.442695, %v1982_v7  ;;  %v1922_v18 = vld [vmem:[#allocation9 + $0x78] sm:$0xff] }
 0x1aa   : > { %v1746_v2 = vpop.permute.xlu1 %1745  ;;  %v6033_v61 = vpop.eup %4411  ;;  %4437 = vrcp.f32 %v2139_v15  ;;  %v2138_v27 = vadd.f32 1.0, %v4410_v62  ;;  %v959_v34 = vadd.f32 %v816_v33, %v5766_v13  ;;  %v962_v56 = vadd.f32 %v4161_v54, %v5814_v4 }
 0x1ab   : > { %v1199_v25 = vpop.f32.mrf.mxu0  ;;  %v4164_v58 = vpop.f32.mrf.mxu1  ;;  %4439 = vpow2.f32 %v3851_v9  ;;  %v1951_v39 = vmul.f32 %v1919_v30, %v1886_v19  ;;  %v1981_v51 = vadd.f32 %v1949_v43, %v1433_v24  ;;  %v1984_v1 = vadd.f32 %v1952_v38, %v1436_v22  ;;  %v1921_v43 = vld [vmem:[#allocation9 + $0x70] sm:$0xff] }
 0x1ac   : > { %v4414_v59 = vpop.eup %4413  ;;  %v1744_v46 = vpop.permute.xlu0 %1743  ;;  %4441 = vtanh.f32 %v1979_v36  ;;  %v1332_v5 = vadd.f32 %v1189_v21, %v959_v34  ;;  %v1335_v15 = vadd.f32 %v4241_v57, %v962_v56  ;;  %v1889_v4 = vsel %vm1873_vm2, %v5901_v52, %v6011_v60  ;;  %v1924_v60 = vld [vmem:[#allocation9 + $0x88] sm:$0xff] }
 0x1ad   : > { %v6039_v6 = vpop.eup %4415  ;;  %v2141_v31 = vadd.f32 1.0, %v4414_v59  ;;  %v4244_v42 = vpop.f32.mrf.mxu0  ;;  %4443 = vrcp.f32 %v2138_v27  ;;  %v1888_v13 = vsel %vm1873_vm2, %v5910_v16, %v1740_v53  ;;  %v3853_v33 = vmul.f32 -1.442695, %v1981_v51 }
 0x1ae   : > { %v836_v63 = vpop.f32.mrf.mxu1  ;;  %v6041_v32 = vpop.eup %4417  ;;  %4445 = vtanh.f32 %v1982_v7  ;;  %v1435_v57 = vadd.f32 %v5927_v47, %v1332_v5  ;;  %v1438_v38 = vadd.f32 %v5927_v47, %v1335_v15  ;;  %v1891_v16 = vsel %vm1873_vm2, %v5914_v17, %v1746_v2 }
 0x1af   : > { %v4420_v9 = vpop.eup %4419  ;;  %v6048_v36 = vpop.f32.mrf.mxu0  ;;  %4447 = vpow2.f32 %v3854_v35  ;;  %v961_v53 = vadd.f32 %v826_v40, %v5860_v26  ;;  %v1954_v24 = vmul.f32 %v1922_v18, %v1889_v4  ;;  %v3856_v59 = vmul.f32 -1.442695, %v1984_v1  ;;  %v7490_v26 = vld [vmem:[#allocation68_spill] sm:$0xff] }
 0x1b0   : > { %v4167_v54 = vpop.f32.mrf.mxu1  ;;  %v4422_v12 = vpop.eup %4421  ;;  %v2140_v62 = vadd.f32 1.0, %v4420_v9  ;;  %4449 = vrcp.f32 %v2141_v31  ;;  %v1983_v35 = vadd.f32 %v1951_v39, %v1435_v57  ;;  %v1953_v17 = vmul.f32 %v1921_v43, %v1888_v13  ;;  %v7491_v57 = vld [vmem:[#allocation70_spill] sm:$0xff] }
 0x1b1   : > { %v1750_v21 = vpop.permute.xlu1 %1749  ;;  %v6052_v30 = vpop.eup %4423  ;;  %v2143_v52 = vadd.f32 1.0, %v4422_v12  ;;  %4451 = vtanh.f32 %v1981_v51  ;;  %v1334_v2 = vadd.f32 %v1199_v25, %v961_v53  ;;  %v964_v40 = vadd.f32 %v4164_v58, %v7490_v26 }
 0x1b2   : > { %v4247_v7 = vpop.f32.mrf.mxu0  ;;  %v6057_v19 = vpop.f32.mrf.mxu1  ;;  %4453 = vrcp.f32 %v2140_v62  ;;  %v1956_v15 = vmul.f32 %v1924_v60, %v1891_v16  ;;  %v1890_v39 = vsel %vm1873_vm2, %v5918_v20, %v1744_v46  ;;  %v1986_v51 = vadd.f32 %v1954_v24, %v1438_v38  ;;  %v7492_v20 = vld [vmem:[#allocation74_spill] sm:$0xff] }
 0x1b3   : > { %v6059_v27 = vpop.eup %4425  ;;  %v1748_v22 = vpop.permute.xlu0 %1747  ;;  %4455 = vpow2.f32 %v3853_v33  ;;  %v1437_v4 = vadd.f32 %v5927_v47, %v1334_v2  ;;  %v1337_v25 = vadd.f32 %v4244_v42, %v964_v40  ;;  %v3855_v43 = vmul.f32 -1.442695, %v1983_v35  ;;  %v1926_v2 = vld [vmem:[#allocation9 + $0x98] sm:$0xff] }
 0x1b4   : > { %v6063_v34 = vpop.eup %4427  ;;  %v6066_v56 = vpop.f32.mrf.mxu0  ;;  %4457 = vrcp.f32 %v2143_v52  ;;  %v963_v60 = vadd.f32 %v836_v63, %v7491_v57  ;;  %v966_v46 = vadd.f32 %v4167_v54, %v7492_v20  ;;  %v1893_v63 = vsel %vm1873_vm2, %v5922_v41, %v1750_v21 }
 0x1b5   : > { %v6068_v31 = vpop.f32.mrf.mxu1  ;;  %v4430_v5 = vpop.eup %4429  ;;  %4459 = vpow2.f32 %v3856_v59  ;;  %v1985_v52 = vadd.f32 %v1953_v17, %v1437_v4  ;;  %v1440_v16 = vadd.f32 %v5927_v47, %v1337_v25  ;;  %v1923_v59 = vld [vmem:[#allocation9 + $0x80] sm:$0xff]  ;;  %v1892_v17 = vsel %vm1873_vm2, %v5931_v49, %v1748_v22 }
 0x1b6   : > { %v6072_v9 = vpop.eup %4431  ;;  %v2142_v18 = vadd.f32 1.0, %v4430_v5  ;;  %v6075_v13 = vpop.f32.mrf.mxu0  ;;  %4461 = vtanh.f32 %v1984_v1  ;;  %v1336_v54 = vadd.f32 %v6048_v36, %v963_v60  ;;  %v1339_v26 = vadd.f32 %v4247_v7, %v966_v46  ;;  %v1925_v1 = vld [vmem:[#allocation9 + $0x90] sm:$0xff]  ;;  %v1928_v5 = vld [vmem:[#allocation9 + $0xa8] sm:$0xff] }
 0x1b7   : > { %v6077_v58 = vpop.f32.mrf.mxu1  ;;  %v4434_v12 = vpop.eup %4433  ;;  %v1988_v36 = vadd.f32 %v1956_v15, %v1440_v16  ;;  %v1955_v49 = vmul.f32 %v1923_v59, %v1890_v39  ;;  %v1958_v22 = vmul.f32 %v1926_v2, %v1893_v63  ;;  %v7494_v39 = vld [vmem:[#allocation82_spill] sm:$0xff] }
 0x1b8   : > { %v1754_v62 = vpop.permute.xlu1 %1753  ;;  %v6081_v33 = vpop.eup %4435  ;;  %v2145_v38 = vadd.f32 1.0, %v4434_v12  ;;  %4463 = vrcp.f32 %v2142_v18  ;;  %v3858_v18 = vmul.f32 -1.442695, %v1986_v51  ;;  %v1439_v21 = vadd.f32 %v5927_v47, %v1336_v54 }
 0x1b9   : > { %v6084_v42 = vpop.f32.mrf.mxu0  ;;  %v6086_v53 = vpop.f32.mrf.mxu1  ;;  %v1895_v4 = vsel %vm1873_vm2, %v5938_v10, %v1754_v62  ;;  %4465 = vtanh.f32 %v1983_v35  ;;  %v3857_v10 = vmul.f32 -1.442695, %v1985_v52  ;;  %v1957_v35 = vmul.f32 %v1925_v1, %v1892_v17 }
 0x1ba   : > { %v6088_v24 = vpop.eup %4437  ;;  %v1752_v25 = vpop.permute.xlu0 %1751  ;;  %4467 = vpow2.f32 %v3855_v43  ;;  %v6108_v20 = vmul.f32 %v1928_v5, %v1895_v4  ;;  %v1442_v43 = vadd.f32 %v5927_v47, %v1339_v26  ;;  %v1987_v54 = vadd.f32 %v1955_v49, %v1439_v21  ;;  %v7497_v21 = vld [vmem:[#allocation86_spill] sm:$0xff] }
 0x1bb   : > { %v4440_v40 = vpop.eup %4439  ;;  %v6097_v12 = vpop.f32.mrf.mxu1  ;;  %4469 = vrcp.f32 %v2145_v38  ;;  %v968_v59 = vadd.f32 %v6068_v31, %v7494_v39  ;;  %v1894_v26 = vsel %vm1873_vm2, %v5942_v55, %v1752_v25  ;;  %v3860_v1 = vmul.f32 -1.442695, %v1988_v36  ;;  %v1929_v39 = vld [vmem:[#allocation9 + $0xb0] sm:$0xff] }
 0x1bc   : > { %v6099_v57 = vpop.eup %4441  ;;  %v2144_v41 = vadd.f32 1.0, %v4440_v40  ;;  %v6102_v7 = vpop.f32.mrf.mxu0  ;;  %4471 = vtanh.f32 %v1986_v51  ;;  %v7493_v40 = vld [vmem:[#allocation78_spill] sm:$0xff]  ;;  %v967_v55 = vadd.f32 %v6077_v58, %v7497_v21  ;;  %v6145_v25 = vsel %vm6121_vm5, %v6014_v37, %v6072_v9 }
 0x1bd   : > { %v6104_v60 = vpop.eup %4443  ;;  %v1758_v46 = vpop.permute.xlu1 %1757  ;;  %4473 = vpow2.f32 %v3858_v18  ;;  %v965_v38 = vadd.f32 %v6057_v19, %v7493_v40  ;;  %v1341_v4 = vadd.f32 %v6075_v13, %v968_v59  ;;  %2330 = vrot.lane.b32.xlu1 %v6145_v25, %s4869_s24  ;;  %v7498_v9 = vld [vmem:[#allocation90_spill] sm:$0xff] }
 0x1be   : > { %v6106_v62 = vpop.eup %4445  ;;  %v6111_v15 = vpop.f32.mrf.mxu1  ;;  %4475 = vrcp.f32 %v2144_v41  ;;  %v1897_v31 = vsel %vm1873_vm2, %v5946_v28, %v1758_v46  ;;  %v1990_v41 = vadd.f32 %v1958_v22, %v1442_v43  ;;  %v1927_v22 = vld [vmem:[#allocation9 + $0xa0] sm:$0xff]  ;;  %v1340_v37 = vadd.f32 %v6084_v42, %v967_v55 }
 0x1bf   : > { %v4448_v16 = vpop.eup %4447  ;;  %v6129_v19 = vpop.f32.mrf.mxu0  ;;  %4477 = vpow2.f32 %v3857_v10  ;;  %v1338_v5 = vadd.f32 %v6066_v56, %v965_v38  ;;  %v3859_v56 = vmul.f32 -1.442695, %v1987_v54  ;;  %v1444_v10 = vadd.f32 %v5927_v47, %v1341_v4  ;;  %v1930_v38 = vld [vmem:[#allocation9 + $0xb8] sm:$0xff] }
 0x1c0   : > { %v6125_v2 = vpop.eup %4449  ;;  %v2147_v63 = vadd.f32 1.0, %v4448_v16  ;;  %v1756_v0 = vpop.permute.xlu0 %1755  ;;  %4479 = vtanh.f32 %v1985_v52  ;;  %v970_v43 = vadd.f32 %v6086_v53, %v7498_v9  ;;  %v3862_v53 = vmul.f32 -1.442695, %v1990_v41 }
 0x1c1   : > { %v6131_v17 = vpop.eup %4451  ;;  %v6147_v28 = vpop.f32.mrf.mxu1  ;;  %v1441_v13 = vadd.f32 %v5927_v47, %v1338_v5  ;;  %v1896_v59 = vsel %vm1873_vm2, %v5954_v3, %v1756_v0 }
 0x1c2   : > { %v6137_v18 = vpop.eup %4453  ;;  %4481 = vrcp.f32 %v2147_v63  ;;  %v1762_v46 = vpop.permute.xlu1 %1761  ;;  %v1343_v4 = vadd.f32 %v6102_v7, %v970_v43 }
 0x1c3   : > { %v4456_v49 = vpop.eup %4455  ;;  %4483 = vpow2.f32 %v3860_v1  ;;  %v4256_v16 = vpop.f32.mrf.mxu0  ;;  %v1989_v63 = vadd.f32 %v1957_v35, %v1441_v13  ;;  %v6164_v1 = vsel %vm6121_vm5, %v6021_v50, %v6081_v33  ;;  %v1932_v35 = vld [vmem:[#allocation9 + $0xc8] sm:$0xff]  ;;  %v1899_v0 = vsel %vm1873_vm2, %v5958_v48, %v1762_v46 }
 0x1c4   : > { %v6153_v52 = vpop.eup %4457  ;;  %v2146_v58 = vadd.f32 1.0, %v4456_v49  ;;  %4485 = vtanh.f32 %v1988_v36  ;;  %2328 = vrot.lane.b32.xlu0 %v6164_v1, %s4869_s24  ;;  %v4179_v21 = vpop.f32.mrf.mxu1  ;;  %v1959_v36 = vmul.f32 %v1927_v22, %v1894_v26  ;;  %v1443_v33 = vadd.f32 %v5927_v47, %v1340_v37  ;;  %v7499_v22 = vld [vmem:[#allocation92_spill] sm:$0xff] }
 0x1c5   : > { %v4460_v40 = vpop.eup %4459  ;;  %4487 = vtanh.f32 %v1987_v54  ;;  %v1760_v50 = vpop.permute.xlu0 %1759  ;;  %v1962_v54 = vmul.f32 %v1930_v38, %v1897_v31  ;;  %v1961_v49 = vmul.f32 %v1929_v39, %v1896_v59  ;;  %v6179_v13 = vadd.f32 %v6108_v20, %v1444_v10  ;;  %v7501_v59 = vld [vmem:[#allocation100_spill] sm:$0xff] }
 0x1c6   : > { %v6166_v5 = vpop.eup %4461  ;;  %v2149_v42 = vadd.f32 1.0, %v4460_v40  ;;  %4489 = vpow2.f32 %v3859_v56  ;;  %v1249_v7 = vpop.f32.mrf.mxu0  ;;  %v3861_v26 = vmul.f32 -1.442695, %v1989_v63  ;;  %v969_v43 = vadd.f32 %v6097_v12, %v7499_v22  ;;  %v1934_v22 = vld [vmem:[#allocation9 + $0xd8] sm:$0xff] }
 0x1c7   : > { %v6171_v3 = vpop.eup %4463  ;;  %4491 = vrcp.f32 %v2146_v58  ;;  %v6187_v48 = vsel %vm6121_vm5, %v6028_v29, %v6088_v24  ;;  %v6191_v31 = vmul.f32 %v1932_v35, %v1899_v0  ;;  %v1898_v20 = vsel %vm1873_vm2, %v5962_v8, %v1760_v50  ;;  %v886_v12 = vpop.f32.mrf.mxu1  ;;  %v7500_v24 = vld [vmem:[#allocation96_spill] sm:$0xff]  ;;  %v1931_v0 = vld [vmem:[#allocation9 + $0xc0] sm:$0xff] }
 0x1c8   : > { %v6176_v55 = vpop.eup %4465  ;;  %4493 = vrcp.f32 %v2149_v42  ;;  %v1446_v10 = vadd.f32 %v5927_v47, %v1343_v4  ;;  %2334 = vrot.lane.b32.xlu1 %v6187_v48, %s4869_s24  ;;  %v6200_v37 = vadd.f32 %v1959_v36, %v1443_v33  ;;  %v1342_v29 = vadd.f32 %v6129_v19, %v969_v43  ;;  %v1766_v36 = vpop.permute.xlu1 %1765 }
 0x1c9   : > { %v4468_v9 = vpop.eup %4467  ;;  %4495 = vpow2.f32 %v3862_v53  ;;  %v972_v40 = vadd.f32 %v6111_v15, %v7500_v24  ;;  %v3864_v8 = vmul.f32 -1.442695, %v6179_v13  ;;  %v6210_v39 = vsel %vm6121_vm5, %v6033_v61, %v6104_v60  ;;  %v4259_v53 = vpop.f32.mrf.mxu0 }
 0x1ca   : > { %v6189_v56 = vpop.eup %4469  ;;  %v2148_v46 = vadd.f32 1.0, %v4468_v9  ;;  %4497 = vtanh.f32 %v1990_v41  ;;  %v971_v42 = vadd.f32 %v6147_v28, %v7501_v59  ;;  %v1445_v15 = vadd.f32 %v5927_v47, %v1342_v29  ;;  %2332 = vrot.lane.b32.xlu0 %v6210_v39, %s4869_s24  ;;  %v7502_v28 = vld [vmem:[#allocation104_spill] sm:$0xff]  ;;  %v4182_v33 = vpop.f32.mrf.mxu1 }
 0x1cb   : > { %v6198_v58 = vpop.eup %4471  ;;  %4499 = vpow2.f32 %v3861_v26  ;;  %v1345_v41 = vadd.f32 %v4256_v16, %v972_v40  ;;  %v6219_v61 = vadd.f32 %v1962_v54, %v1446_v10  ;;  %v6225_v60 = vsel %vm6121_vm5, %v6039_v6, %v6125_v2  ;;  %v1259_v43 = vpop.f32.mrf.mxu0  ;;  %v7503_v29 = vld [vmem:[#allocation108_spill] sm:$0xff] }
 0x1cc   : > { %v4474_v38 = vpop.eup %4473  ;;  %4501 = vtanh.f32 %v1989_v63  ;;  %v974_v50 = vadd.f32 %v4179_v21, %v7502_v28  ;;  %v3863_v16 = vmul.f32 -1.442695, %v6200_v37  ;;  %2338 = vrot.lane.b32.xlu1 %v6225_v60, %s4869_s24  ;;  %v1344_v63 = vadd.f32 %v1249_v7, %v971_v42  ;;  %v1764_v42 = vpop.permute.xlu0 %1763 }
 0x1cd   : > { %v6214_v4 = vpop.eup %4475  ;;  %v2151_v19 = vadd.f32 1.0, %v4474_v38  ;;  %4503 = vrcp.f32 %v2148_v46  ;;  %v1901_v6 = vsel %vm1873_vm2, %v5970_v44, %v1766_v36  ;;  %v1448_v2 = vadd.f32 %v5927_v47, %v1345_v41 }
 0x1ce   : > { %v4478_v35 = vpop.eup %4477  ;;  %4505 = vpow2.f32 %v3864_v8  ;;  %v6242_v21 = vsel %vm6121_vm5, %v6041_v32, %v6137_v18  ;;  %v1963_v46 = vmul.f32 %v1931_v0, %v1898_v20  ;;  %v6244_v7 = vadd.f32 %v1961_v49, %v1445_v15  ;;  %v896_v32 = vpop.f32.mrf.mxu1  ;;  %v7504_v15 = vld [vmem:[#allocation112_spill] sm:$0xff] }
 0x1cf   : > { %v6228_v9 = vpop.eup %4479  ;;  %v2150_v26 = vadd.f32 1.0, %v4478_v35  ;;  %4507 = vrcp.f32 %v2151_v19  ;;  %2336 = vrot.lane.b32.xlu0 %v6242_v21, %s4869_s24  ;;  %v973_v44 = vadd.f32 %v886_v12, %v7503_v29  ;;  %v3866_v38 = vmul.f32 -1.442695, %v6219_v61  ;;  %v1770_v20 = vpop.permute.xlu1 %1769  ;;  %v7505_v29 = vld [vmem:[#allocation102_spill] sm:$0xff] }
 0x1d0   : > { %v6233_v54 = vpop.eup %4481  ;;  %v1347_v8 = vadd.f32 %v4259_v53, %v974_v50  ;;  %v1966_v59 = vmul.f32 %v1934_v22, %v1901_v6  ;;  %v1447_v49 = vadd.f32 %v5927_v47, %v1344_v63  ;;  %v6259_v12 = vsel %vm6121_vm5, %v6052_v30, %v6153_v52  ;;  %v4262_v35 = vpop.f32.mrf.mxu0  ;;  %v1936_v22 = vld [vmem:[#allocation9 + $0xe8] sm:$0xff] }
 0x1d1   : > { %v4484_v10 = vpop.eup %4483  ;;  %4509 = vrcp.f32 %v2150_v26  ;;  %v6263_v53 = vadd.f32 %v6191_v31, %v1448_v2  ;;  %2342 = vrot.lane.b32.xlu1 %v6259_v12, %s4869_s24  ;;  %v1346_v36 = vadd.f32 %v1259_v43, %v973_v44  ;;  %v976_v41 = vadd.f32 %v4182_v33, %v7504_v15 }
 0x1d2   : > { %v6249_v24 = vpop.eup %4485  ;;  %v2153_v40 = vadd.f32 1.0, %v4484_v10  ;;  %4511 = vpow2.f32 %v3863_v16  ;;  %v3865_v50 = vmul.f32 -1.442695, %v6244_v7  ;;  %v6273_v30 = vsel %vm6121_vm5, %v6059_v27, %v6171_v3  ;;  %v4185_v16 = vpop.f32.mrf.mxu1 }
 0x1d3   : > { %v6252_v18 = vpop.eup %4487  ;;  %4513 = vtanh.f32 %v6179_v13  ;;  %v1933_v13 = vld [vmem:[#allocation9 + $0xd0] sm:$0xff]  ;;  %v1900_v31 = vsel %vm1873_vm2, %v5981_v11, %v1764_v42  ;;  %v1903_v33 = vsel %vm1873_vm2, %v6026_v23, %v1770_v20  ;;  %v1450_v26 = vadd.f32 %v5927_v47, %v1347_v8  ;;  %2340 = vrot.lane.b32.xlu0 %v6273_v30, %s4869_s24  ;;  %v1269_v10 = vpop.f32.mrf.mxu0 }
 0x1d4   : > { %v4490_v19 = vpop.eup %4489  ;;  %4515 = vrcp.f32 %v2153_v40  ;;  %v6282_v27 = vadd.f32 %v1963_v46, %v1447_v49  ;;  %v975_v3 = vadd.f32 %v896_v32, %v5750_v45  ;;  %v6289_v11 = vsel %vm6121_vm5, %v6063_v34, %v6189_v56  ;;  %v1768_v40 = vpop.permute.xlu0 %1767  ;;  %v7506_v32 = vld [vmem:[#allocation114_spill] sm:$0xff] }
 0x1d5   : > { %v4492_v0 = vpop.eup %4491  ;;  %v2152_v28 = vadd.f32 1.0, %v4490_v19  ;;  %4517 = vpow2.f32 %v3866_v38  ;;  %v3868_v6 = vmul.f32 -1.442695, %v6263_v53  ;;  %v1449_v2 = vadd.f32 %v5927_v47, %v1346_v36  ;;  %2346 = vrot.lane.b32.xlu1 %v6289_v11, %s4869_s24 }
 0x1d6   : > { %v4494_v52 = vpop.eup %4493  ;;  %v1349_v43 = vadd.f32 %v4262_v35, %v976_v41  ;;  %v1869_v45 = vsel %vm1840_vm1, %v5834_v14, %v7505_v29  ;;  %v1965_v44 = vmul.f32 %v1933_v13, %v1900_v31  ;;  %v6304_v34 = vsel %vm6121_vm5, %v6099_v57, %v6214_v4  ;;  %v906_v14 = vpop.f32.mrf.mxu1  ;;  %v7507_v31 = vld [vmem:[#allocation21_spill] sm:$0xff] }
 0x1d7   : > { %v4496_v63 = vpop.eup %4495  ;;  %4519 = vrcp.f32 %v2152_v28  ;;  %v1968_v38 = vmul.f32 %v1936_v22, %v1903_v33  ;;  %v6306_v8 = vadd.f32 %v1966_v59, %v1450_v26  ;;  %v978_v42 = vadd.f32 %v4185_v16, %v7506_v32  ;;  %2344 = vrot.lane.b32.xlu0 %v6304_v34, %s4869_s24  ;;  %v4265_v35 = vpop.f32.mrf.mxu0 }
 0x1d8   : > { %v2155_v23 = vadd.f32 1.0, %v4496_v63  ;;  %v6295_v46 = vpop.eup %4497  ;;  %4521 = vpow2.f32 %v3865_v50  ;;  %v3867_v19 = vmul.f32 -1.442695, %v6282_v27  ;;  %v1348_v36 = vadd.f32 %v1269_v10, %v975_v3  ;;  %v1935_v50 = vld [vmem:[#allocation9 + $0xe0] sm:$0xff]  ;;  %v1774_v13 = vpop.permute.xlu1 %1773 }
 0x1d9   : > { %v4500_v56 = vpop.eup %4499  ;;  %v6318_v57 = vsel %vm6121_vm5, %v6106_v62, %v6233_v54  ;;  %v1902_v59 = vsel %vm1873_vm2, %v1869_v45, %v1768_v40  ;;  %v6321_v15 = vadd.f32 %v1965_v44, %v1449_v2  ;;  %v1452_v41 = vadd.f32 %v5927_v47, %v1349_v43  ;;  %v1772_v43 = vpop.permute.xlu0 %1771 }
 0x1da   : > { %4523 = vrcp.f32 %v2155_v23  ;;  %v6311_v20 = vpop.eup %4501  ;;  %v2154_v49 = vadd.f32 1.0, %v4500_v56  ;;  %2350 = vrot.lane.b32.xlu1 %v6318_v57, %s4869_s24  ;;  %v977_v33 = vadd.f32 %v906_v14, %v7507_v31  ;;  %v6330_v62 = vsel %vm6121_vm5, %v6131_v17, %v4492_v0  ;;  %v7508_v23 = vld [vmem:[#allocation105_spill] sm:$0xff]  ;;  %v1279_v29 = vpop.f32.mrf.mxu0  ;;  %v7511_v14 = vld [vmem:[#allocation24_spill] sm:$0xff] }
 0x1db   : > { %v4504_v4 = vpop.eup %4503  ;;  %4525 = vpow2.f32 %v3868_v6  ;;  %v6335_v54 = vsel %vm6121_vm5, %v6166_v5, %v4494_v52  ;;  %v3870_v63 = vmul.f32 -1.442695, %v6306_v8  ;;  %v1351_v22 = vadd.f32 %v4265_v35, %v978_v42  ;;  %2348 = vrot.lane.b32.xlu0 %v6330_v62, %s4869_s24  ;;  %v7509_v6 = vld [vmem:[#allocation23_spill] sm:$0xff]  ;;  %v7510_v42 = vld [vmem:[#allocation106_spill] sm:$0xff] }
 0x1dc   : > { %v4506_v28 = vpop.eup %4505  ;;  %4527 = vrcp.f32 %v2154_v49  ;;  %v1872_v17 = vsel %vm1840_vm1, %v7509_v6, %v7508_v23  ;;  %v1451_v0 = vadd.f32 %v5927_v47, %v1348_v36  ;;  %v6348_v5 = vsel %vm6121_vm5, %v6176_v55, %v4504_v4  ;;  %v1938_v47 = vld [vmem:[#allocation9 + $0xf8] sm:$0xff]  ;;  %v4659_v49 = vld [vmem:[%s7244_s2] ss:$0 sm:$0xff]  ;;  %v1937_v4 = vld [vmem:[#allocation9 + $0xf0] sm:$0xff] }
 0x1dd   : > { %v4508_v26 = vpop.eup %4507  ;;  %v2157_v16 = vadd.f32 1.0, %v4506_v28  ;;  %4529 = vtanh.f32 %v6200_v37  ;;  %v1967_v52 = vmul.f32 %v1935_v50, %v1902_v59  ;;  %v1905_v2 = vsel %vm1873_vm2, %v1872_v17, %v1774_v13 }
 0x1de   : > { %v4510_v3 = vpop.eup %4509  ;;  %4531 = vpow2.f32 %v3867_v19  ;;  %v6351_v10 = vadd.f32 %v1968_v38, %v1452_v41  ;;  %2354 = vrot.lane.b32.xlu1 %v6335_v54, %s4869_s24  ;;  %v3869_v40 = vmul.f32 -1.442695, %v6321_v15  ;;  %v1350_v56 = vadd.f32 %v1279_v29, %v977_v33 }
 0x1df   : > { %v4512_v37 = vpop.eup %4511  ;;  %4533 = vrcp.f32 %v2157_v16  ;;  %v6359_v55 = vsel %vm6121_vm5, %v6198_v58, %v4508_v26  ;;  %v1871_v38 = vsel %vm1840_vm1, %v7511_v14, %v7510_v42  ;;  %v1454_v19 = vadd.f32 %v4659_v49, %v1351_v22  ;;  %2352 = vrot.lane.b32.xlu0 %v6348_v5, %s4869_s24 }
 0x1e0   : > { %v4514_v45 = vpop.eup %4513  ;;  %v2156_v44 = vadd.f32 1.0, %v4512_v37  ;;  %4535 = vpow2.f32 %v3870_v63  ;;  %v1904_v58 = vsel %vm1873_vm2, %v1871_v38, %v1772_v43  ;;  %v6370_v59 = vadd.f32 %v1967_v52, %v1451_v0 }
 0x1e1   : > { %v4516_v32 = vpop.eup %4515  ;;  %v6375_v41 = vsel %vm6121_vm5, %v6228_v9, %v4510_v3  ;;  %v1970_v50 = vmul.f32 %v1938_v47, %v1905_v2  ;;  %v3872_v13 = vmul.f32 -1.442695, %v6351_v10  ;;  %v1453_v31 = vadd.f32 %v4659_v49, %v1350_v56 }
 0x1e2   : > { %v4518_v36 = vpop.eup %4517  ;;  %4537 = vrcp.f32 %v2156_v44  ;;  %2358 = vrot.lane.b32.xlu1 %v6359_v55, %s4869_s24  ;;  %v6384_v33 = vsel %vm6121_vm5, %v6249_v24, %v4516_v32  ;;  %v1969_v9 = vmul.f32 %v1937_v4, %v1904_v58  ;;  %v3871_v22 = vmul.f32 -1.442695, %v6370_v59 }
 0x1e3   : > { %4539 = vtanh.f32 %v6219_v61  ;;  %v2159_v28 = vadd.f32 1.0, %v4518_v36  ;;  %v6386_v16 = vadd.f32 %v1970_v50, %v1454_v19  ;;  %2356 = vrot.lane.b32.xlu0 %v6375_v41, %s4869_s24 }
 0x1e4   : > { %v4520_v35 = vpop.eup %4519  ;;  %4541 = vpow2.f32 %v3869_v40  ;;  %v6399_v23 = vadd.f32 %v1969_v9, %v1453_v31 }
 0x1e5   : > { %v4522_v26 = vpop.eup %4521  ;;  %4543 = vrcp.f32 %v2159_v28  ;;  %v6395_v3 = vsel %vm6121_vm5, %v6252_v18, %v4520_v35  ;;  %v3874_v18 = vmul.f32 -1.442695, %v6386_v16 }
 0x1e6   : > { %4545 = vtanh.f32 %v6244_v7  ;;  %v2158_v63 = vadd.f32 1.0, %v4522_v26  ;;  %2362 = vrot.lane.b32.xlu1 %v6384_v33, %s4869_s24  ;;  %v3873_v2 = vmul.f32 -1.442695, %v6399_v23 }
 0x1e7   : > { %v4524_v61 = vpop.eup %4523  ;;  %4547 = vpow2.f32 %v3872_v13  ;;  %2360 = vrot.lane.b32.xlu0 %v6395_v3, %s4869_s24 }
 0x1e8   : > { %v4526_v24 = vpop.eup %4525  ;;  %4549 = vrcp.f32 %v2158_v63  ;;  %v6404_v7 = vsel %vm6121_vm5, %v6295_v46, %v4524_v61 }
 0x1e9   : > { %v4528_v6 = vpop.eup %4527  ;;  %4551 = vtanh.f32 %v6263_v53  ;;  %v2161_v17 = vadd.f32 1.0, %v4526_v24 }
 0x1ea   : > { %v4530_v0 = vpop.eup %4529  ;;  %4553 = vpow2.f32 %v3871_v22  ;;  %v6413_v37 = vsel %vm6121_vm5, %v6311_v20, %v4528_v6  ;;  %2366 = vrot.lane.b32.xlu1 %v6404_v7, %s4869_s24 }
 0x1eb   : > { %v4532_v52 = vpop.eup %4531  ;;  %4555 = vrcp.f32 %v2161_v17  ;;  %2364 = vrot.lane.b32.xlu0 %v6413_v37, %s4869_s24 }
 0x1ec   : > { %v4534_v46 = vpop.eup %4533  ;;  %4557 = vtanh.f32 %v6282_v27  ;;  %v2160_v53 = vadd.f32 1.0, %v4532_v52 }
 0x1ed   : > { %4559 = vpow2.f32 %v3874_v18  ;;  %v6423_v43 = vsel %vm6121_vm5, %v4514_v45, %v4534_v46  ;;  %v4536_v20 = vpop.eup %4535 }
 0x1ee   : > { %4561 = vrcp.f32 %v2160_v53  ;;  %v2163_v44 = vadd.f32 1.0, %v4536_v20  ;;  %2370 = vrot.lane.b32.xlu1 %v6423_v43, %s4869_s24 }
 0x1ef   : > { %v4538_v29 = vpop.eup %4537  ;;  %4563 = vtanh.f32 %v6306_v8 }
 0x1f0   : > { %v4540_v27 = vpop.eup %4539  ;;  %4565 = vpow2.f32 %v3873_v2  ;;  %v6430_v47 = vsel %vm6121_vm5, %v4530_v0, %v4538_v29 }
 0x1f1   : > { %v4542_v40 = vpop.eup %4541  ;;  %4567 = vrcp.f32 %v2163_v44  ;;  %2368 = vrot.lane.b32.xlu0 %v6430_v47, %s4869_s24 }
 0x1f2   : > { %v4544_v45 = vpop.eup %4543  ;;  %v2162_v56 = vadd.f32 1.0, %v4542_v40  ;;  %4569 = vtanh.f32 %v6321_v15 }
 0x1f3   : > { %v4546_v32 = vpop.eup %4545  ;;  %v6437_v8 = vsel %vm6121_vm5, %v4540_v27, %v4544_v45 }
 0x1f4   : > { %v4548_v42 = vpop.eup %4547  ;;  %4571 = vrcp.f32 %v2162_v56  ;;  %2374 = vrot.lane.b32.xlu1 %v6437_v8, %s4869_s24 }
 0x1f5   : > { %v4550_v14 = vpop.eup %4549  ;;  %v2165_v38 = vadd.f32 1.0, %v4548_v42  ;;  %4573 = vtanh.f32 %v6351_v10 }
 0x1f6   : > { %v4552_v49 = vpop.eup %4551  ;;  %v6444_v19 = vsel %vm6121_vm5, %v4546_v32, %v4550_v14 }
 0x1f7   : > { %v4554_v36 = vpop.eup %4553  ;;  %4575 = vrcp.f32 %v2165_v38  ;;  %2372 = vrot.lane.b32.xlu0 %v6444_v19, %s4869_s24 }
 0x1f8   : > { %v4556_v15 = vpop.eup %4555  ;;  %v2164_v4 = vadd.f32 1.0, %v4554_v36  ;;  %4577 = vtanh.f32 %v6370_v59 }
 0x1f9   : > { %v4558_v58 = vpop.eup %4557  ;;  %v6451_v35 = vsel %vm6121_vm5, %v4552_v49, %v4556_v15 }
 0x1fa   : > { %v4560_v28 = vpop.eup %4559  ;;  %4579 = vrcp.f32 %v2164_v4  ;;  %2378 = vrot.lane.b32.xlu1 %v6451_v35, %s4869_s24 }
 0x1fb   : > { %v4562_v10 = vpop.eup %4561  ;;  %v2167_v50 = vadd.f32 1.0, %v4560_v28  ;;  %4581 = vtanh.f32 %v6386_v16 }
 0x1fc   : > { %v4564_v13 = vpop.eup %4563  ;;  %v6458_v31 = vsel %vm6121_vm5, %v4558_v58, %v4562_v10 }
 0x1fd   : > { %v4566_v26 = vpop.eup %4565  ;;  %4583 = vrcp.f32 %v2167_v50  ;;  %2376 = vrot.lane.b32.xlu0 %v6458_v31, %s4869_s24 }
 0x1fe   : > { %v4568_v59 = vpop.eup %4567  ;;  %v2166_v9 = vadd.f32 1.0, %v4566_v26  ;;  %4585 = vtanh.f32 %v6399_v23 }
 0x1ff   : > { %v6465_v61 = vsel %vm6121_vm5, %v4564_v13, %v4568_v59  ;;  %v4570_v63 = vpop.eup %4569 }
 0x200   : > { %4587 = vrcp.f32 %v2166_v9  ;;  %2382 = vrot.lane.b32.xlu1 %v6465_v61, %s4869_s24 }
 0x201   : > { %v4572_v16 = vpop.eup %4571 }
 0x202   : > { %v6471_v22 = vsel %vm6121_vm5, %v4570_v63, %v4572_v16  ;;  %v4574_v24 = vpop.eup %4573 }
 0x203   : > { %2380 = vrot.lane.b32.xlu0 %v6471_v22, %s4869_s24 }
 0x204   : > { %v4576_v6 = vpop.eup %4575 }
 0x205   : > { %v6477_v23 = vsel %vm6121_vm5, %v4574_v24, %v4576_v6  ;;  %v4578_v17 = vpop.eup %4577 }
 0x206   : > { %2386 = vrot.lane.b32.xlu1 %v6477_v23, %s4869_s24 }
 0x207   : > { %v4580_v18 = vpop.eup %4579 }
 0x208   : > { %v6483_v0 = vsel %vm6121_vm5, %v4578_v17, %v4580_v18  ;;  %v4582_v52 = vpop.eup %4581 }
 0x209   : > { %2384 = vrot.lane.b32.xlu0 %v6483_v0, %s4869_s24 }
 0x20a   : > { %v4584_v46 = vpop.eup %4583 }
 0x20b   : > { %v6489_v53 = vsel %vm6121_vm5, %v4582_v52, %v4584_v46  ;;  %v4586_v2 = vpop.eup %4585 }
 0x20c   : > { %2390 = vrot.lane.b32.xlu1 %v6489_v53, %s4869_s24 }
 0x20d   : > { %v4588_v20 = vpop.eup %4587 }
 0x20e   : > { %v6495_v29 = vsel %vm6121_vm5, %v4586_v2, %v4588_v20 }
 0x20f   : > { %2388 = vrot.lane.b32.xlu0 %v6495_v29, %s4869_s24 }
 0x22f   : > { %v2331_v44 = vpop.permute.xlu1 %2330 }
 0x230   : > { %v2425_v27 = vmul.f32 %v2331_v44, %v6145_v25 }
 0x232   : > { %2490 = vrot.lane.b32.xlu1 %v2425_v27, %s4868_s15 }
 0x236   : > { %v2329_v40 = vpop.permute.xlu0 %2328 }
 0x237   : > { %v2424_v45 = vmul.f32 %v2329_v40, %v6164_v1 }
 0x239   : > { %2488 = vrot.lane.b32.xlu0 %v2424_v45, %s4868_s15 }
 0x23a   : > { %v2335_v56 = vpop.permute.xlu1 %2334 }
 0x23b   : > { %v2427_v32 = vmul.f32 %v2335_v56, %v6187_v48 }
 0x23c   : > { %v2333_v42 = vpop.permute.xlu0 %2332 }
 0x23d   : > { %2494 = vrot.lane.b32.xlu1 %v2427_v32, %s4868_s15  ;;  %v2426_v51 = vmul.f32 %v2333_v42, %v6210_v39 }
 0x23e   : > { %v2339_v14 = vpop.permute.xlu1 %2338 }
 0x23f   : > { %v2429_v38 = vmul.f32 %v2339_v14, %v6225_v60  ;;  %2492 = vrot.lane.b32.xlu0 %v2426_v51, %s4868_s15 }
 0x241   : > { %v2337_v49 = vpop.permute.xlu0 %2336  ;;  %2498 = vrot.lane.b32.xlu1 %v2429_v38, %s4868_s15 }
 0x242   : > { %v2428_v36 = vmul.f32 %v2337_v49, %v6242_v21 }
 0x243   : > { %v2343_v15 = vpop.permute.xlu1 %2342 }
 0x244   : > { %2496 = vrot.lane.b32.xlu0 %v2428_v36, %s4868_s15  ;;  %v2431_v4 = vmul.f32 %v2343_v15, %v6259_v12 }
 0x245   : > { %v2341_v58 = vpop.permute.xlu0 %2340 }
 0x246   : > { %v2430_v28 = vmul.f32 %v2341_v58, %v6273_v30  ;;  %2502 = vrot.lane.b32.xlu1 %v2431_v4, %s4868_s15 }
 0x247   : > { %v2347_v10 = vpop.permute.xlu1 %2346 }
 0x248   : > { %v2433_v50 = vmul.f32 %v2347_v10, %v6289_v11  ;;  %2500 = vrot.lane.b32.xlu0 %v2430_v28, %s4868_s15 }
 0x249   : > { %v2345_v13 = vpop.permute.xlu0 %2344 }
 0x24a   : > { %v2432_v26 = vmul.f32 %v2345_v13, %v6304_v34  ;;  %2506 = vrot.lane.b32.xlu1 %v2433_v50, %s4868_s15 }
 0x24c   : > { %v2351_v59 = vpop.permute.xlu1 %2350  ;;  %2504 = vrot.lane.b32.xlu0 %v2432_v26, %s4868_s15 }
 0x24d   : > { %v2435_v9 = vmul.f32 %v2351_v59, %v6318_v57  ;;  %v2349_v63 = vpop.permute.xlu0 %2348 }
 0x24e   : > { %v2434_v16 = vmul.f32 %v2349_v63, %v6330_v62 }
 0x24f   : > { %2510 = vrot.lane.b32.xlu1 %v2435_v9, %s4868_s15 }
 0x250   : > { %v2355_v24 = vpop.permute.xlu1 %2354  ;;  %2508 = vrot.lane.b32.xlu0 %v2434_v16, %s4868_s15 }
 0x251   : > { %v2437_v6 = vmul.f32 %v2355_v24, %v6335_v54  ;;  %v2353_v17 = vpop.permute.xlu0 %2352 }
 0x252   : > { %v2436_v18 = vmul.f32 %v2353_v17, %v6348_v5 }
 0x253   : > { %2514 = vrot.lane.b32.xlu1 %v2437_v6, %s4868_s15 }
 0x254   : > { %v2359_v52 = vpop.permute.xlu1 %2358  ;;  %2512 = vrot.lane.b32.xlu0 %v2436_v18, %s4868_s15 }
 0x255   : > { %v2439_v46 = vmul.f32 %v2359_v52, %v6359_v55  ;;  %v2357_v2 = vpop.permute.xlu0 %2356 }
 0x256   : > { %v2438_v20 = vmul.f32 %v2357_v2, %v6375_v41 }
 0x257   : > { %2518 = vrot.lane.b32.xlu1 %v2439_v46, %s4868_s15 }
 0x258   : > { %v2363_v44 = vpop.permute.xlu1 %2362  ;;  %2516 = vrot.lane.b32.xlu0 %v2438_v20, %s4868_s15 }
 0x259   : > { %v2441_v27 = vmul.f32 %v2363_v44, %v6384_v33  ;;  %v2361_v40 = vpop.permute.xlu0 %2360  ;;  %v7512_v44 = vld [vmem:[#allocation28_spill] sm:$0xff] }
 0x25a   : > { %v2440_v45 = vmul.f32 %v2361_v40, %v6395_v3 }
 0x25b   : > { %2522 = vrot.lane.b32.xlu1 %v2441_v27, %s4868_s15  ;;  %v2265_v27 = vmul.f32 %v6145_v25, %v7512_v44 }
 0x25c   : > { %v2367_v56 = vpop.permute.xlu1 %2366  ;;  %2520 = vrot.lane.b32.xlu0 %v2440_v45, %s4868_s15 }
 0x25d   : > { %v2443_v32 = vmul.f32 %v2367_v56, %v6404_v7  ;;  %v2365_v42 = vpop.permute.xlu0 %2364  ;;  %v7513_v56 = vld [vmem:[#allocation26_spill] sm:$0xff] }
 0x25e   : > { %v2442_v51 = vmul.f32 %v2365_v42, %v6413_v37 }
 0x25f   : > { %2526 = vrot.lane.b32.xlu1 %v2443_v32, %s4868_s15  ;;  %v2264_v32 = vmul.f32 %v6164_v1, %v7513_v56 }
 0x260   : > { %v2371_v14 = vpop.permute.xlu1 %2370  ;;  %2524 = vrot.lane.b32.xlu0 %v2442_v51, %s4868_s15 }
 0x261   : > { %v2445_v38 = vmul.f32 %v2371_v14, %v6423_v43  ;;  %v7514_v14 = vld [vmem:[#allocation27_spill] sm:$0xff] }
 0x263   : > { %v2369_v49 = vpop.permute.xlu0 %2368  ;;  %2530 = vrot.lane.b32.xlu1 %v2445_v38, %s4868_s15  ;;  %v2267_v38 = vmul.f32 %v6187_v48, %v7514_v14  ;;  %v7521_v14 = vld [vmem:[#allocation34_spill] sm:$0xff] }
 0x264   : > { %v2444_v36 = vmul.f32 %v2369_v49, %v6430_v47 }
 0x266   : > { %v2375_v15 = vpop.permute.xlu1 %2374  ;;  %2528 = vrot.lane.b32.xlu0 %v2444_v36, %s4868_s15 }
 0x267   : > { %v2447_v4 = vmul.f32 %v2375_v15, %v6437_v8  ;;  %v7515_v15 = vld [vmem:[#allocation25_spill] sm:$0xff] }
 0x269   : > { %v2373_v58 = vpop.permute.xlu0 %2372  ;;  %2534 = vrot.lane.b32.xlu1 %v2447_v4, %s4868_s15  ;;  %v2266_v4 = vmul.f32 %v6210_v39, %v7515_v15 }
 0x26a   : > { %v2446_v28 = vmul.f32 %v2373_v58, %v6444_v19 }
 0x26c   : > { %v2379_v10 = vpop.permute.xlu1 %2378  ;;  %2532 = vrot.lane.b32.xlu0 %v2446_v28, %s4868_s15 }
 0x26d   : > { %v2449_v50 = vmul.f32 %v2379_v10, %v6451_v35  ;;  %v7516_v10 = vld [vmem:[#allocation29_spill] sm:$0xff] }
 0x26f   : > { %v2377_v13 = vpop.permute.xlu0 %2376  ;;  %2538 = vrot.lane.b32.xlu1 %v2449_v50, %s4868_s15  ;;  %v2269_v50 = vmul.f32 %v6225_v60, %v7516_v10 }
 0x270   : > { %v2448_v26 = vmul.f32 %v2377_v13, %v6458_v31 }
 0x272   : > { %v2383_v59 = vpop.permute.xlu1 %2382  ;;  %2536 = vrot.lane.b32.xlu0 %v2448_v26, %s4868_s15 }
 0x273   : > { %v2451_v9 = vmul.f32 %v2383_v59, %v6465_v61  ;;  %v7517_v59 = vld [vmem:[#allocation30_spill] sm:$0xff] }
 0x275   : > { %v2381_v63 = vpop.permute.xlu0 %2380  ;;  %2542 = vrot.lane.b32.xlu1 %v2451_v9, %s4868_s15  ;;  %v2268_v9 = vmul.f32 %v6242_v21, %v7517_v59 }
 0x276   : > { %v2450_v16 = vmul.f32 %v2381_v63, %v6471_v22 }
 0x278   : > { %v2387_v24 = vpop.permute.xlu1 %2386  ;;  %2540 = vrot.lane.b32.xlu0 %v2450_v16, %s4868_s15 }
 0x279   : > { %v2453_v6 = vmul.f32 %v2387_v24, %v6477_v23 }
 0x27b   : > { %v2385_v17 = vpop.permute.xlu0 %2384  ;;  %2546 = vrot.lane.b32.xlu1 %v2453_v6, %s4868_s15  ;;  %v7518_v6 = vld [vmem:[#allocation31_spill] sm:$0xff] }
 0x27c   : > { %v2452_v18 = vmul.f32 %v2385_v17, %v6483_v0  ;;  %v2271_v17 = vmul.f32 %v6259_v12, %v7518_v6 }
 0x27e   : > { %v2391_v52 = vpop.permute.xlu1 %2390  ;;  %2544 = vrot.lane.b32.xlu0 %v2452_v18, %s4868_s15 }
 0x27f   : > { %v2455_v46 = vmul.f32 %v2391_v52, %v6489_v53 }
 0x281   : > { %v2389_v2 = vpop.permute.xlu0 %2388  ;;  %2550 = vrot.lane.b32.xlu1 %v2455_v46, %s4868_s15  ;;  %v7519_v46 = vld [vmem:[#allocation32_spill] sm:$0xff] }
 0x282   : > { %v2454_v20 = vmul.f32 %v2389_v2, %v6495_v29  ;;  %v2270_v2 = vmul.f32 %v6273_v30, %v7519_v46 }
 0x284   : > { %2548 = vrot.lane.b32.xlu0 %v2454_v20, %s4868_s15 }
 0x2a4   : > { %v2491_v40 = vpop.permute.xlu1 %2490 }
 0x2a5   : > { %v6565_v45 = vadd.f32 %v2491_v40, %v2265_v27  ;;  %v7520_v40 = vld [vmem:[#allocation33_spill] sm:$0xff] }
 0x2a6   : > { %v2273_v56 = vmul.f32 %v6289_v11, %v7520_v40  ;;  %v7525_v40 = vld [vmem:[#allocation22_spill] sm:$0xff] }
 0x2a7   : > { %4589 = vtanh.f32 %v6565_v45 }
 0x2ab   : > { %v2489_v42 = vpop.permute.xlu0 %2488 }
 0x2ac   : > { %v6570_v51 = vadd.f32 %v2489_v42, %v2264_v32 }
 0x2ae   : > { %4591 = vtanh.f32 %v6570_v51 }
 0x2af   : > { %v2495_v49 = vpop.permute.xlu1 %2494 }
 0x2b0   : > { %v6575_v36 = vadd.f32 %v2495_v49, %v2267_v38  ;;  %v2272_v38 = vmul.f32 %v6304_v34, %v7521_v14 }
 0x2b1   : > { %v2493_v58 = vpop.permute.xlu0 %2492 }
 0x2b2   : > { %4593 = vtanh.f32 %v6575_v36  ;;  %v6580_v28 = vadd.f32 %v2493_v58, %v2266_v4  ;;  %v7522_v58 = vld [vmem:[#allocation35_spill] sm:$0xff] }
 0x2b3   : > { %v2499_v13 = vpop.permute.xlu1 %2498  ;;  %v2275_v10 = vmul.f32 %v6318_v57, %v7522_v58 }
 0x2b4   : > { %4595 = vtanh.f32 %v6580_v28  ;;  %v6585_v26 = vadd.f32 %v2499_v13, %v2269_v50  ;;  %v4590_v24 = vpop.eup %4589 }
 0x2b5   : > { %2682 = vrot.lane.b32.xlu1 %v4590_v24, %s4869_s24 }
 0x2b6   : > { %v2497_v63 = vpop.permute.xlu0 %2496  ;;  %4597 = vtanh.f32 %v6585_v26 }
 0x2b7   : > { %v6590_v16 = vadd.f32 %v2497_v63, %v2268_v9  ;;  %v7523_v9 = vld [vmem:[#allocation36_spill] sm:$0xff] }
 0x2b8   : > { %v2503_v18 = vpop.permute.xlu1 %2502  ;;  %v2274_v63 = vmul.f32 %v6330_v62, %v7523_v9 }
 0x2b9   : > { %4599 = vtanh.f32 %v6590_v16  ;;  %v6596_v52 = vadd.f32 %v2503_v18, %v2271_v17  ;;  %v7524_v18 = vld [vmem:[#allocation19_spill] sm:$0xff] }
 0x2ba   : > { %v2501_v44 = vpop.permute.xlu0 %2500  ;;  %v2277_v46 = vmul.f32 %v6335_v54, %v7524_v18 }
 0x2bb   : > { %v4592_v20 = vpop.eup %4591  ;;  %4601 = vtanh.f32 %v6596_v52  ;;  %v6601_v27 = vadd.f32 %v2501_v44, %v2270_v2 }
 0x2bc   : > { %2680 = vrot.lane.b32.xlu0 %v4592_v20, %s4869_s24  ;;  %v2507_v32 = vpop.permute.xlu1 %2506 }
 0x2bd   : > { %4603 = vtanh.f32 %v6601_v27  ;;  %v6607_v42 = vadd.f32 %v2507_v32, %v2273_v56  ;;  %v2276_v56 = vmul.f32 %v6348_v5, %v7525_v40  ;;  %v7529_v40 = vld [vmem:[#allocation39_spill] sm:$0xff] }
 0x2be   : > { %v2505_v15 = vpop.permute.xlu0 %2504 }
 0x2bf   : > { %v4594_v49 = vpop.eup %4593  ;;  %4605 = vtanh.f32 %v6607_v42  ;;  %v6612_v4 = vadd.f32 %v2505_v15, %v2272_v38  ;;  %v7526_v38 = vld [vmem:[#allocation20_spill] sm:$0xff] }
 0x2c0   : > { %2686 = vrot.lane.b32.xlu1 %v4594_v49, %s4869_s24  ;;  %v2279_v49 = vmul.f32 %v6359_v55, %v7526_v38 }
 0x2c1   : > { %v2511_v50 = vpop.permute.xlu1 %2510  ;;  %v4596_v13 = vpop.eup %4595  ;;  %4607 = vtanh.f32 %v6612_v4 }
 0x2c2   : > { %v6618_v59 = vadd.f32 %v2511_v50, %v2275_v10  ;;  %v2509_v24 = vpop.permute.xlu0 %2508  ;;  %2684 = vrot.lane.b32.xlu0 %v4596_v13, %s4869_s24  ;;  %v7527_v50 = vld [vmem:[#allocation37_spill] sm:$0xff] }
 0x2c3   : > { %v4598_v6 = vpop.eup %4597  ;;  %v6624_v17 = vadd.f32 %v2509_v24, %v2274_v63  ;;  %v2278_v13 = vmul.f32 %v6375_v41, %v7527_v50 }
 0x2c4   : > { %4609 = vtanh.f32 %v6618_v59  ;;  %2690 = vrot.lane.b32.xlu1 %v4598_v6, %s4869_s24  ;;  %v7528_v6 = vld [vmem:[#allocation38_spill] sm:$0xff] }
 0x2c5   : > { %v2515_v2 = vpop.permute.xlu1 %2514  ;;  %4611 = vtanh.f32 %v6624_v17  ;;  %v2281_v18 = vmul.f32 %v6384_v33, %v7528_v6 }
 0x2c6   : > { %v4600_v20 = vpop.eup %4599  ;;  %v6630_v44 = vadd.f32 %v2515_v2, %v2277_v46  ;;  %v2513_v32 = vpop.permute.xlu0 %2512 }
 0x2c7   : > { %2688 = vrot.lane.b32.xlu0 %v4600_v20, %s4869_s24  ;;  %v6636_v14 = vadd.f32 %v2513_v32, %v2276_v56  ;;  %v2280_v56 = vmul.f32 %v6395_v3, %v7529_v40  ;;  %v7534_v40 = vld [vmem:[#allocation42_spill] sm:$0xff] }
 0x2c8   : > { %4613 = vtanh.f32 %v6630_v44  ;;  %v4602_v15 = vpop.eup %4601 }
 0x2c9   : > { %v2519_v58 = vpop.permute.xlu1 %2518  ;;  %4615 = vtanh.f32 %v6636_v14  ;;  %2694 = vrot.lane.b32.xlu1 %v4602_v15, %s4869_s24  ;;  %v7531_v15 = vld [vmem:[#allocation40_spill] sm:$0xff] }
 0x2ca   : > { %v6641_v10 = vadd.f32 %v2519_v58, %v2279_v49  ;;  %v4604_v9 = vpop.eup %4603  ;;  %v2517_v63 = vpop.permute.xlu0 %2516  ;;  %v2283_v58 = vmul.f32 %v6404_v7, %v7531_v15 }
 0x2cb   : > { %v6647_v24 = vadd.f32 %v2517_v63, %v2278_v13  ;;  %2692 = vrot.lane.b32.xlu0 %v4604_v9, %s4869_s24  ;;  %v7532_v63 = vld [vmem:[#allocation41_spill] sm:$0xff] }
 0x2cc   : > { %4617 = vtanh.f32 %v6641_v10  ;;  %v4606_v46 = vpop.eup %4605  ;;  %v2282_v6 = vmul.f32 %v6413_v37, %v7532_v63 }
 0x2cd   : > { %v2523_v2 = vpop.permute.xlu1 %2522  ;;  %4619 = vtanh.f32 %v6647_v24  ;;  %2698 = vrot.lane.b32.xlu1 %v4606_v46, %s4869_s24 }
 0x2ce   : > { %v6653_v20 = vadd.f32 %v2523_v2, %v2281_v18  ;;  %v4608_v32 = vpop.eup %4607  ;;  %v2521_v38 = vpop.permute.xlu0 %2520 }
 0x2cf   : > { %v6659_v49 = vadd.f32 %v2521_v38, %v2280_v56  ;;  %2696 = vrot.lane.b32.xlu0 %v4608_v32, %s4869_s24  ;;  %v2285_v56 = vmul.f32 %v6423_v43, %v7534_v40 }
 0x2d0   : > { %4621 = vtanh.f32 %v6653_v20 }
 0x2d1   : > { %7530 = vst [vmem:[#allocation54_spill] sm:$0xff] %v6659_v49  ;;  %v4610_v50 = vpop.eup %4609  ;;  %v2527_v13 = vpop.permute.xlu1 %2526  ;;  %4623 = vtanh.f32 %v6659_v49  ;;  %v7540_v49 = vld [vmem:[#allocation46_spill] sm:$0xff] }
 0x2d2   : > { %v6665_v9 = vadd.f32 %v2527_v13, %v2283_v58  ;;  %2702 = vrot.lane.b32.xlu1 %v4610_v50, %s4869_s24  ;;  %v4612_v18 = vpop.eup %4611  ;;  %v2525_v46 = vpop.permute.xlu0 %2524  ;;  %v7535_v58 = vld [vmem:[#allocation43_spill] sm:$0xff] }
 0x2d3   : > { %v6671_v2 = vadd.f32 %v2525_v46, %v2282_v6  ;;  %2700 = vrot.lane.b32.xlu0 %v4612_v18, %s4869_s24  ;;  %v2284_v50 = vmul.f32 %v6430_v47, %v7535_v58  ;;  %v7536_v46 = vld [vmem:[#allocation44_spill] sm:$0xff]  ;;  %v7538_v58 = vld [vmem:[#allocation45_spill] sm:$0xff] }
 0x2d4   : > { %4625 = vtanh.f32 %v6665_v9  ;;  %v2287_v40 = vmul.f32 %v6437_v8, %v7536_v46 }
 0x2d5   : > { %7533 = vst [vmem:[#allocation55_spill] sm:$0xff] %v6671_v2  ;;  %v4614_v32 = vpop.eup %4613  ;;  %v2531_v38 = vpop.permute.xlu1 %2530  ;;  %4627 = vtanh.f32 %v6671_v2  ;;  %v2286_v2 = vmul.f32 %v6444_v19, %v7538_v58 }
 0x2d6   : > { %v6677_v15 = vadd.f32 %v2531_v38, %v2285_v56  ;;  %2706 = vrot.lane.b32.xlu1 %v4614_v32, %s4869_s24  ;;  %v4616_v13 = vpop.eup %4615 }
 0x2d7   : > { %2704 = vrot.lane.b32.xlu0 %v4616_v13, %s4869_s24 }
 0x2d8   : > { %v2529_v63 = vpop.permute.xlu0 %2528  ;;  %4629 = vtanh.f32 %v6677_v15 }
 0x2d9   : > { %v6683_v6 = vadd.f32 %v2529_v63, %v2284_v50  ;;  %v4618_v18 = vpop.eup %4617 }
 0x2da   : > { %2710 = vrot.lane.b32.xlu1 %v4618_v18, %s4869_s24  ;;  %v4620_v32 = vpop.eup %4619  ;;  %v2289_v18 = vmul.f32 %v6451_v35, %v7540_v49 }
 0x2db   : > { %4631 = vtanh.f32 %v6683_v6  ;;  %v2535_v56 = vpop.permute.xlu1 %2534  ;;  %2708 = vrot.lane.b32.xlu0 %v4620_v32, %s4869_s24  ;;  %v7542_v32 = vld [vmem:[#allocation47_spill] sm:$0xff] }
 0x2dc   : > { %v6690_v38 = vadd.f32 %v2535_v56, %v2287_v40 }
 0x2dd   : > { %v4622_v50 = vpop.eup %4621 }
 0x2de   : > { %7537 = vst [vmem:[#allocation56_spill] sm:$0xff] %v6690_v38  ;;  %4633 = vtanh.f32 %v6690_v38  ;;  %v2533_v13 = vpop.permute.xlu0 %2532  ;;  %2714 = vrot.lane.b32.xlu1 %v4622_v50, %s4869_s24  ;;  %v4624_v46 = vpop.eup %4623  ;;  %v2288_v38 = vmul.f32 %v6458_v31, %v7542_v32 }
 0x2df   : > { %v6696_v63 = vadd.f32 %v2533_v13, %v2286_v2  ;;  %2712 = vrot.lane.b32.xlu0 %v4624_v46, %s4869_s24 }
 0x2e1   : > { %7539 = vst [vmem:[#allocation57_spill] sm:$0xff] %v6696_v63  ;;  %4635 = vtanh.f32 %v6696_v63  ;;  %v2539_v40 = vpop.permute.xlu1 %2538  ;;  %v4626_v56 = vpop.eup %4625  ;;  %v7544_v63 = vld [vmem:[#allocation48_spill] sm:$0xff] }
 0x2e2   : > { %v6703_v58 = vadd.f32 %v2539_v40, %v2289_v18  ;;  %2718 = vrot.lane.b32.xlu1 %v4626_v56, %s4869_s24  ;;  %v4628_v2 = vpop.eup %4627  ;;  %v2291_v46 = vmul.f32 %v6465_v61, %v7544_v63  ;;  %v7546_v56 = vld [vmem:[#allocation49_spill] sm:$0xff]  ;;  %v7548_v63 = vld [vmem:[#allocation50_spill] sm:$0xff] }
 0x2e3   : > { %2716 = vrot.lane.b32.xlu0 %v4628_v2, %s4869_s24 }
 0x2e4   : > { %7541 = vst [vmem:[#allocation58_spill] sm:$0xff] %v6703_v58  ;;  %4637 = vtanh.f32 %v6703_v58  ;;  %v2537_v50 = vpop.permute.xlu0 %2536  ;;  %v2290_v58 = vmul.f32 %v6471_v22, %v7546_v56  ;;  %v7550_v56 = vld [vmem:[#allocation51_spill] sm:$0xff] }
 0x2e5   : > { %v6709_v13 = vadd.f32 %v2537_v50, %v2288_v38  ;;  %v4630_v49 = vpop.eup %4629 }
 0x2e6   : > { %2722 = vrot.lane.b32.xlu1 %v4630_v49, %s4869_s24 }
 0x2e7   : > { %7543 = vst [vmem:[#allocation59_spill] sm:$0xff] %v6709_v13  ;;  %4639 = vtanh.f32 %v6709_v13  ;;  %v2543_v18 = vpop.permute.xlu1 %2542  ;;  %v2293_v13 = vmul.f32 %v6477_v23, %v7548_v63  ;;  %v7551_v63 = vld [vmem:[#allocation52_spill] sm:$0xff] }
 0x2e8   : > { %v4632_v40 = vpop.eup %4631  ;;  %v6716_v32 = vadd.f32 %v2543_v18, %v2291_v46 }
 0x2e9   : > { %2720 = vrot.lane.b32.xlu0 %v4632_v40, %s4869_s24  ;;  %v2292_v40 = vmul.f32 %v6483_v0, %v7550_v56  ;;  %v7552_v56 = vld [vmem:[#allocation53_spill] sm:$0xff] }
 0x2ea   : > { %7545 = vst [vmem:[#allocation60_spill] sm:$0xff] %v6716_v32  ;;  %4641 = vtanh.f32 %v6716_v32  ;;  %v2541_v38 = vpop.permute.xlu0 %2540 }
 0x2eb   : > { %v4634_v2 = vpop.eup %4633  ;;  %v6722_v50 = vadd.f32 %v2541_v38, %v2290_v58 }
 0x2ec   : > { %2726 = vrot.lane.b32.xlu1 %v4634_v2, %s4869_s24  ;;  %v2295_v2 = vmul.f32 %v6489_v53, %v7551_v63 }
 0x2ed   : > { %7547 = vst [vmem:[#allocation61_spill] sm:$0xff] %v6722_v50  ;;  %4643 = vtanh.f32 %v6722_v50  ;;  %v2547_v49 = vpop.permute.xlu1 %2546 }
 0x2ee   : > { %v4636_v46 = vpop.eup %4635  ;;  %v6728_v18 = vadd.f32 %v2547_v49, %v2293_v13 }
 0x2ef   : > { %2724 = vrot.lane.b32.xlu0 %v4636_v46, %s4869_s24  ;;  %v2294_v46 = vmul.f32 %v6495_v29, %v7552_v56 }
 0x2f0   : > { %7549 = vst [vmem:[#allocation62_spill] sm:$0xff] %v6728_v18  ;;  %4645 = vtanh.f32 %v6728_v18  ;;  %v2545_v58 = vpop.permute.xlu0 %2544 }
 0x2f1   : > { %v4638_v38 = vpop.eup %4637  ;;  %v6734_v32 = vadd.f32 %v2545_v58, %v2292_v40 }
 0x2f2   : > { %2730 = vrot.lane.b32.xlu1 %v4638_v38, %s4869_s24 }
 0x2f3   : > { %4647 = vtanh.f32 %v6734_v32  ;;  %v2551_v13 = vpop.permute.xlu1 %2550 }
 0x2f4   : > { %v4640_v49 = vpop.eup %4639  ;;  %v6740_v50 = vadd.f32 %v2551_v13, %v2295_v2 }
 0x2f5   : > { %2728 = vrot.lane.b32.xlu0 %v4640_v49, %s4869_s24 }
 0x2f6   : > { %4649 = vtanh.f32 %v6740_v50  ;;  %v2549_v40 = vpop.permute.xlu0 %2548 }
 0x2f7   : > { %v4642_v58 = vpop.eup %4641  ;;  %v6746_v18 = vadd.f32 %v2549_v40, %v2294_v46 }
 0x2f8   : > { %2734 = vrot.lane.b32.xlu1 %v4642_v58, %s4869_s24 }
 0x2f9   : > { %7553 = vst [vmem:[#allocation63_spill] sm:$0xff] %v6746_v18  ;;  %4651 = vtanh.f32 %v6746_v18 }
 0x2fa   : > { %v4644_v38 = vpop.eup %4643 }
 0x2fb   : > { %2732 = vrot.lane.b32.xlu0 %v4644_v38, %s4869_s24 }
 0x2fd   : > { %v4646_v63 = vpop.eup %4645 }
 0x2fe   : > { %2738 = vrot.lane.b32.xlu1 %v4646_v63, %s4869_s24 }
 0x300   : > { %v4648_v2 = vpop.eup %4647 }
 0x301   : > { %2736 = vrot.lane.b32.xlu0 %v4648_v2, %s4869_s24 }
 0x303   : > { %v4650_v13 = vpop.eup %4649 }
 0x304   : > { %2742 = vrot.lane.b32.xlu1 %v4650_v13, %s4869_s24 }
 0x306   : > { %v4652_v49 = vpop.eup %4651 }
 0x307   : > { %2740 = vrot.lane.b32.xlu0 %v4652_v49, %s4869_s24 }
 0x327   : > { %v2683_v56 = vpop.permute.xlu1 %2682 }
 0x328   : > { %v2777_v46 = vmul.f32 %v2683_v56, %v6145_v25 }
 0x32a   : > { %2842 = vrot.lane.b32.xlu1 %v2777_v46, %s4868_s15 }
 0x32e   : > { %v2681_v40 = vpop.permute.xlu0 %2680 }
 0x32f   : > { %v2776_v58 = vmul.f32 %v2681_v40, %v6164_v1 }
 0x331   : > { %2840 = vrot.lane.b32.xlu0 %v2776_v58, %s4868_s15 }
 0x332   : > { %v2687_v38 = vpop.permute.xlu1 %2686 }
 0x333   : > { %v2779_v63 = vmul.f32 %v2687_v38, %v6187_v48 }
 0x334   : > { %v2685_v2 = vpop.permute.xlu0 %2684 }
 0x335   : > { %2846 = vrot.lane.b32.xlu1 %v2779_v63, %s4868_s15  ;;  %v2778_v13 = vmul.f32 %v2685_v2, %v6210_v39 }
 0x336   : > { %v2691_v18 = vpop.permute.xlu1 %2690 }
 0x337   : > { %v2781_v49 = vmul.f32 %v2691_v18, %v6225_v60  ;;  %2844 = vrot.lane.b32.xlu0 %v2778_v13, %s4868_s15 }
 0x339   : > { %v2689_v25 = vpop.permute.xlu0 %2688  ;;  %2850 = vrot.lane.b32.xlu1 %v2781_v49, %s4868_s15 }
 0x33a   : > { %v2780_v56 = vmul.f32 %v2689_v25, %v6242_v21 }
 0x33b   : > { %v2695_v1 = vpop.permute.xlu1 %2694 }
 0x33c   : > { %2848 = vrot.lane.b32.xlu0 %v2780_v56, %s4868_s15  ;;  %v2783_v48 = vmul.f32 %v2695_v1, %v6259_v12 }
 0x33d   : > { %v2693_v46 = vpop.permute.xlu0 %2692 }
 0x33e   : > { %v2782_v40 = vmul.f32 %v2693_v46, %v6273_v30  ;;  %2854 = vrot.lane.b32.xlu1 %v2783_v48, %s4868_s15 }
 0x33f   : > { %v2699_v39 = vpop.permute.xlu1 %2698 }
 0x340   : > { %v2785_v60 = vmul.f32 %v2699_v39, %v6289_v11  ;;  %2852 = vrot.lane.b32.xlu0 %v2782_v40, %s4868_s15 }
 0x341   : > { %v2697_v18 = vpop.permute.xlu0 %2696 }
 0x342   : > { %v2784_v21 = vmul.f32 %v2697_v18, %v6304_v34  ;;  %2858 = vrot.lane.b32.xlu1 %v2785_v60, %s4868_s15 }
 0x344   : > { %v2703_v58 = vpop.permute.xlu1 %2702  ;;  %2856 = vrot.lane.b32.xlu0 %v2784_v21, %s4868_s15 }
 0x345   : > { %v2787_v38 = vmul.f32 %v2703_v58, %v6318_v57  ;;  %v2701_v12 = vpop.permute.xlu0 %2700 }
 0x346   : > { %v2786_v30 = vmul.f32 %v2701_v12, %v6330_v62 }
 0x347   : > { %2862 = vrot.lane.b32.xlu1 %v2787_v38, %s4868_s15 }
 0x348   : > { %v2707_v63 = vpop.permute.xlu1 %2706  ;;  %2860 = vrot.lane.b32.xlu0 %v2786_v30, %s4868_s15 }
 0x349   : > { %v2789_v11 = vmul.f32 %v2707_v63, %v6335_v54  ;;  %v2705_v2 = vpop.permute.xlu0 %2704 }
 0x34a   : > { %v2788_v34 = vmul.f32 %v2705_v2, %v6348_v5 }
 0x34b   : > { %2866 = vrot.lane.b32.xlu1 %v2789_v11, %s4868_s15 }
 0x34c   : > { %v2711_v13 = vpop.permute.xlu1 %2710  ;;  %2864 = vrot.lane.b32.xlu0 %v2788_v34, %s4868_s15 }
 0x34d   : > { %v2791_v57 = vmul.f32 %v2711_v13, %v6359_v55  ;;  %v2709_v49 = vpop.permute.xlu0 %2708 }
 0x34e   : > { %v2790_v62 = vmul.f32 %v2709_v49, %v6375_v41 }
 0x34f   : > { %2870 = vrot.lane.b32.xlu1 %v2791_v57, %s4868_s15 }
 0x350   : > { %v2715_v25 = vpop.permute.xlu1 %2714  ;;  %2868 = vrot.lane.b32.xlu0 %v2790_v62, %s4868_s15 }
 0x351   : > { %v2793_v54 = vmul.f32 %v2715_v25, %v6384_v33  ;;  %v2713_v56 = vpop.permute.xlu0 %2712 }
 0x352   : > { %v2792_v5 = vmul.f32 %v2713_v56, %v6395_v3 }
 0x353   : > { %2874 = vrot.lane.b32.xlu1 %v2793_v54, %s4868_s15 }
 0x354   : > { %v2719_v1 = vpop.permute.xlu1 %2718  ;;  %2872 = vrot.lane.b32.xlu0 %v2792_v5, %s4868_s15 }
 0x355   : > { %v2795_v55 = vmul.f32 %v2719_v1, %v6404_v7  ;;  %v2717_v48 = vpop.permute.xlu0 %2716  ;;  %v7554_v1 = vlaneseq }
 0x356   : > { %v2794_v41 = vmul.f32 %v2717_v48, %v6413_v37 }
 0x357   : > { %2878 = vrot.lane.b32.xlu1 %v2795_v55, %s4868_s15  ;;  %v2974_v55 = vshrl.u32 %v7554_v1, 7 }
 0x358   : > { %v2723_v46 = vpop.permute.xlu1 %2722  ;;  %2876 = vrot.lane.b32.xlu0 %v2794_v41, %s4868_s15 }
 0x359   : > { %v2797_v33 = vmul.f32 %v2723_v46, %v6423_v43 }
 0x35b   : > { %v2721_v40 = vpop.permute.xlu0 %2720  ;;  %2882 = vrot.lane.b32.xlu1 %v2797_v33, %s4868_s15 }
 0x35c   : > { %v2796_v3 = vmul.f32 %v2721_v40, %v6430_v47 }
 0x35e   : > { %v2727_v39 = vpop.permute.xlu1 %2726  ;;  %2880 = vrot.lane.b32.xlu0 %v2796_v3, %s4868_s15 }
 0x35f   : > { %v2799_v7 = vmul.f32 %v2727_v39, %v6437_v8 }
 0x361   : > { %v2725_v60 = vpop.permute.xlu0 %2724  ;;  %2886 = vrot.lane.b32.xlu1 %v2799_v7, %s4868_s15 }
 0x362   : > { %v2798_v37 = vmul.f32 %v2725_v60, %v6444_v19 }
 0x364   : > { %v2731_v18 = vpop.permute.xlu1 %2730  ;;  %2884 = vrot.lane.b32.xlu0 %v2798_v37, %s4868_s15 }
 0x365   : > { %v2801_v43 = vmul.f32 %v2731_v18, %v6451_v35 }
 0x367   : > { %v2729_v21 = vpop.permute.xlu0 %2728  ;;  %2890 = vrot.lane.b32.xlu1 %v2801_v43, %s4868_s15 }
 0x368   : > { %v2800_v47 = vmul.f32 %v2729_v21, %v6458_v31 }
 0x36a   : > { %v2735_v58 = vpop.permute.xlu1 %2734  ;;  %2888 = vrot.lane.b32.xlu0 %v2800_v47, %s4868_s15 }
 0x36b   : > { %v2803_v8 = vmul.f32 %v2735_v58, %v6465_v61 }
 0x36d   : > { %v2733_v38 = vpop.permute.xlu0 %2732  ;;  %2894 = vrot.lane.b32.xlu1 %v2803_v8, %s4868_s15 }
 0x36e   : > { %v2802_v19 = vmul.f32 %v2733_v38, %v6471_v22 }
 0x370   : > { %v2739_v12 = vpop.permute.xlu1 %2738  ;;  %2892 = vrot.lane.b32.xlu0 %v2802_v19, %s4868_s15 }
 0x371   : > { %v2805_v35 = vmul.f32 %v2739_v12, %v6477_v23 }
 0x373   : > { %v2737_v30 = vpop.permute.xlu0 %2736  ;;  %2898 = vrot.lane.b32.xlu1 %v2805_v35, %s4868_s15 }
 0x374   : > { %v2804_v31 = vmul.f32 %v2737_v30, %v6483_v0  ;;  %v4871_v0 = vmov 1983009808  }
 0x375   : > { %v2971_v25 = vunpack.c.l.s4 %v4871_v0 }
 0x376   : > { %v2743_v63 = vpop.permute.xlu1 %2742  ;;  %2896 = vrot.lane.b32.xlu0 %v2804_v31, %s4868_s15 }
 0x377   : > { %v2807_v61 = vmul.f32 %v2743_v63, %v6489_v53  ;;  %v2972_v5 = vunpack.c.0.s8 %v2971_v25 }
 0x379   : > { %v2741_v11 = vpop.permute.xlu0 %2740  ;;  %2902 = vrot.lane.b32.xlu1 %v2807_v61, %s4868_s15  ;;  %v6832_v60 = vsub.s32 %v2972_v5, %v2974_v55 }
 0x37a   : > { %v2806_v22 = vmul.f32 %v2741_v11, %v6495_v29  ;;  %v4872_v29 = vmov 1934713408  }
 0x37b   : > { %v3035_v48 = vunpack.c.l.s4 %v4872_v29 }
 0x37c   : > { %2900 = vrot.lane.b32.xlu0 %v2806_v22, %s4868_s15 }
 0x37d   : > { %v3036_v37 = vunpack.c.0.s8 %v3035_v48 }
 0x37f   : > { %v6843_v12 = vsub.s32 %v3036_v37, %v2974_v55 }
 0x39c   : > { %v2843_v2 = vpop.permute.xlu1 %2842 }
 0x3a3   : > { %v2841_v34 = vpop.permute.xlu0 %2840 }
 0x3a7   : > { %v2847_v23 = vpop.permute.xlu1 %2846 }
 0x3a8   : > { %v2939_v46 = vsel %vm1807_vm0, %v2847_v23, %v6575_v36  ;;  %v2936_v36 = vsel %vm1807_vm0, %v2841_v34, %v6570_v51 }
 0x3a9   : > { %v2845_v13 = vpop.permute.xlu0 %2844 }
 0x3ab   : > { %v2851_v57 = vpop.permute.xlu1 %2850 }
 0x3ac   : > { %v2941_v33 = vsel %vm1807_vm0, %v2851_v57, %v6585_v26  ;;  %v2938_v26 = vsel %vm1807_vm0, %v2845_v13, %v6580_v28 }
 0x3ae   : > { %v2849_v49 = vpop.permute.xlu0 %2848 }
 0x3af   : > { %v2940_v40 = vsel %vm1807_vm0, %v2849_v49, %v6590_v16 }
 0x3b0   : > { %v2855_v62 = vpop.permute.xlu1 %2854  ;;  %v2968_v21 = vcombine.low %v2936_v36, %v2940_v40  ;;  %v2969_v47 = vcombine.high %v2936_v36, %v2940_v40 }
 0x3b1   : > { %v2943_v53 = vsel %vm1807_vm0, %v2855_v62, %v6596_v52  ;;  %v2937_v52 = vsel %vm1807_vm0, %v2843_v2, %v6565_v45 }
 0x3b2   : > { %v2853_v54 = vpop.permute.xlu0 %2852  ;;  %v3256_v3 = vcombine.low %v2939_v46, %v2943_v53  ;;  %v3240_v18 = vcombine.low %v2937_v52, %v2941_v33  ;;  %v3241_v16 = vcombine.high %v2937_v52, %v2941_v33  ;;  %v3257_v58 = vcombine.high %v2939_v46, %v2943_v53 }
 0x3b3   : > { %v2942_v7 = vsel %vm1807_vm0, %v2853_v54, %v6601_v27  ;;  %v6850_v63 = vrot.slane %v2968_v21, %v6832_v60  ;;  %v6853_v61 = vrot.slane %v2969_v47, %v6832_v60 }
 0x3b4   : > { %v2859_v56 = vpop.permute.xlu1 %2858  ;;  %v3264_v45 = vrot.slane %v3256_v3, %v6832_v60  ;;  %v2984_v8 = vcombine.low %v2938_v26, %v2942_v7  ;;  %v2985_v27 = vcombine.high %v2938_v26, %v2942_v7  ;;  %v3248_v35 = vrot.slane %v3240_v18, %v6832_v60 }
 0x3b5   : > { %v2945_v19 = vsel %vm1807_vm0, %v2859_v56, %v6607_v42  ;;  %v6847_v31 = vrot.slane %v3241_v16, %v6832_v60  ;;  %v6856_v42 = vrot.slane %v3257_v58, %v6832_v60 }
 0x3b6   : > { %v2857_v41 = vpop.permute.xlu0 %2856  ;;  %v2992_v22 = vrot.slane %v2984_v8, %v6832_v60  ;;  %v6862_v23 = vrot.slane %v2985_v27, %v6832_v60 }
 0x3b7   : > { %v2944_v13 = vsel %vm1807_vm0, %v2857_v41, %v6612_v4  ;;  %v3320_v41 = vcombine.low %v6847_v31, %v6856_v42  ;;  %v3321_v27 = vcombine.high %v6847_v31, %v6856_v42 }
 0x3b8   : > { %v3032_v46 = vcombine.low %v6850_v63, %v2992_v22  ;;  %v3033_v33 = vcombine.high %v6850_v63, %v2992_v22  ;;  %v3048_v18 = vcombine.low %v6853_v61, %v6862_v23 }
 0x3b9   : > { %v2863_v39 = vpop.permute.xlu1 %2862  ;;  %v6919_v31 = vrot.slane %v3320_v41, %v6843_v12 }
 0x3ba   : > { %v2861_v43 = vpop.permute.xlu0 %2860  ;;  %v2947_v57 = vsel %vm1807_vm0, %v2863_v39, %v6618_v59  ;;  %v6922_v42 = vrot.slane %v3032_v46, %v6843_v12 }
 0x3bb   : > { %v2946_v62 = vsel %vm1807_vm0, %v2861_v43, %v6624_v17  ;;  %v3305_v17 = vcombine.high %v3248_v35, %v3264_v45 }
 0x3bd   : > { %v2867_v38 = vpop.permute.xlu1 %2866 }
 0x3be   : > { %v2949_v51 = vsel %vm1807_vm0, %v2867_v38, %v6630_v44  ;;  %v2865_v30 = vpop.permute.xlu0 %2864  ;;  %v3304_v44 = vcombine.low %v3248_v35, %v3264_v45  ;;  %v6898_v38 = vrot.slane %v3305_v17, %v6843_v12  ;;  %v7555_v17 = vld [vmem:[#allocation56_spill] sm:$0xff] }
 0x3bf   : > { %v3272_v28 = vcombine.low %v2945_v19, %v2949_v51  ;;  %v3273_v11 = vcombine.high %v2945_v19, %v2949_v51  ;;  %v2948_v2 = vsel %vm1807_vm0, %v2865_v30, %v6636_v14 }
 0x3c0   : > { %v3000_v53 = vcombine.low %v2944_v13, %v2948_v2  ;;  %v3001_v5 = vcombine.high %v2944_v13, %v2948_v2  ;;  %v6879_v48 = vrot.slane %v3304_v44, %v6843_v12  ;;  %v6930_v2 = vrot.slane %v3033_v33, %v6843_v12 }
 0x3c1   : > { %v2871_v34 = vpop.permute.xlu1 %2870  ;;  %v3280_v0 = vrot.slane %v3272_v28, %v6832_v60  ;;  %v3287_v56 = vrot.slane %v3273_v11, %v6832_v60  ;;  %v3049_v28 = vcombine.high %v6853_v61, %v6862_v23 }
 0x3c2   : > { %v2951_v49 = vsel %vm1807_vm0, %v2871_v34, %v6641_v10  ;;  %v2869_v54 = vpop.permute.xlu0 %2868  ;;  %v3008_v52 = vrot.slane %v3000_v53, %v6832_v60  ;;  %v3015_v7 = vrot.slane %v3001_v5, %v6832_v60  ;;  %v6933_v34 = vrot.slane %v3048_v18, %v6843_v12 }
 0x3c3   : > { %v3288_v25 = vcombine.low %v2947_v57, %v2951_v49  ;;  %v3289_v14 = vcombine.high %v2947_v57, %v2951_v49  ;;  %v2950_v4 = vsel %vm1807_vm0, %v2869_v54, %v6647_v24  ;;  %v6942_v57 = vrot.slane %v3321_v27, %v6843_v12 }
 0x3c4   : > { %v3016_v10 = vcombine.low %v2946_v62, %v2950_v4  ;;  %v3017_v55 = vcombine.high %v2946_v62, %v2950_v4 }
 0x3c5   : > { %v3296_v59 = vrot.slane %v3288_v25, %v6832_v60  ;;  %v3303_v1 = vrot.slane %v3289_v14, %v6832_v60  ;;  %v2875_v29 = vpop.permute.xlu1 %2874  ;;  %v6951_v14 = vrot.slane %v3049_v28, %v6843_v12 }
 0x3c6   : > { %v2873_v39 = vpop.permute.xlu0 %2872  ;;  %v3024_v37 = vrot.slane %v3016_v10, %v6832_v60  ;;  %v3031_v36 = vrot.slane %v3017_v55, %v6832_v60 }
 0x3c7   : > { %v3336_v40 = vcombine.low %v3280_v0, %v3296_v59  ;;  %v3337_v24 = vcombine.high %v3280_v0, %v3296_v59  ;;  %v3352_v3 = vcombine.low %v3287_v56, %v3303_v1  ;;  %v3353_v16 = vcombine.high %v3287_v56, %v3303_v1 }
 0x3c8   : > { %v3064_v47 = vcombine.low %v3008_v52, %v3024_v37  ;;  %v3065_v58 = vcombine.high %v3008_v52, %v3024_v37  ;;  %v3080_v45 = vcombine.low %v3015_v7, %v3031_v36  ;;  %v3081_v8 = vcombine.high %v3015_v7, %v3031_v36  ;;  %v7558_v7 = vld [vmem:[#allocation57_spill] sm:$0xff] }
 0x3c9   : > { %v6892_v43 = vrot.slane %v3336_v40, %v6843_v12  ;;  %v6895_v26 = vrot.slane %v3337_v24, %v6843_v12  ;;  %v2879_v21 = vpop.permute.xlu1 %2878  ;;  %v6903_v19 = vrot.slane %v3352_v3, %v6843_v12  ;;  %v6936_v23 = vrot.slane %v3353_v16, %v6843_v12  ;;  %v7557_v24 = vld [vmem:[#allocation55_spill] sm:$0xff] }
 0x3ca   : > { %v2877_v51 = vpop.permute.xlu0 %2876  ;;  %v6910_v30 = vrot.slane %v3064_v47, %v6843_v12  ;;  %v6913_v63 = vrot.slane %v3065_v58, %v6843_v12  ;;  %v6916_v11 = vrot.slane %v3080_v45, %v6843_v12  ;;  %v6939_v13 = vrot.slane %v3081_v8, %v6843_v12 }
 0x3cb   : > { %v3369_v35 = vcombine.high %v6879_v48, %v6892_v43  ;;  %v3368_v61 = vcombine.low %v6879_v48, %v6892_v43  ;;  %v3370_v22 = vcombine.low %v6898_v38, %v6895_v26  ;;  %v3371_v0 = vcombine.high %v6898_v38, %v6895_v26 }
 0x3cc   : > { %v3372_v25 = vcombine.low %v6919_v31, %v6903_v19  ;;  %v3096_v54 = vcombine.low %v6922_v42, %v6910_v30  ;;  %v3098_v56 = vcombine.low %v6930_v2, %v6913_v63  ;;  %v3100_v53 = vcombine.low %v6933_v34, %v6916_v11 }
 0x3cd   : > { %v2883_v44 = vpop.permute.xlu1 %2882  ;;  %3546 = vrot.lane.b32.xlu0 %v3369_v35, %s4869_s24  ;;  %v3102_v1 = vcombine.low %v6951_v14, %v6939_v13  ;;  %v3374_v10 = vcombine.low %v6942_v57, %v6936_v23  ;;  %v2955_v55 = vsel %vm1807_vm0, %v2879_v21, %v6665_v9  ;;  %v2954_v3 = vsel %vm1807_vm0, %v2877_v51, %v7557_v24 }
 0x3ce   : > { %v2957_v49 = vsel %vm1807_vm0, %v2883_v44, %v6677_v15  ;;  %v2953_v15 = vsel %vm1807_vm0, %v2875_v29, %v6653_v20  ;;  %v3373_v20 = vcombine.high %v6919_v31, %v6903_v19  ;;  %v7556_v29 = vld [vmem:[#allocation54_spill] sm:$0xff]  ;;  %v3097_v18 = vcombine.high %v6922_v42, %v6910_v30 }
 0x3cf   : > { %v3377_v5 = vcombine.high %v2953_v15, %v2957_v49  ;;  %v2952_v46 = vsel %vm1807_vm0, %v2873_v39, %v7556_v29  ;;  %v3099_v27 = vcombine.high %v6930_v2, %v6913_v63  ;;  %v3101_v44 = vcombine.high %v6933_v34, %v6916_v11 }
 0x3d0   : > { %v2881_v62 = vpop.permute.xlu0 %2880 }
 0x3d1   : > { %3554 = vrot.lane.b32.xlu0 %v3371_v0, %s4869_s24  ;;  %v2956_v4 = vsel %vm1807_vm0, %v2881_v62, %v6683_v6  ;;  %v3391_v52 = vrot.slane %v3377_v5, %v6832_v60  ;;  %v3376_v62 = vcombine.low %v2953_v15, %v2957_v49 }
 0x3d2   : > { %v3105_v33 = vcombine.high %v2952_v46, %v2956_v4 }
 0x3d3   : > { %v2887_v59 = vpop.permute.xlu1 %2886 }
 0x3d4   : > { %v2959_v41 = vsel %vm1807_vm0, %v2887_v59, %v7555_v17  ;;  %v6986_v21 = vrot.slane %v3105_v33, %v6832_v60  ;;  %v3103_v17 = vcombine.high %v6951_v14, %v6939_v13  ;;  %v7559_v33 = vld [vmem:[#allocation62_spill] sm:$0xff] }
 0x3d5   : > { %v3393_v6 = vcombine.high %v2955_v55, %v2959_v41  ;;  %3562 = vrot.lane.b32.xlu0 %v3373_v20, %s4869_s24  ;;  %v3392_v35 = vcombine.low %v2955_v55, %v2959_v41  ;;  %v3384_v20 = vrot.slane %v3376_v62, %v6832_v60 }
 0x3d6   : > { %v2885_v40 = vpop.permute.xlu0 %2884 }
 0x3d7   : > { %v3407_v9 = vrot.slane %v3393_v6, %v6832_v60  ;;  %v2958_v37 = vsel %vm1807_vm0, %v2885_v40, %v7558_v7  ;;  %v3400_v5 = vrot.slane %v3392_v35, %v6832_v60  ;;  %v3104_v6 = vcombine.low %v2952_v46, %v2956_v4  ;;  %v7560_v7 = vld [vmem:[#allocation58_spill] sm:$0xff] }
 0x3d8   : > { %v3121_v36 = vcombine.high %v2954_v3, %v2958_v37  ;;  %v3120_v59 = vcombine.low %v2954_v3, %v2958_v37  ;;  %v3375_v3 = vcombine.high %v6942_v57, %v6936_v23 }
 0x3d9   : > { %v3457_v39 = vcombine.high %v3391_v52, %v3407_v9  ;;  %v2891_v16 = vpop.permute.xlu1 %2890  ;;  %3514 = vrot.lane.b32.xlu0 %v3097_v18, %s4869_s24  ;;  %v3440_v55 = vcombine.low %v3384_v20, %v3400_v5  ;;  %v3441_v41 = vcombine.high %v3384_v20, %v3400_v5  ;;  %v3456_v15 = vcombine.low %v3391_v52, %v3407_v9  ;;  %v7562_v5 = vld [vmem:[#allocation59_spill] sm:$0xff] }
 0x3da   : > { %v6989_v47 = vrot.slane %v3121_v36, %v6832_v60  ;;  %v3128_v40 = vrot.slane %v3120_v59, %v6832_v60  ;;  %v2961_v37 = vsel %vm1807_vm0, %v2891_v16, %v7560_v7  ;;  %v3112_v36 = vrot.slane %v3104_v6, %v6832_v60 }
 0x3db   : > { %v6993_v58 = vrot.slane %v3457_v39, %v6843_v12  ;;  %v7021_v46 = vrot.slane %v3440_v55, %v6843_v12  ;;  %v7024_v18 = vrot.slane %v3441_v41, %v6843_v12 }
 0x3dc   : > { %v3185_v45 = vcombine.high %v6986_v21, %v6989_v47  ;;  %v2889_v8 = vpop.permute.xlu0 %2888  ;;  %v3168_v16 = vcombine.low %v3112_v36, %v3128_v40  ;;  %v3169_v62 = vcombine.high %v3112_v36, %v3128_v40 }
 0x3dd   : > { %3522 = vrot.lane.b32.xlu0 %v3099_v27, %s4869_s24  ;;  %v7561_v27 = vld [vmem:[#allocation60_spill] sm:$0xff]  ;;  %v2960_v59 = vsel %vm1807_vm0, %v2889_v8, %v7562_v5 }
 0x3de   : > { %v7000_v51 = vrot.slane %v3185_v45, %v6843_v12  ;;  %v7029_v45 = vrot.slane %v3456_v15, %v6843_v12  ;;  %v7564_v15 = vld [vmem:[#allocation63_spill] sm:$0xff]  ;;  %v7046_v8 = vrot.slane %v3168_v16, %v6843_v12 }
 0x3df   : > { %v2895_v28 = vpop.permute.xlu1 %2894 }
 0x3e0   : > { %v2963_v35 = vsel %vm1807_vm0, %v2895_v28, %v7561_v27 }
 0x3e1   : > { %3530 = vrot.lane.b32.xlu0 %v3101_v44, %s4869_s24 }
 0x3e2   : > { %v2893_v0 = vpop.permute.xlu0 %2892 }
 0x3e5   : > { %v2899_v29 = vpop.permute.xlu1 %2898  ;;  %3538 = vrot.lane.b32.xlu0 %v3103_v17, %s4869_s24 }
 0x3e6   : > { %v2965_v49 = vsel %vm1807_vm0, %v2899_v29, %v7559_v33  ;;  %v7563_v29 = vld [vmem:[#allocation61_spill] sm:$0xff] }
 0x3e7   : > { %v3408_v4 = vcombine.low %v2961_v37, %v2965_v49  ;;  %v3409_v52 = vcombine.high %v2961_v37, %v2965_v49 }
 0x3e8   : > { %v2897_v24 = vpop.permute.xlu0 %2896 }
 0x3e9   : > { %3570 = vrot.lane.b32.xlu0 %v3375_v3, %s4869_s24  ;;  %v2964_v9 = vsel %vm1807_vm0, %v2897_v24, %v6734_v32  ;;  %v2962_v32 = vsel %vm1807_vm0, %v2893_v0, %v7563_v29  ;;  %v3416_v6 = vrot.slane %v3408_v4, %v6832_v60  ;;  %v3423_v49 = vrot.slane %v3409_v52, %v6832_v60 }
 0x3ea   : > { %v3136_v55 = vcombine.low %v2960_v59, %v2964_v9  ;;  %v3137_v41 = vcombine.high %v2960_v59, %v2964_v9  ;;  %v3184_v0 = vcombine.low %v6986_v21, %v6989_v47 }
 0x3eb   : > { %v2903_v39 = vpop.permute.xlu1 %2902 }
 0x3ec   : > { %v2967_v44 = vsel %vm1807_vm0, %v2903_v39, %v6740_v50  ;;  %v3144_v52 = vrot.slane %v3136_v55, %v6832_v60  ;;  %v3151_v9 = vrot.slane %v3137_v41, %v6832_v60 }
 0x3ed   : > { %v3424_v17 = vcombine.low %v2963_v35, %v2967_v44  ;;  %v3425_v20 = vcombine.high %v2963_v35, %v2967_v44 }
 0x3ee   : > { %v2901_v33 = vpop.permute.xlu0 %2900 }
 0x3ef   : > { %v3432_v28 = vrot.slane %v3424_v17, %v6832_v60  ;;  %v3439_v50 = vrot.slane %v3425_v20, %v6832_v60  ;;  %v2966_v40 = vsel %vm1807_vm0, %v2901_v33, %v7564_v15  ;;  %v7067_v20 = vrot.slane %v3169_v62, %v6843_v12 }
 0x3f0   : > { %v3152_v24 = vcombine.low %v2962_v32, %v2966_v40  ;;  %v3153_v3 = vcombine.high %v2962_v32, %v2966_v40 }
 0x3f1   : > { %v3472_v7 = vcombine.low %v3416_v6, %v3432_v28  ;;  %v3473_v37 = vcombine.high %v3416_v6, %v3432_v28  ;;  %v3488_v36 = vcombine.low %v3423_v49, %v3439_v50  ;;  %v3489_v4 = vcombine.high %v3423_v49, %v3439_v50 }
 0x3f2   : > { %v3160_v39 = vrot.slane %v3152_v24, %v6832_v60  ;;  %v3167_v27 = vrot.slane %v3153_v3, %v6832_v60  ;;  %v7070_v60 = vrot.slane %v3184_v0, %v6843_v12 }
 0x3f3   : > { %v7055_v16 = vrot.slane %v3472_v7, %v6843_v12  ;;  %v7058_v35 = vrot.slane %v3473_v37, %v6843_v12  ;;  %v7061_v21 = vrot.slane %v3488_v36, %v6843_v12  ;;  %v7064_v47 = vrot.slane %v3489_v4, %v6843_v12 }
 0x3f4   : > { %v3200_v44 = vcombine.low %v3144_v52, %v3160_v39  ;;  %v3201_v5 = vcombine.high %v3144_v52, %v3160_v39  ;;  %v3216_v59 = vcombine.low %v3151_v9, %v3167_v27  ;;  %v3217_v17 = vcombine.high %v3151_v9, %v3167_v27 }
 0x3f5   : > { %v3505_v29 = vcombine.high %v7021_v46, %v7055_v16  ;;  %v3511_v32 = vcombine.high %v6993_v58, %v7064_v47  ;;  %v3504_v33 = vcombine.low %v7021_v46, %v7055_v16  ;;  %v3506_v49 = vcombine.low %v7024_v18, %v7058_v35 }
 0x3f6   : > { %v7077_v6 = vrot.slane %v3200_v44, %v6843_v12  ;;  %v7080_v55 = vrot.slane %v3201_v5, %v6843_v12  ;;  %v7083_v41 = vrot.slane %v3216_v59, %v6843_v12  ;;  %v7086_v62 = vrot.slane %v3217_v17, %v6843_v12 }
 0x3f7   : > { %3548 = vrot.lane.b32.xlu1 %v3505_v29, %s4869_s24  ;;  %v3508_v28 = vcombine.low %v7029_v45, %v7061_v21  ;;  %v3510_v50 = vcombine.low %v6993_v58, %v7064_v47  ;;  %v3507_v15 = vcombine.high %v7024_v18, %v7058_v35  ;;  %v3509_v18 = vcombine.high %v7029_v45, %v7061_v21 }
 0x3f8   : > { %v3239_v12 = vcombine.high %v7000_v51, %v7086_v62  ;;  %v3232_v40 = vcombine.low %v7046_v8, %v7077_v6  ;;  %v3234_v46 = vcombine.low %v7067_v20, %v7080_v55  ;;  %v3236_v0 = vcombine.low %v7070_v60, %v7083_v41 }
 0x3f9   : > { %v3238_v24 = vcombine.low %v7000_v51, %v7086_v62  ;;  %v3233_v3 = vcombine.high %v7046_v8, %v7077_v6  ;;  %v3235_v7 = vcombine.high %v7067_v20, %v7080_v55  ;;  %v3237_v51 = vcombine.high %v7070_v60, %v7083_v41 }
 0x3fb   : > { %3556 = vrot.lane.b32.xlu1 %v3507_v15, %s4869_s24 }
 0x3ff   : > { %3564 = vrot.lane.b32.xlu1 %v3509_v18, %s4869_s24 }
 0x403   : > { %3516 = vrot.lane.b32.xlu1 %v3233_v3, %s4869_s24 }
 0x407   : > { %3524 = vrot.lane.b32.xlu1 %v3235_v7, %s4869_s24 }
 0x40b   : > { %3532 = vrot.lane.b32.xlu1 %v3237_v51, %s4869_s24 }
 0x40f   : > { %3540 = vrot.lane.b32.xlu1 %v3239_v12, %s4869_s24 }
 0x413   : > { %3572 = vrot.lane.b32.xlu1 %v3511_v32, %s4869_s24 }
 0x43f   : > { %v3547_v45 = vpop.permute.xlu0 %3546 }
 0x440   : > { %v3584_v8 = vsel %vm1840_vm1, %v3368_v61, %v3547_v45 }
 0x441   : > { %3596 = vst [vmem:[%s7129_s10 + $0x20] sm:$0xff] %v3584_v8 }
 0x443   : > { %v3555_v37 = vpop.permute.xlu0 %3554 }
 0x444   : > { %v3586_v36 = vsel %vm1840_vm1, %v3370_v22, %v3555_v37 }
 0x445   : > { %3597 = vst [vmem:[%s7129_s10 + $0x28] sm:$0xff] %v3586_v36 }
 0x447   : > { %v3563_v48 = vpop.permute.xlu0 %3562 }
 0x448   : > { %v3588_v43 = vsel %vm1840_vm1, %v3372_v25, %v3563_v48 }
 0x449   : > { %3598 = vst [vmem:[%s7129_s10 + $0x30] sm:$0xff] %v3588_v43 }
 0x44b   : > { %v3515_v61 = vpop.permute.xlu0 %3514 }
 0x44c   : > { %v3576_v4 = vsel %vm1840_vm1, %v3096_v54, %v3515_v61 }
 0x44d   : > { %3592 = vst [vmem:[%s7129_s10] sm:$0xff] %v3576_v4 }
 0x44f   : > { %v3523_v26 = vpop.permute.xlu0 %3522 }
 0x450   : > { %v3578_v38 = vsel %vm1840_vm1, %v3098_v56, %v3523_v26 }
 0x451   : > { %3593 = vst [vmem:[%s7129_s10 + $0x8] sm:$0xff] %v3578_v38 }
 0x453   : > { %v3531_v19 = vpop.permute.xlu0 %3530 }
 0x454   : > { %v3580_v31 = vsel %vm1840_vm1, %v3100_v53, %v3531_v19 }
 0x455   : > { %3594 = vst [vmem:[%s7129_s10 + $0x10] sm:$0xff] %v3580_v31 }
 0x457   : > { %v3539_v30 = vpop.permute.xlu0 %3538 }
 0x458   : > { %v3582_v42 = vsel %vm1840_vm1, %v3102_v1, %v3539_v30 }
 0x459   : > { %3595 = vst [vmem:[%s7129_s10 + $0x18] sm:$0xff] %v3582_v42 }
 0x45b   : > { %v3571_v63 = vpop.permute.xlu0 %3570 }
 0x45c   : > { %v3590_v22 = vsel %vm1840_vm1, %v3374_v10, %v3571_v63 }
 0x45d   : > { %3599 = vst [vmem:[%s7129_s10 + $0x38] sm:$0xff] %v3590_v22 }
 0x469   : > { %v3549_v11 = vpop.permute.xlu1 %3548 }
 0x46a   : > { %v3585_v2 = vsel %vm1840_vm1, %v3504_v33, %v3549_v11 }
 0x46b   : > { %3604 = vst [vmem:[%s7129_s10 + $0x60] sm:$0xff] %v3585_v2 }
 0x46d   : > { %v3557_v34 = vpop.permute.xlu1 %3556 }
 0x46e   : > { %v3587_v13 = vsel %vm1840_vm1, %v3506_v49, %v3557_v34 }
 0x46f   : > { %3605 = vst [vmem:[%s7129_s10 + $0x68] sm:$0xff] %v3587_v13 }
 0x471   : > { %v3565_v25 = vpop.permute.xlu1 %3564 }
 0x472   : > { %v3589_v14 = vsel %vm1840_vm1, %v3508_v28, %v3565_v25 }
 0x473   : > { %3606 = vst [vmem:[%s7129_s10 + $0x70] sm:$0xff] %v3589_v14 }
 0x475   : > { %v3517_v23 = vpop.permute.xlu1 %3516 }
 0x476   : > { %v3577_v57 = vsel %vm1840_vm1, %v3232_v40, %v3517_v23 }
 0x477   : > { %3600 = vst [vmem:[%s7129_s10 + $0x40] sm:$0xff] %v3577_v57 }
 0x479   : > { %v3525_v54 = vpop.permute.xlu1 %3524 }
 0x47a   : > { %v3579_v56 = vsel %vm1840_vm1, %v3234_v46, %v3525_v54 }
 0x47b   : > { %3601 = vst [vmem:[%s7129_s10 + $0x48] sm:$0xff] %v3579_v56 }
 0x47d   : > { %v3533_v53 = vpop.permute.xlu1 %3532 }
 0x47e   : > { %v3581_v1 = vsel %vm1840_vm1, %v3236_v0, %v3533_v53 }
 0x47f   : > { %3602 = vst [vmem:[%s7129_s10 + $0x50] sm:$0xff] %v3581_v1 }
 0x481   : > { %v3541_v10 = vpop.permute.xlu1 %3540 }
 0x482   : > { %v3583_v52 = vsel %vm1840_vm1, %v3238_v24, %v3541_v10 }
 0x483   : > { %3603 = vst [vmem:[%s7129_s10 + $0x58] sm:$0xff] %v3583_v52 }
 0x485   : > { %v3573_v9 = vpop.permute.xlu1 %3572 }
 0x486   : > { %v3591_v39 = vsel %vm1840_vm1, %v3510_v50, %v3573_v9 }
 0x487   : > { %3607 = vst [vmem:[%s7129_s10 + $0x78] sm:$0xff] %v3591_v39 }
 0x488   : > { %4781 = shalt.err (!%p4778_p13)
}
 0x489   : > { %s4782_s30 = scalar_lea.hbm %s7186_s6, 2048  ;;  %s4786_s1 = scalar_lea.hbm %s7247_s5, 4096 }
 0x48a   : > { %p4783_p0 = scmp.ne.s32.totalorder %s7186_s6, %s4782_s30  ;;  %p4787_p6 = scmp.lt.s32.totalorder %s7186_s6, %s7247_s5 }
 0x48b   : > { %p4788_p8 = scmp.lt.s32.totalorder %s4786_s1, %s4782_s30 }
 0x48c   : > { %p4784_p5 = pnand %p4783_p0, %p4990_p3 }
 0x48d   : > { %p4789_p11 = por %p4788_p8, %p4787_p6 }
 0x48e   : > { %p4785_p1 = pneg %p4784_p5 }
 0x490   : > { %p4790_p4 = pnand %p4789_p11, %p4785_p1 }
 0x492   : > { %4793 = shalt.err (!%p4790_p4)
}
 0x493   : > { %s4874_s17 = smov 1024  }
 0x494   : > { %4313 = dma.vmem_to_hbm [thread:$0]  (%p4990_p3), %s7188_s0, 2048, %s7186_s6, %s3609_s21, %s4874_s17, %s4874_s17, %s4869_s24  }
 0x495 PF: > { %s3640_s7 = sand.u32 1, %s4840_s18   ;;  %p7565_p7 = scmp.ne.s32.totalorder %s7315_s27, 0 }
 0x496   : > { %p7566_p12 = scmp.ge.s32.totalorder %s4860_s23, 2  ;;  %s3641_s10 = scalar_lea.sflag [#allocation5], %s3640_s7 }
 0x498   : > { %p4330_p9 = pnand %p7566_p12, %p7565_p7 }
 0x49a   : > { %p4331_p10 = pneg %p4330_p9 }
 0x49c   : > { %4835 = dma.done.wait (%p4331_p10), %s3641_s10, 2048  }
 0x49d   : > { %4837 = vsyncadd (%p4331_p10), %s3641_s10, 4294965248  ;;  %s22_s23 = sadd.s32 1, %s4860_s23   ;;  %s7567_s14 = sld [smem:[#allocation16_spill]] }
 0x49e   : > { %p19_p2 = scmp.ge.s32.totalorder %s22_s23, 4   ;;  %s7568_s20 = sld [smem:[#allocation18_spill]] }
 0x49f   : > { %s7569_s8 = sld [smem:[#allocation17_spill]]  ;;  %s7570_s18 = smov %s4844_s19 }
 0x4a0   : > { %s7572_s21 = smov %s4856_s22 }
 0x4a1   :  { %21 = sbr.rel (!%p19_p2) target bundleno = 10 (0xa), region = 110 }
 0x4a3   : > { %s7571_s19 = smov %s7567_s14 }
 0x4a5   : > { %s7573_s22 = smov %s7569_s8 }
 0x4a6   :  { %3646 = vsyncpa [#allocation4], 1 }
 0x4a7   :  { %3648 = vsyncpa [#allocation4 + $0x1], 1 }
 0x4a8   :  { %3649 = vsyncpa [#allocation7], 1 }
 0x4a9   :  { %3650 = vsyncpa [#allocation5], 1 }
 0x4aa   :  { %3652 = vsyncpa [#allocation5 + $0x1], 1 }

</bundles_post_ra>
